<compile_context>
chip_gen: v6e
topology: v6e:2x2x1
jax: 0.10.0
libtpu: 0.0.40
codegen_flags: <defaults>
</compile_context>

<pallas_src>
import functools
import math

import jax
import jax.numpy as jnp
from jax import lax
from jax.experimental import pallas as pl
from jax.experimental.pallas import tpu as pltpu

# Plain Python floats (NOT jnp scalars) so the kernels do not capture constants.
_NEG_INF = -1e30
_LN_EPS = 1e-5
_INV_SQRT2 = 1.0 / math.sqrt(2.0)
_BF16 = jnp.bfloat16


# ----------------------------------------------------------------------------
# in-kernel helpers
# ----------------------------------------------------------------------------
def _layer_norm(x, gamma, beta):
    """LayerNorm over the last axis. x:(rows, D), gamma/beta:(1, D)."""
    mu = jnp.mean(x, axis=-1, keepdims=True)
    var = jnp.mean((x - mu) ** 2, axis=-1, keepdims=True)
    return (x - mu) * lax.rsqrt(var + _LN_EPS) * gamma + beta


def _sigmoid(z):
    return 1.0 / (1.0 + jnp.exp(-z))


def _mha_core(q, kv, mask, n_heads):
    """Multi-head scaled-dot-product attention core for one batch element.

    q    : (tq, D)  f32  -- query projection, already scaled by 1/sqrt(d_k)
    kv   : (nk, 2D) bf16 -- precomputed [K | V] (hoisted out of this kernel)
    mask : (tq, nk) bf16 -- nonzero == masked out
    Returns the concatenated head outputs (tq, D) f32; the caller applies the
    output projection as ONE full-depth matmul.

    Heads are lane-ALIGNED 128-wide slices (d_k == 128 by construction), so
    every score / value matmul is a full-K MXU pass with no relayout.
    Softmax normalization is applied after P@V (d_k columns, not nk), with an
    exact reciprocal.
    NOTE: fully-masked rows degrade to a uniform distribution instead of the
    NaNs torch's -inf masked_fill would give.
    """
    tq, d = q.shape
    d_k = d // n_heads
    masked = mask != 0
    qb = q.astype(_BF16)

    heads = []
    for h in range(n_heads):
        ksl = slice(h * d_k, (h + 1) * d_k)
        vsl = slice(d + h * d_k, d + (h + 1) * d_k)
        s = jnp.einsum('qd,kd->qk', qb[:, ksl], kv[:, ksl],
                       preferred_element_type=jnp.float32)
        s = jnp.where(masked, _NEG_INF, s)
        m = jnp.max(s, axis=-1, keepdims=True)
        p = jnp.exp(s - m)
        l = jnp.sum(p, axis=-1, keepdims=True)
        oh = jnp.dot(p.astype(_BF16), kv[:, vsl],
                     preferred_element_type=jnp.float32)        # (tq, d_k)
        heads.append(oh * (1.0 / l))        # normalize post-PV, exact recip
    return jnp.concatenate(heads, axis=-1)                       # (tq, D)


# ----------------------------------------------------------------------------
# Pallas kernels
# ----------------------------------------------------------------------------
def _kv_proj_kernel(y_ref, wkv_ref, bkv_ref, o_ref):
    """[K | V] projection for one (batch, row-tile) block, emitted in bf16."""
    _, tl, d = y_ref.shape
    y2 = y_ref[...].reshape(tl, d).astype(_BF16)
    kv = jnp.dot(y2, wkv_ref[...], preferred_element_type=jnp.float32)
    kv = kv + bkv_ref[...]
    o_ref[...] = kv.astype(_BF16).reshape(1, tl, 2 * d)


def _self_att_kernel(x_ref, kv_ref, mask_ref, pad_ref,
                     wq_ref, wo_ref, vec_ref, o_ref, *, n_heads):
    """Self-attention + residual + LayerNorm + mask_pad for one query tile."""
    _, tq, d = x_ref.shape
    nk = kv_ref.shape[1]
    scale = 1.0 / math.sqrt(d // n_heads)

    vec = vec_ref[...]                                  # (4, d): bq, bo, g, beta
    bq, bo, g, beta = vec[0:1], vec[1:2], vec[2:3], vec[3:4]

    x2 = x_ref[...].reshape(tq, d)                      # f32 residual / queries
    q = jnp.dot(x2.astype(_BF16), wq_ref[...],
                preferred_element_type=jnp.float32) + bq
    q = q * scale

    heads = _mha_core(q, kv_ref[...].reshape(nk, 2 * d),
                      mask_ref[...].reshape(tq, nk), n_heads)
    attn = jnp.dot(heads.astype(_BF16), wo_ref[...],
                   preferred_element_type=jnp.float32)   # one full-K projection
    y = _layer_norm(x2 + attn + bo, g, beta)
    y = y * pad_ref[...].reshape(tq, 1)
    o_ref[...] = y.reshape(1, tq, d)


def _enc_gate_kernel(s_ref, kv1_ref, kv2_ref, m1_ref, m2_ref, pad_ref,
                     wq_ref, wo_ref, vec_ref, wa_ref, ba_ref, o_ref, *, n_heads):
    """Both visual cross-attentions + alpha gate + fusion + mask_pad, fused.

    Branch weights come pre-stacked on a leading axis of size 2.
    NOTE: the reference PyTorch forward uses fc_alpha1 for BOTH alpha1 and
    alpha2 (fc_alpha2 is unused); reproduced faithfully here.
    """
    _, tq, d = s_ref.shape
    scale = 1.0 / math.sqrt(d // n_heads)

    s2 = s_ref[...].reshape(tq, d)
    s2b = s2.astype(_BF16)
    pad = pad_ref[...].reshape(tq, 1)

    # shared gate term: self_att half of fc_alpha1(cat([self_att, enc_att]))
    gate_s = jnp.dot(s2b, wa_ref[0],
                     preferred_element_type=jnp.float32) + ba_ref[...]

    enc = None
    for i, (kv_ref, msk_ref) in enumerate(((kv1_ref, m1_ref), (kv2_ref, m2_ref))):
        vec = vec_ref[i]                                # (4, d): bq, bo, g, beta
        bq, bo, g, beta = vec[0:1], vec[1:2], vec[2:3], vec[3:4]
        nk = kv_ref.shape[1]

        q = jnp.dot(s2b, wq_ref[i], preferred_element_type=jnp.float32) + bq
        q = q * scale
        heads = _mha_core(q, kv_ref[...].reshape(nk, 2 * d),
                          msk_ref[...].reshape(tq, nk), n_heads)
        attn = jnp.dot(heads.astype(_BF16), wo_ref[i],
                       preferred_element_type=jnp.float32)
        e = _layer_norm(s2 + attn + bo, g, beta) * pad  # enc_att_i * mask_pad

        alpha = _sigmoid(gate_s +
                         jnp.dot(e.astype(_BF16), wa_ref[1],
                                 preferred_element_type=jnp.float32))
        term = e * alpha
        enc = term if enc is None else enc + term

    enc = enc * _INV_SQRT2 * pad
    o_ref[...] = enc.reshape(1, tq, d)


def _pwff_kernel(x_ref, pad_ref, w1_ref, b1_ref, w2_ref, vec_ref, o_ref):
    """Position-wise FFN: LN(x + W2 relu(W1 x + b1) + b2) * mask_pad."""
    _, tq, d = x_ref.shape
    vec = vec_ref[...]                                  # (3, d): b2, g, beta
    b2, g, beta = vec[0:1], vec[1:2], vec[2:3]

    x2 = x_ref[...].reshape(tq, d)
    # TODO(synk): tile d_ff here (fori_loop / extra grid axis) if bundle dumps
    #             show spills at d_ff = 4*d_model on v7x.
    h = jnp.dot(x2.astype(_BF16), w1_ref[...],
                preferred_element_type=jnp.float32) + b1_ref[...]
    h = jnp.maximum(h, 0.0)
    y = jnp.dot(h.astype(_BF16), w2_ref[...],
                preferred_element_type=jnp.float32) + b2
    y = _layer_norm(x2 + y, g, beta) * pad_ref[...].reshape(tq, 1)
    o_ref[...] = y.reshape(1, tq, d)


# ----------------------------------------------------------------------------
# pallas_call plumbing
# ----------------------------------------------------------------------------
@functools.lru_cache(maxsize=None)
def _compiler_params():
    """Generation-aware VMEM cap: ~48 MiB on v7x (64 MiB), ~96 MiB on v5e/v6e."""
    cap = 64 * 1024 * 1024
    try:
        info = pltpu.get_tpu_info()
        cap = int(getattr(info, "vmem_capacity_bytes", cap))
    except Exception:
        pass
    cap = max(cap, 64 * 1024 * 1024)
    limit = min((cap * 3) // 4, 100 * 1024 * 1024)
    return pltpu.CompilerParams(
        # (batch, query-tile) axes: independent -> split across TCs on v7x
        dimension_semantics=("parallel", "parallel"),
        vmem_limit_bytes=limit,
    )


def _tile(n):
    """Pick a row tile size that divides n (>=8 when possible)."""
    for t in (256, 128, 64, 32, 16, 8):
        if n % t == 0:
            return t
    return n


def _row_tile_spec(bshape):     # (1, t, C) blocks, walked over (batch, tile)
    return pl.BlockSpec(bshape, lambda b, i: (b, i, 0))


def _batch_full_spec(bshape):   # (1, L, C) per-batch resident operand
    return pl.BlockSpec(bshape, lambda b, i: (b, 0, 0))


def _w2_spec(shape):            # full 2-D weight / packed vector
    return pl.BlockSpec(shape, lambda b, i: (0, 0))


def _w3_spec(shape):            # full 3-D (stacked branch) weight
    return pl.BlockSpec(shape, lambda b, i: (0, 0, 0))


def project_kv(y, wkv, bkv):
    """y:(B,L,D) f32 -> [K|V]:(B,L,2D) bf16. Hoisted K/V projection."""
    B, L, D = y.shape
    tl = _tile(L)
    return pl.pallas_call(
        _kv_proj_kernel,
        out_shape=jax.ShapeDtypeStruct((B, L, 2 * D), _BF16),
        grid=(B, L // tl),
        in_specs=[
            _row_tile_spec((1, tl, D)),
            _w2_spec((D, 2 * D)),         # wkv (bf16)
            _w2_spec((1, 2 * D)),         # bkv
        ],
        out_specs=_row_tile_spec((1, tl, 2 * D)),
        compiler_params=_compiler_params(),
    )(y, wkv, bkv)


def self_attention(x, kv_x, mask_x, mask_pad, p, n_heads):
    B, N, D = x.shape
    tq = _tile(N)
    kern = functools.partial(_self_att_kernel, n_heads=n_heads)
    return pl.pallas_call(
        kern,
        out_shape=jax.ShapeDtypeStruct((B, N, D), jnp.float32),
        grid=(B, N // tq),
        in_specs=[
            _row_tile_spec((1, tq, D)),       # x tile (queries + residual)
            _batch_full_spec((1, N, 2 * D)),  # precomputed K|V (bf16)
            _row_tile_spec((1, tq, N)),       # mask_x tile (bf16)
            _row_tile_spec((1, tq, 1)),       # mask_pad tile
            _w2_spec((D, D)),                 # wq (bf16)
            _w2_spec((D, D)),                 # wo (bf16)
            _w2_spec((4, D)),                 # [bq, bo, ln_g, ln_b]
        ],
        out_specs=_row_tile_spec((1, tq, D)),
        compiler_params=_compiler_params(),
    )(x, kv_x, mask_x.astype(_BF16), mask_pad, p['wq'], p['wo'], p['vec'])


def enc_attention_gate(s, kv1, kv2, mask_y1, mask_y2, mask_pad,
                       vis, gate, n_heads):
    B, N, D = s.shape
    M = kv1.shape[1]
    tq = _tile(N)
    kern = functools.partial(_enc_gate_kernel, n_heads=n_heads)
    return pl.pallas_call(
        kern,
        out_shape=jax.ShapeDtypeStruct((B, N, D), jnp.float32),
        grid=(B, N // tq),
        in_specs=[
            _row_tile_spec((1, tq, D)),       # self_att tile (queries + gate)
            _batch_full_spec((1, M, 2 * D)),  # K|V of y1 (bf16, precomputed)
            _batch_full_spec((1, M, 2 * D)),  # K|V of y2 (bf16, precomputed)
            _row_tile_spec((1, tq, M)),       # mask_y1 tile (bf16)
            _row_tile_spec((1, tq, M)),       # mask_y2 tile (bf16)
            _row_tile_spec((1, tq, 1)),       # mask_pad tile
            _w3_spec((2, D, D)),              # wq (both branches, bf16)
            _w3_spec((2, D, D)),              # wo
            _w3_spec((2, 4, D)),              # [bq, bo, ln_g, ln_b] per branch
            _w3_spec((2, D, D)),              # wa (fc_alpha1, pre-split [self|enc])
            _w2_spec((1, D)),                 # ba
        ],
        out_specs=_row_tile_spec((1, tq, D)),
        compiler_params=_compiler_params(),
    )(s, kv1, kv2, mask_y1.astype(_BF16), mask_y2.astype(_BF16), mask_pad,
      vis['wq'], vis['wo'], vis['vec'], gate['wa'], gate['ba'])


def pwff(x, mask_pad, p):
    B, N, D = x.shape
    DFF = p['w1'].shape[1]
    tq = _tile(N)
    return pl.pallas_call(
        _pwff_kernel,
        out_shape=jax.ShapeDtypeStruct((B, N, D), jnp.float32),
        grid=(B, N // tq),
        in_specs=[
            _row_tile_spec((1, tq, D)),
            _row_tile_spec((1, tq, 1)),
            _w2_spec((D, DFF)),               # w1 (bf16)
            _w2_spec((1, DFF)),               # b1
            _w2_spec((DFF, D)),               # w2 (bf16)
            _w2_spec((3, D)),                 # [b2, ln_g, ln_b]
        ],
        out_specs=_row_tile_spec((1, tq, D)),
        compiler_params=_compiler_params(),
    )(x, mask_pad, p['w1'], p['b1'], p['w2'], p['vec'])


# ----------------------------------------------------------------------------
# full forward pass
# ----------------------------------------------------------------------------
def parallel_attention_layer(x, y1, y2, mask_pad, mask_x, mask_y1, mask_y2,
                             params, n_heads):
    # K/V projections are hoisted: computed exactly once, stored as bf16.
    kv_x = project_kv(x, params['self_att']['wkv'], params['self_att']['bkv'])
    kv_y1 = project_kv(y1, params['vis_kv1']['wkv'], params['vis_kv1']['bkv'])
    kv_y2 = project_kv(y2, params['vis_kv2']['wkv'], params['vis_kv2']['bkv'])

    s = self_attention(x, kv_x, mask_x, mask_pad, params['self_att'], n_heads)
    enc = enc_attention_gate(s, kv_y1, kv_y2, mask_y1, mask_y2, mask_pad,
                             params['vis_att'], params['fc_alpha1'], n_heads)
    return pwff(enc, mask_pad, params['pwff'])


# ----------------------------------------------------------------------------
# deterministic parameter init (torch-style xavier for weights, zeros biases)
# ----------------------------------------------------------------------------
def _xavier_uniform(key, shape):
    fan_in, fan_out = shape
    bound = math.sqrt(6.0 / (fan_in + fan_out))
    return jax.random.uniform(key, shape, jnp.float32, -bound, bound)


def init_params(key, d_model, d_ff):
    keys = iter(jax.random.split(key, 32))
    zeros = jnp.zeros((d_model,), jnp.float32)
    ones = jnp.ones((d_model,), jnp.float32)

    def mha_params():
        wq = _xavier_uniform(next(keys), (d_model, d_model))
        wk = _xavier_uniform(next(keys), (d_model, d_model))
        wv = _xavier_uniform(next(keys), (d_model, d_model))
        wo = _xavier_uniform(next(keys), (d_model, d_model))
        return {
            'wq': wq.astype(_BF16),
            'wkv': jnp.concatenate([wk, wv], axis=1).astype(_BF16),
            'wo': wo.astype(_BF16),
            'bkv': jnp.zeros((1, 2 * d_model), jnp.float32),
            'vec': jnp.stack([zeros, zeros, ones, zeros]),   # bq, bo, ln_g, ln_b
        }

    self_att = mha_params()
    v1 = mha_params()
    v2 = mha_params()
    wa = _xavier_uniform(next(keys), (2 * d_model, d_model))
    return {
        'self_att': self_att,
        # per-branch K/V projection weights (used only by the projection kernel)
        'vis_kv1': {'wkv': v1['wkv'], 'bkv': v1['bkv']},
        'vis_kv2': {'wkv': v2['wkv'], 'bkv': v2['bkv']},
        # branch weights PRE-stacked at init (no per-forward jnp.stack traffic)
        'vis_att': {
            'wq': jnp.stack([v1['wq'], v2['wq']]),
            'wo': jnp.stack([v1['wo'], v2['wo']]),
            'vec': jnp.stack([v1['vec'], v2['vec']]),
        },
        'fc_alpha1': {
            'wa': jnp.stack([wa[:d_model], wa[d_model:]]).astype(_BF16),
            'ba': jnp.zeros((1, d_model), jnp.float32),
        },
        'pwff': {
            'w1': _xavier_uniform(next(keys), (d_model, d_ff)).astype(_BF16),
            'b1': jnp.zeros((1, d_ff), jnp.float32),
            'w2': _xavier_uniform(next(keys), (d_ff, d_model)).astype(_BF16),
            'vec': jnp.stack([zeros, ones, zeros]),           # b2, ln_g, ln_b
        },
    }


# ----------------------------------------------------------------------------
if __name__ == "__main__":
    # Small shapes, chosen lane-dense: D, DFF multiples of 128 and
    # d_k = D // H = 128 (full vreg lane width per head).
    B, N, M, D, H, DFF = 2, 8, 16, 256, 2, 512
    assert D % H == 0 and (D // H) % 128 == 0

    key = jax.random.PRNGKey(0)
    kx, ky1, ky2, kp = jax.random.split(key, 4)

    x = jax.random.normal(kx, (B, N, D), jnp.float32)     # decoder tokens
    y1 = jax.random.normal(ky1, (B, M, D), jnp.float32)   # visual features #1
    y2 = jax.random.normal(ky2, (B, M, D), jnp.float32)   # visual features #2

    # causal self-attention mask (1.0 = masked), stored bf16 to halve DMA bytes
    causal = jnp.triu(jnp.ones((N, N), jnp.float32), k=1)
    mask_x = jnp.broadcast_to(causal, (B, N, N)).astype(jnp.bfloat16)
    # pad mask: last 2 tokens of batch 1 are padding
    mask_pad = jnp.ones((B, N, 1), jnp.float32).at[1, 6:, 0].set(0.0)
    # visual key masks: last 2 memory slots of batch 1 are masked
    mask_y = (jnp.zeros((B, N, M), jnp.float32).at[1, :, 14:].set(1.0)
              ).astype(jnp.bfloat16)

    params = init_params(kp, D, DFF)

    fwd = jax.jit(functools.partial(parallel_attention_layer, n_heads=H))
    out = fwd(x, y1, y2, mask_pad, mask_x, mask_y, mask_y, params)
    out = jax.block_until_ready(out)

    assert out.shape == (B, N, D), out.shape
    assert bool(jnp.all(jnp.isfinite(out)))
    print("KERNEL_OK")
</pallas_src>

<mosaic_0001>
module attributes {stable_mosaic.version = 11 : i64} {
  func.func @_kv_proj_kernel(%arg0: i32, %arg1: i32, %arg2: memref<1x8x256xf32, #tpu.memory_space<vmem>>, %arg3: memref<256x512xbf16, #tpu.memory_space<vmem>>, %arg4: memref<1x512xf32, #tpu.memory_space<vmem>>, %arg5: memref<1x8x512xbf16, #tpu.memory_space<vmem>>) attributes {dimension_semantics = [#tpu.dimension_semantics<parallel>, #tpu.dimension_semantics<parallel>], iteration_bounds = array<i64: 2, 1>, scalar_prefetch = 0 : i64, scratch_operands = 0 : i64, tpu.core_type = #tpu.core_type<tc>, window_params = [{transform_indices = @transform_0, window_bounds = array<i64: 1, 8, 256>}, {pipeline_mode = #tpu.pipeline_mode<synchronous>, transform_indices = @transform_1, window_bounds = array<i64: 256, 512>}, {pipeline_mode = #tpu.pipeline_mode<synchronous>, transform_indices = @transform_2, window_bounds = array<i64: 1, 512>}, {transform_indices = @transform_3, window_bounds = array<i64: 1, 8, 512>}]} {
    %c0 = arith.constant 0 : index
    %c0_0 = arith.constant 0 : index
    %c0_1 = arith.constant 0 : index
    %0 = vector.load %arg2[%c0, %c0_0, %c0_1] : memref<1x8x256xf32, #tpu.memory_space<vmem>>, vector<1x8x256xf32>
    %1 = vector.shape_cast %0 : vector<1x8x256xf32> to vector<8x256xf32>
    %2 = arith.truncf %1 : vector<8x256xf32> to vector<8x256xbf16>
    %c0_2 = arith.constant 0 : index
    %c0_3 = arith.constant 0 : index
    %3 = vector.load %arg3[%c0_2, %c0_3] : memref<256x512xbf16, #tpu.memory_space<vmem>>, vector<256x512xbf16>
    %cst = arith.constant dense<0.000000e+00> : vector<8x512xf32>
    %4 = tpu.matmul %2, %3, %cst {dimension_numbers = #tpu.dot_dimension_numbers<[1], [0], [0], [1], [0, 0, 1, 1], [], []>} : vector<8x256xbf16>, vector<256x512xbf16>, vector<8x512xf32> -> vector<8x512xf32>
    %c0_4 = arith.constant 0 : index
    %c0_5 = arith.constant 0 : index
    %5 = vector.load %arg4[%c0_4, %c0_5] : memref<1x512xf32, #tpu.memory_space<vmem>>, vector<1x512xf32>
    %6 = vector.broadcast %5 : vector<1x512xf32> to vector<8x512xf32>
    %7 = arith.addf %4, %6 : vector<8x512xf32>
    %8 = arith.truncf %7 : vector<8x512xf32> to vector<8x512xbf16>
    %9 = vector.shape_cast %8 : vector<8x512xbf16> to vector<1x8x512xbf16>
    %c0_6 = arith.constant 0 : index
    %c0_7 = arith.constant 0 : index
    %c0_8 = arith.constant 0 : index
    %10 = vector.load %arg5[%c0_6, %c0_7, %c0_8] : memref<1x8x512xbf16, #tpu.memory_space<vmem>>, vector<1x8x512xbf16>
    tpu.vector_store %arg5[%c0_6, %c0_7, %c0_8], %9 {strides = array<i32>} : memref<1x8x512xbf16, #tpu.memory_space<vmem>>, vector<1x8x512xbf16>,
    return
  }
  func.func @transform_0(%arg0: i32, %arg1: i32) -> (i32, i32, i32) {
    %c0_i32 = arith.constant 0 : i32
    %c0_i32_0 = arith.constant 0 : i32
    return %arg0, %arg1, %c0_i32 : i32, i32, i32
  }
  func.func @transform_1(%arg0: i32, %arg1: i32) -> (i32, i32) {
    %c0_i32 = arith.constant 0 : i32
    %c0_i32_0 = arith.constant 0 : i32
    %c0_i32_1 = arith.constant 0 : i32
    return %c0_i32, %c0_i32_0 : i32, i32
  }
  func.func @transform_2(%arg0: i32, %arg1: i32) -> (i32, i32) {
    %c0_i32 = arith.constant 0 : i32
    %c0_i32_0 = arith.constant 0 : i32
    %c0_i32_1 = arith.constant 0 : i32
    return %c0_i32, %c0_i32_0 : i32, i32
  }
  func.func @transform_3(%arg0: i32, %arg1: i32) -> (i32, i32, i32) {
    %c0_i32 = arith.constant 0 : i32
    %c0_i32_0 = arith.constant 0 : i32
    return %arg0, %arg1, %c0_i32 : i32, i32, i32
  }
}

module attributes {stable_mosaic.version = 11 : i64} {
  func.func @_enc_gate_kernel(%arg0: i32, %arg1: i32, %arg2: memref<1x8x256xf32, #tpu.memory_space<vmem>>, %arg3: memref<1x16x512xbf16, #tpu.memory_space<vmem>>, %arg4: memref<1x16x512xbf16, #tpu.memory_space<vmem>>, %arg5: memref<1x8x16xbf16, #tpu.memory_space<vmem>>, %arg6: memref<1x8x16xbf16, #tpu.memory_space<vmem>>, %arg7: memref<1x8x1xf32, #tpu.memory_space<vmem>>, %arg8: memref<2x256x256xbf16, #tpu.memory_space<vmem>>, %arg9: memref<2x256x256xbf16, #tpu.memory_space<vmem>>, %arg10: memref<2x4x256xf32, #tpu.memory_space<vmem>>, %arg11: memref<2x256x256xbf16, #tpu.memory_space<vmem>>, %arg12: memref<1x256xf32, #tpu.memory_space<vmem>>, %arg13: memref<1x8x256xf32, #tpu.memory_space<vmem>>) attributes {dimension_semantics = [#tpu.dimension_semantics<parallel>, #tpu.dimension_semantics<parallel>], iteration_bounds = array<i64: 2, 1>, scalar_prefetch = 0 : i64, scratch_operands = 0 : i64, tpu.core_type = #tpu.core_type<tc>, window_params = [{transform_indices = @transform_0, window_bounds = array<i64: 1, 8, 256>}, {transform_indices = @transform_1, window_bounds = array<i64: 1, 16, 512>}, {transform_indices = @transform_2, window_bounds = array<i64: 1, 16, 512>}, {transform_indices = @transform_3, window_bounds = array<i64: 1, 8, 16>}, {transform_indices = @transform_4, window_bounds = array<i64: 1, 8, 16>}, {transform_indices = @transform_5, window_bounds = array<i64: 1, 8, 1>}, {pipeline_mode = #tpu.pipeline_mode<synchronous>, transform_indices = @transform_6, window_bounds = array<i64: 2, 256, 256>}, {pipeline_mode = #tpu.pipeline_mode<synchronous>, transform_indices = @transform_7, window_bounds = array<i64: 2, 256, 256>}, {pipeline_mode = #tpu.pipeline_mode<synchronous>, transform_indices = @transform_8, window_bounds = array<i64: 2, 4, 256>}, {pipeline_mode = #tpu.pipeline_mode<synchronous>, transform_indices = @transform_9, window_bounds = array<i64: 2, 256, 256>}, {pipeline_mode = #tpu.pipeline_mode<synchronous>, transform_indices = @transform_10, window_bounds = array<i64: 1, 256>}, {transform_indices = @transform_11, window_bounds = array<i64: 1, 8, 256>}]} {
    %c0 = arith.constant 0 : index
    %c0_0 = arith.constant 0 : index
    %c0_1 = arith.constant 0 : index
    %0 = vector.load %arg2[%c0, %c0_0, %c0_1] : memref<1x8x256xf32, #tpu.memory_space<vmem>>, vector<1x8x256xf32>
    %1 = vector.shape_cast %0 : vector<1x8x256xf32> to vector<8x256xf32>
    %2 = arith.truncf %1 : vector<8x256xf32> to vector<8x256xbf16>
    %c0_2 = arith.constant 0 : index
    %c0_3 = arith.constant 0 : index
    %c0_4 = arith.constant 0 : index
    %3 = vector.load %arg7[%c0_2, %c0_3, %c0_4] : memref<1x8x1xf32, #tpu.memory_space<vmem>>, vector<1x8x1xf32>
    %4 = vector.shape_cast %3 : vector<1x8x1xf32> to vector<8x1xf32>
    %c0_5 = arith.constant 0 : index
    %c0_6 = arith.constant 0 : index
    %c0_7 = arith.constant 0 : index
    %5 = vector.load %arg11[%c0_5, %c0_6, %c0_7] : memref<2x256x256xbf16, #tpu.memory_space<vmem>>, vector<1x256x256xbf16>
    %6 = vector.shape_cast %5 : vector<1x256x256xbf16> to vector<256x256xbf16>
    %cst = arith.constant dense<0.000000e+00> : vector<8x256xf32>
    %7 = tpu.matmul %2, %6, %cst {dimension_numbers = #tpu.dot_dimension_numbers<[1], [0], [0], [1], [0, 0, 1, 1], [], []>} : vector<8x256xbf16>, vector<256x256xbf16>, vector<8x256xf32> -> vector<8x256xf32>
    %c0_8 = arith.constant 0 : index
    %c0_9 = arith.constant 0 : index
    %8 = vector.load %arg12[%c0_8, %c0_9] : memref<1x256xf32, #tpu.memory_space<vmem>>, vector<1x256xf32>
    %9 = vector.broadcast %8 : vector<1x256xf32> to vector<8x256xf32>
    %10 = arith.addf %7, %9 : vector<8x256xf32>
    %c0_10 = arith.constant 0 : index
    %c0_11 = arith.constant 0 : index
    %c0_12 = arith.constant 0 : index
    %11 = vector.load %arg10[%c0_10, %c0_11, %c0_12] : memref<2x4x256xf32, #tpu.memory_space<vmem>>, vector<1x4x256xf32>
    %12 = vector.shape_cast %11 : vector<1x4x256xf32> to vector<4x256xf32>
    %13 = vector.extract_strided_slice %12 {offsets = [0, 0], sizes = [1, 256], strides = [1, 1]} : vector<4x256xf32> to vector<1x256xf32>
    %14 = vector.extract_strided_slice %12 {offsets = [1, 0], sizes = [1, 256], strides = [1, 1]} : vector<4x256xf32> to vector<1x256xf32>
    %15 = vector.extract_strided_slice %12 {offsets = [2, 0], sizes = [1, 256], strides = [1, 1]} : vector<4x256xf32> to vector<1x256xf32>
    %16 = vector.extract_strided_slice %12 {offsets = [3, 0], sizes = [1, 256], strides = [1, 1]} : vector<4x256xf32> to vector<1x256xf32>
    %c0_13 = arith.constant 0 : index
    %c0_14 = arith.constant 0 : index
    %c0_15 = arith.constant 0 : index
    %17 = vector.load %arg8[%c0_13, %c0_14, %c0_15] : memref<2x256x256xbf16, #tpu.memory_space<vmem>>, vector<1x256x256xbf16>
    %18 = vector.shape_cast %17 : vector<1x256x256xbf16> to vector<256x256xbf16>
    %cst_16 = arith.constant dense<0.000000e+00> : vector<8x256xf32>
    %19 = tpu.matmul %2, %18, %cst_16 {dimension_numbers = #tpu.dot_dimension_numbers<[1], [0], [0], [1], [0, 0, 1, 1], [], []>} : vector<8x256xbf16>, vector<256x256xbf16>, vector<8x256xf32> -> vector<8x256xf32>
    %20 = vector.broadcast %13 : vector<1x256xf32> to vector<8x256xf32>
    %21 = arith.addf %19, %20 : vector<8x256xf32>
    %cst_17 = arith.constant 0.0883883461 : f32
    %22 = vector.broadcast %cst_17 : f32 to vector<8x256xf32>
    %23 = arith.mulf %21, %22 : vector<8x256xf32>
    %c0_18 = arith.constant 0 : index
    %c0_19 = arith.constant 0 : index
    %c0_20 = arith.constant 0 : index
    %24 = vector.load %arg3[%c0_18, %c0_19, %c0_20] : memref<1x16x512xbf16, #tpu.memory_space<vmem>>, vector<1x16x512xbf16>
    %25 = vector.shape_cast %24 : vector<1x16x512xbf16> to vector<16x512xbf16>
    %c0_21 = arith.constant 0 : index
    %c0_22 = arith.constant 0 : index
    %c0_23 = arith.constant 0 : index
    %26 = vector.load %arg5[%c0_21, %c0_22, %c0_23] : memref<1x8x16xbf16, #tpu.memory_space<vmem>>, vector<1x8x16xbf16>
    %27 = vector.shape_cast %26 : vector<1x8x16xbf16> to vector<8x16xbf16>
    %cst_24 = arith.constant 0.000000e+00 : bf16
    %28 = vector.broadcast %cst_24 : bf16 to vector<8x16xbf16>
    %29 = arith.cmpf one, %27, %28 : vector<8x16xbf16>
    %30 = arith.truncf %23 : vector<8x256xf32> to vector<8x256xbf16>
    %31 = vector.extract_strided_slice %30 {offsets = [0, 0], sizes = [8, 128], strides = [1, 1]} : vector<8x256xbf16> to vector<8x128xbf16>
    %32 = vector.extract_strided_slice %25 {offsets = [0, 0], sizes = [16, 128], strides = [1, 1]} : vector<16x512xbf16> to vector<16x128xbf16>
    "tpu.trace_start"() <{level = 10 : i32, message = "qd,kd->qk"}> : () -> ()
    %cst_25 = arith.constant dense<0.000000e+00> : vector<8x16xf32>
    %33 = tpu.matmul %31, %32, %cst_25 {dimension_numbers = #tpu.dot_dimension_numbers<[1], [1], [0], [0], [0, 0, 1, 0], [], []>} : vector<8x128xbf16>, vector<16x128xbf16>, vector<8x16xf32> -> vector<8x16xf32>
    %cst_26 = arith.constant -1.000000e+30 : f32
    "tpu.trace_stop"() : () -> ()
    %34 = vector.broadcast %cst_26 : f32 to vector<8x16xf32>
    %35 = arith.select %29, %34, %33 : vector<8x16xi1>, vector<8x16xf32>
    %cst_27 = arith.constant dense<0xFF800000> : vector<8xf32>
    %36 = vector.multi_reduction <maximumf>, %35, %cst_27 [1] : vector<8x16xf32> to vector<8xf32>
    %37 = vector.shape_cast %36 : vector<8xf32> to vector<8x1xf32>
    %38 = vector.broadcast %37 : vector<8x1xf32> to vector<8x16xf32>
    %39 = arith.subf %35, %38 : vector<8x16xf32>
    %40 = math.exp %39 : vector<8x16xf32>
    %cst_28 = arith.constant dense<0.000000e+00> : vector<8xf32>
    %41 = vector.multi_reduction <add>, %40, %cst_28 [1] : vector<8x16xf32> to vector<8xf32>
    %42 = vector.shape_cast %41 : vector<8xf32> to vector<8x1xf32>
    %43 = arith.truncf %40 : vector<8x16xf32> to vector<8x16xbf16>
    %44 = vector.extract_strided_slice %25 {offsets = [0, 256], sizes = [16, 128], strides = [1, 1]} : vector<16x512xbf16> to vector<16x128xbf16>
    %cst_29 = arith.constant dense<0.000000e+00> : vector<8x128xf32>
    %45 = tpu.matmul %43, %44, %cst_29 {dimension_numbers = #tpu.dot_dimension_numbers<[1], [0], [0], [1], [0, 0, 1, 1], [], []>} : vector<8x16xbf16>, vector<16x128xbf16>, vector<8x128xf32> -> vector<8x128xf32>
    %cst_30 = arith.constant 1.000000e+00 : f32
    %46 = vector.broadcast %cst_30 : f32 to vector<8x1xf32>
    %47 = arith.divf %46, %42 : vector<8x1xf32>
    %48 = vector.broadcast %47 : vector<8x1xf32> to vector<8x128xf32>
    %49 = arith.mulf %45, %48 : vector<8x128xf32>
    %50 = vector.extract_strided_slice %30 {offsets = [0, 128], sizes = [8, 128], strides = [1, 1]} : vector<8x256xbf16> to vector<8x128xbf16>
    %51 = vector.extract_strided_slice %25 {offsets = [0, 128], sizes = [16, 128], strides = [1, 1]} : vector<16x512xbf16> to vector<16x128xbf16>
    "tpu.trace_start"() <{level = 10 : i32, message = "qd,kd->qk"}> : () -> ()
    %cst_31 = arith.constant dense<0.000000e+00> : vector<8x16xf32>
    %52 = tpu.matmul %50, %51, %cst_31 {dimension_numbers = #tpu.dot_dimension_numbers<[1], [1], [0], [0], [0, 0, 1, 0], [], []>} : vector<8x128xbf16>, vector<16x128xbf16>, vector<8x16xf32> -> vector<8x16xf32>
    %cst_32 = arith.constant -1.000000e+30 : f32
    "tpu.trace_stop"() : () -> ()
    %53 = vector.broadcast %cst_32 : f32 to vector<8x16xf32>
    %54 = arith.select %29, %53, %52 : vector<8x16xi1>, vector<8x16xf32>
    %cst_33 = arith.constant dense<0xFF800000> : vector<8xf32>
    %55 = vector.multi_reduction <maximumf>, %54, %cst_33 [1] : vector<8x16xf32> to vector<8xf32>
    %56 = vector.shape_cast %55 : vector<8xf32> to vector<8x1xf32>
    %57 = vector.broadcast %56 : vector<8x1xf32> to vector<8x16xf32>
    %58 = arith.subf %54, %57 : vector<8x16xf32>
    %59 = math.exp %58 : vector<8x16xf32>
    %cst_34 = arith.constant dense<0.000000e+00> : vector<8xf32>
    %60 = vector.multi_reduction <add>, %59, %cst_34 [1] : vector<8x16xf32> to vector<8xf32>
    %61 = vector.shape_cast %60 : vector<8xf32> to vector<8x1xf32>
    %62 = arith.truncf %59 : vector<8x16xf32> to vector<8x16xbf16>
    %63 = vector.extract_strided_slice %25 {offsets = [0, 384], sizes = [16, 128], strides = [1, 1]} : vector<16x512xbf16> to vector<16x128xbf16>
    %cst_35 = arith.constant dense<0.000000e+00> : vector<8x128xf32>
    %64 = tpu.matmul %62, %63, %cst_35 {dimension_numbers = #tpu.dot_dimension_numbers<[1], [0], [0], [1], [0, 0, 1, 1], [], []>} : vector<8x16xbf16>, vector<16x128xbf16>, vector<8x128xf32> -> vector<8x128xf32>
    %cst_36 = arith.constant 1.000000e+00 : f32
    %65 = vector.broadcast %cst_36 : f32 to vector<8x1xf32>
    %66 = arith.divf %65, %61 : vector<8x1xf32>
    %67 = vector.broadcast %66 : vector<8x1xf32> to vector<8x128xf32>
    %68 = arith.mulf %64, %67 : vector<8x128xf32>
    %69 = tpu.concatenate %49, %68 in 1 : vector<8x128xf32>, vector<8x128xf32> -> vector<8x256xf32>
    %70 = arith.truncf %69 : vector<8x256xf32> to vector<8x256xbf16>
    %c0_37 = arith.constant 0 : index
    %c0_38 = arith.constant 0 : index
    %c0_39 = arith.constant 0 : index
    %71 = vector.load %arg9[%c0_37, %c0_38, %c0_39] : memref<2x256x256xbf16, #tpu.memory_space<vmem>>, vector<1x256x256xbf16>
    %72 = vector.shape_cast %71 : vector<1x256x256xbf16> to vector<256x256xbf16>
    %cst_40 = arith.constant dense<0.000000e+00> : vector<8x256xf32>
    %73 = tpu.matmul %70, %72, %cst_40 {dimension_numbers = #tpu.dot_dimension_numbers<[1], [0], [0], [1], [0, 0, 1, 1], [], []>} : vector<8x256xbf16>, vector<256x256xbf16>, vector<8x256xf32> -> vector<8x256xf32>
    %74 = arith.addf %1, %73 : vector<8x256xf32>
    %75 = vector.broadcast %14 : vector<1x256xf32> to vector<8x256xf32>
    %76 = arith.addf %74, %75 : vector<8x256xf32>
    %cst_41 = arith.constant dense<0.000000e+00> : vector<8xf32>
    %77 = vector.multi_reduction <add>, %76, %cst_41 [1] : vector<8x256xf32> to vector<8xf32>
    %78 = vector.shape_cast %77 : vector<8xf32> to vector<8x1xf32>
    %cst_42 = arith.constant 2.560000e+02 : f32
    %79 = vector.broadcast %cst_42 : f32 to vector<8x1xf32>
    %80 = arith.divf %78, %79 : vector<8x1xf32>
    %81 = vector.broadcast %80 : vector<8x1xf32> to vector<8x256xf32>
    %82 = arith.subf %76, %81 : vector<8x256xf32>
    %83 = arith.mulf %82, %82 : vector<8x256xf32>
    %cst_43 = arith.constant dense<0.000000e+00> : vector<8xf32>
    %84 = vector.multi_reduction <add>, %83, %cst_43 [1] : vector<8x256xf32> to vector<8xf32>
    %85 = vector.shape_cast %84 : vector<8xf32> to vector<8x1xf32>
    %cst_44 = arith.constant 2.560000e+02 : f32
    %86 = vector.broadcast %cst_44 : f32 to vector<8x1xf32>
    %87 = arith.divf %85, %86 : vector<8x1xf32>
    %88 = vector.broadcast %80 : vector<8x1xf32> to vector<8x256xf32>
    %89 = arith.subf %76, %88 : vector<8x256xf32>
    %cst_45 = arith.constant 9.99999974E-6 : f32
    %90 = vector.broadcast %cst_45 : f32 to vector<8x1xf32>
    %91 = arith.addf %87, %90 : vector<8x1xf32>
    %92 = math.rsqrt %91 : vector<8x1xf32>
    %93 = vector.broadcast %92 : vector<8x1xf32> to vector<8x256xf32>
    %94 = arith.mulf %89, %93 : vector<8x256xf32>
    %95 = vector.broadcast %15 : vector<1x256xf32> to vector<8x256xf32>
    %96 = arith.mulf %94, %95 : vector<8x256xf32>
    %97 = vector.broadcast %16 : vector<1x256xf32> to vector<8x256xf32>
    %98 = arith.addf %96, %97 : vector<8x256xf32>
    %99 = vector.broadcast %4 : vector<8x1xf32> to vector<8x256xf32>
    %100 = arith.mulf %98, %99 : vector<8x256xf32>
    %101 = arith.truncf %100 : vector<8x256xf32> to vector<8x256xbf16>
    %c1 = arith.constant 1 : index
    %c0_46 = arith.constant 0 : index
    %c0_47 = arith.constant 0 : index
    %102 = vector.load %arg11[%c1, %c0_46, %c0_47] : memref<2x256x256xbf16, #tpu.memory_space<vmem>>, vector<1x256x256xbf16>
    %103 = vector.shape_cast %102 : vector<1x256x256xbf16> to vector<256x256xbf16>
    %cst_48 = arith.constant dense<0.000000e+00> : vector<8x256xf32>
    %104 = tpu.matmul %101, %103, %cst_48 {dimension_numbers = #tpu.dot_dimension_numbers<[1], [0], [0], [1], [0, 0, 1, 1], [], []>} : vector<8x256xbf16>, vector<256x256xbf16>, vector<8x256xf32> -> vector<8x256xf32>
    %105 = arith.addf %10, %104 : vector<8x256xf32>
    %cst_49 = arith.constant 0.000000e+00 : f32
    %106 = vector.broadcast %cst_49 : f32 to vector<8x256xf32>
    %107 = arith.subf %106, %105 : vector<8x256xf32>
    %108 = math.exp %107 : vector<8x256xf32>
    %cst_50 = arith.constant 1.000000e+00 : f32
    %109 = vector.broadcast %cst_50 : f32 to vector<8x256xf32>
    %110 = arith.addf %109, %108 : vector<8x256xf32>
    %cst_51 = arith.constant 1.000000e+00 : f32
    %111 = vector.broadcast %cst_51 : f32 to vector<8x256xf32>
    %112 = arith.divf %111, %110 : vector<8x256xf32>
    %113 = arith.mulf %100, %112 : vector<8x256xf32>
    %c1_52 = arith.constant 1 : index
    %c0_53 = arith.constant 0 : index
    %c0_54 = arith.constant 0 : index
    %114 = vector.load %arg10[%c1_52, %c0_53, %c0_54] : memref<2x4x256xf32, #tpu.memory_space<vmem>>, vector<1x4x256xf32>
    %115 = vector.shape_cast %114 : vector<1x4x256xf32> to vector<4x256xf32>
    %116 = vector.extract_strided_slice %115 {offsets = [0, 0], sizes = [1, 256], strides = [1, 1]} : vector<4x256xf32> to vector<1x256xf32>
    %117 = vector.extract_strided_slice %115 {offsets = [1, 0], sizes = [1, 256], strides = [1, 1]} : vector<4x256xf32> to vector<1x256xf32>
    %118 = vector.extract_strided_slice %115 {offsets = [2, 0], sizes = [1, 256], strides = [1, 1]} : vector<4x256xf32> to vector<1x256xf32>
    %119 = vector.extract_strided_slice %115 {offsets = [3, 0], sizes = [1, 256], strides = [1, 1]} : vector<4x256xf32> to vector<1x256xf32>
    %c1_55 = arith.constant 1 : index
    %c0_56 = arith.constant 0 : index
    %c0_57 = arith.constant 0 : index
    %120 = vector.load %arg8[%c1_55, %c0_56, %c0_57] : memref<2x256x256xbf16, #tpu.memory_space<vmem>>, vector<1x256x256xbf16>
    %121 = vector.shape_cast %120 : vector<1x256x256xbf16> to vector<256x256xbf16>
    %cst_58 = arith.constant dense<0.000000e+00> : vector<8x256xf32>
    %122 = tpu.matmul %2, %121, %cst_58 {dimension_numbers = #tpu.dot_dimension_numbers<[1], [0], [0], [1], [0, 0, 1, 1], [], []>} : vector<8x256xbf16>, vector<256x256xbf16>, vector<8x256xf32> -> vector<8x256xf32>
    %123 = vector.broadcast %116 : vector<1x256xf32> to vector<8x256xf32>
    %124 = arith.addf %122, %123 : vector<8x256xf32>
    %cst_59 = arith.constant 0.0883883461 : f32
    %125 = vector.broadcast %cst_59 : f32 to vector<8x256xf32>
    %126 = arith.mulf %124, %125 : vector<8x256xf32>
    %c0_60 = arith.constant 0 : index
    %c0_61 = arith.constant 0 : index
    %c0_62 = arith.constant 0 : index
    %127 = vector.load %arg4[%c0_60, %c0_61, %c0_62] : memref<1x16x512xbf16, #tpu.memory_space<vmem>>, vector<1x16x512xbf16>
    %128 = vector.shape_cast %127 : vector<1x16x512xbf16> to vector<16x512xbf16>
    %c0_63 = arith.constant 0 : index
    %c0_64 = arith.constant 0 : index
    %c0_65 = arith.constant 0 : index
    %129 = vector.load %arg6[%c0_63, %c0_64, %c0_65] : memref<1x8x16xbf16, #tpu.memory_space<vmem>>, vector<1x8x16xbf16>
    %130 = vector.shape_cast %129 : vector<1x8x16xbf16> to vector<8x16xbf16>
    %cst_66 = arith.constant 0.000000e+00 : bf16
    %131 = vector.broadcast %cst_66 : bf16 to vector<8x16xbf16>
    %132 = arith.cmpf one, %130, %131 : vector<8x16xbf16>
    %133 = arith.truncf %126 : vector<8x256xf32> to vector<8x256xbf16>
    %134 = vector.extract_strided_slice %133 {offsets = [0, 0], sizes = [8, 128], strides = [1, 1]} : vector<8x256xbf16> to vector<8x128xbf16>
    %135 = vector.extract_strided_slice %128 {offsets = [0, 0], sizes = [16, 128], strides = [1, 1]} : vector<16x512xbf16> to vector<16x128xbf16>
    "tpu.trace_start"() <{level = 10 : i32, message = "qd,kd->qk"}> : () -> ()
    %cst_67 = arith.constant dense<0.000000e+00> : vector<8x16xf32>
    %136 = tpu.matmul %134, %135, %cst_67 {dimension_numbers = #tpu.dot_dimension_numbers<[1], [1], [0], [0], [0, 0, 1, 0], [], []>} : vector<8x128xbf16>, vector<16x128xbf16>, vector<8x16xf32> -> vector<8x16xf32>
    %cst_68 = arith.constant -1.000000e+30 : f32
    "tpu.trace_stop"() : () -> ()
    %137 = vector.broadcast %cst_68 : f32 to vector<8x16xf32>
    %138 = arith.select %132, %137, %136 : vector<8x16xi1>, vector<8x16xf32>
    %cst_69 = arith.constant dense<0xFF800000> : vector<8xf32>
    %139 = vector.multi_reduction <maximumf>, %138, %cst_69 [1] : vector<8x16xf32> to vector<8xf32>
    %140 = vector.shape_cast %139 : vector<8xf32> to vector<8x1xf32>
    %141 = vector.broadcast %140 : vector<8x1xf32> to vector<8x16xf32>
    %142 = arith.subf %138, %141 : vector<8x16xf32>
    %143 = math.exp %142 : vector<8x16xf32>
    %cst_70 = arith.constant dense<0.000000e+00> : vector<8xf32>
    %144 = vector.multi_reduction <add>, %143, %cst_70 [1] : vector<8x16xf32> to vector<8xf32>
    %145 = vector.shape_cast %144 : vector<8xf32> to vector<8x1xf32>
    %146 = arith.truncf %143 : vector<8x16xf32> to vector<8x16xbf16>
    %147 = vector.extract_strided_slice %128 {offsets = [0, 256], sizes = [16, 128], strides = [1, 1]} : vector<16x512xbf16> to vector<16x128xbf16>
    %cst_71 = arith.constant dense<0.000000e+00> : vector<8x128xf32>
    %148 = tpu.matmul %146, %147, %cst_71 {dimension_numbers = #tpu.dot_dimension_numbers<[1], [0], [0], [1], [0, 0, 1, 1], [], []>} : vector<8x16xbf16>, vector<16x128xbf16>, vector<8x128xf32> -> vector<8x128xf32>
    %cst_72 = arith.constant 1.000000e+00 : f32
    %149 = vector.broadcast %cst_72 : f32 to vector<8x1xf32>
    %150 = arith.divf %149, %145 : vector<8x1xf32>
    %151 = vector.broadcast %150 : vector<8x1xf32> to vector<8x128xf32>
    %152 = arith.mulf %148, %151 : vector<8x128xf32>
    %153 = vector.extract_strided_slice %133 {offsets = [0, 128], sizes = [8, 128], strides = [1, 1]} : vector<8x256xbf16> to vector<8x128xbf16>
    %154 = vector.extract_strided_slice %128 {offsets = [0, 128], sizes = [16, 128], strides = [1, 1]} : vector<16x512xbf16> to vector<16x128xbf16>
    "tpu.trace_start"() <{level = 10 : i32, message = "qd,kd->qk"}> : () -> ()
    %cst_73 = arith.constant dense<0.000000e+00> : vector<8x16xf32>
    %155 = tpu.matmul %153, %154, %cst_73 {dimension_numbers = #tpu.dot_dimension_numbers<[1], [1], [0], [0], [0, 0, 1, 0], [], []>} : vector<8x128xbf16>, vector<16x128xbf16>, vector<8x16xf32> -> vector<8x16xf32>
    %cst_74 = arith.constant -1.000000e+30 : f32
    "tpu.trace_stop"() : () -> ()
    %156 = vector.broadcast %cst_74 : f32 to vector<8x16xf32>
    %157 = arith.select %132, %156, %155 : vector<8x16xi1>, vector<8x16xf32>
    %cst_75 = arith.constant dense<0xFF800000> : vector<8xf32>
    %158 = vector.multi_reduction <maximumf>, %157, %cst_75 [1] : vector<8x16xf32> to vector<8xf32>
    %159 = vector.shape_cast %158 : vector<8xf32> to vector<8x1xf32>
    %160 = vector.broadcast %159 : vector<8x1xf32> to vector<8x16xf32>
    %161 = arith.subf %157, %160 : vector<8x16xf32>
    %162 = math.exp %161 : vector<8x16xf32>
    %cst_76 = arith.constant dense<0.000000e+00> : vector<8xf32>
    %163 = vector.multi_reduction <add>, %162, %cst_76 [1] : vector<8x16xf32> to vector<8xf32>
    %164 = vector.shape_cast %163 : vector<8xf32> to vector<8x1xf32>
    %165 = arith.truncf %162 : vector<8x16xf32> to vector<8x16xbf16>
    %166 = vector.extract_strided_slice %128 {offsets = [0, 384], sizes = [16, 128], strides = [1, 1]} : vector<16x512xbf16> to vector<16x128xbf16>
    %cst_77 = arith.constant dense<0.000000e+00> : vector<8x128xf32>
    %167 = tpu.matmul %165, %166, %cst_77 {dimension_numbers = #tpu.dot_dimension_numbers<[1], [0], [0], [1], [0, 0, 1, 1], [], []>} : vector<8x16xbf16>, vector<16x128xbf16>, vector<8x128xf32> -> vector<8x128xf32>
    %cst_78 = arith.constant 1.000000e+00 : f32
    %168 = vector.broadcast %cst_78 : f32 to vector<8x1xf32>
    %169 = arith.divf %168, %164 : vector<8x1xf32>
    %170 = vector.broadcast %169 : vector<8x1xf32> to vector<8x128xf32>
    %171 = arith.mulf %167, %170 : vector<8x128xf32>
    %172 = tpu.concatenate %152, %171 in 1 : vector<8x128xf32>, vector<8x128xf32> -> vector<8x256xf32>
    %173 = arith.truncf %172 : vector<8x256xf32> to vector<8x256xbf16>
    %c1_79 = arith.constant 1 : index
    %c0_80 = arith.constant 0 : index
    %c0_81 = arith.constant 0 : index
    %174 = vector.load %arg9[%c1_79, %c0_80, %c0_81] : memref<2x256x256xbf16, #tpu.memory_space<vmem>>, vector<1x256x256xbf16>
    %175 = vector.shape_cast %174 : vector<1x256x256xbf16> to vector<256x256xbf16>
    %cst_82 = arith.constant dense<0.000000e+00> : vector<8x256xf32>
    %176 = tpu.matmul %173, %175, %cst_82 {dimension_numbers = #tpu.dot_dimension_numbers<[1], [0], [0], [1], [0, 0, 1, 1], [], []>} : vector<8x256xbf16>, vector<256x256xbf16>, vector<8x256xf32> -> vector<8x256xf32>
    %177 = arith.addf %1, %176 : vector<8x256xf32>
    %178 = vector.broadcast %117 : vector<1x256xf32> to vector<8x256xf32>
    %179 = arith.addf %177, %178 : vector<8x256xf32>
    %cst_83 = arith.constant dense<0.000000e+00> : vector<8xf32>
    %180 = vector.multi_reduction <add>, %179, %cst_83 [1] : vector<8x256xf32> to vector<8xf32>
    %181 = vector.shape_cast %180 : vector<8xf32> to vector<8x1xf32>
    %cst_84 = arith.constant 2.560000e+02 : f32
    %182 = vector.broadcast %cst_84 : f32 to vector<8x1xf32>
    %183 = arith.divf %181, %182 : vector<8x1xf32>
    %184 = vector.broadcast %183 : vector<8x1xf32> to vector<8x256xf32>
    %185 = arith.subf %179, %184 : vector<8x256xf32>
    %186 = arith.mulf %185, %185 : vector<8x256xf32>
    %cst_85 = arith.constant dense<0.000000e+00> : vector<8xf32>
    %187 = vector.multi_reduction <add>, %186, %cst_85 [1] : vector<8x256xf32> to vector<8xf32>
    %188 = vector.shape_cast %187 : vector<8xf32> to vector<8x1xf32>
    %cst_86 = arith.constant 2.560000e+02 : f32
    %189 = vector.broadcast %cst_86 : f32 to vector<8x1xf32>
    %190 = arith.divf %188, %189 : vector<8x1xf32>
    %191 = vector.broadcast %183 : vector<8x1xf32> to vector<8x256xf32>
    %192 = arith.subf %179, %191 : vector<8x256xf32>
    %cst_87 = arith.constant 9.99999974E-6 : f32
    %193 = vector.broadcast %cst_87 : f32 to vector<8x1xf32>
    %194 = arith.addf %190, %193 : vector<8x1xf32>
    %195 = math.rsqrt %194 : vector<8x1xf32>
    %196 = vector.broadcast %195 : vector<8x1xf32> to vector<8x256xf32>
    %197 = arith.mulf %192, %196 : vector<8x256xf32>
    %198 = vector.broadcast %118 : vector<1x256xf32> to vector<8x256xf32>
    %199 = arith.mulf %197, %198 : vector<8x256xf32>
    %200 = vector.broadcast %119 : vector<1x256xf32> to vector<8x256xf32>
    %201 = arith.addf %199, %200 : vector<8x256xf32>
    %202 = vector.broadcast %4 : vector<8x1xf32> to vector<8x256xf32>
    %203 = arith.mulf %201, %202 : vector<8x256xf32>
    %204 = arith.truncf %203 : vector<8x256xf32> to vector<8x256xbf16>
    %c1_88 = arith.constant 1 : index
    %c0_89 = arith.constant 0 : index
    %c0_90 = arith.constant 0 : index
    %205 = vector.load %arg11[%c1_88, %c0_89, %c0_90] : memref<2x256x256xbf16, #tpu.memory_space<vmem>>, vector<1x256x256xbf16>
    %206 = vector.shape_cast %205 : vector<1x256x256xbf16> to vector<256x256xbf16>
    %cst_91 = arith.constant dense<0.000000e+00> : vector<8x256xf32>
    %207 = tpu.matmul %204, %206, %cst_91 {dimension_numbers = #tpu.dot_dimension_numbers<[1], [0], [0], [1], [0, 0, 1, 1], [], []>} : vector<8x256xbf16>, vector<256x256xbf16>, vector<8x256xf32> -> vector<8x256xf32>
    %208 = arith.addf %10, %207 : vector<8x256xf32>
    %cst_92 = arith.constant 0.000000e+00 : f32
    %209 = vector.broadcast %cst_92 : f32 to vector<8x256xf32>
    %210 = arith.subf %209, %208 : vector<8x256xf32>
    %211 = math.exp %210 : vector<8x256xf32>
    %cst_93 = arith.constant 1.000000e+00 : f32
    %212 = vector.broadcast %cst_93 : f32 to vector<8x256xf32>
    %213 = arith.addf %212, %211 : vector<8x256xf32>
    %cst_94 = arith.constant 1.000000e+00 : f32
    %214 = vector.broadcast %cst_94 : f32 to vector<8x256xf32>
    %215 = arith.divf %214, %213 : vector<8x256xf32>
    %216 = arith.mulf %203, %215 : vector<8x256xf32>
    %217 = arith.addf %113, %216 : vector<8x256xf32>
    %cst_95 = arith.constant 0.707106769 : f32
    %218 = vector.broadcast %cst_95 : f32 to vector<8x256xf32>
    %219 = arith.mulf %217, %218 : vector<8x256xf32>
    %220 = vector.broadcast %4 : vector<8x1xf32> to vector<8x256xf32>
    %221 = arith.mulf %219, %220 : vector<8x256xf32>
    %222 = vector.shape_cast %221 : vector<8x256xf32> to vector<1x8x256xf32>
    %c0_96 = arith.constant 0 : index
    %c0_97 = arith.constant 0 : index
    %c0_98 = arith.constant 0 : index
    %223 = vector.load %arg13[%c0_96, %c0_97, %c0_98] : memref<1x8x256xf32, #tpu.memory_space<vmem>>, vector<1x8x256xf32>
    tpu.vector_store %arg13[%c0_96, %c0_97, %c0_98], %222 {strides = array<i32>} : memref<1x8x256xf32, #tpu.memory_space<vmem>>, vector<1x8x256xf32>,
    return
  }
  func.func @transform_0(%arg0: i32, %arg1: i32) -> (i32, i32, i32) {
    %c0_i32 = arith.constant 0 : i32
    %c0_i32_0 = arith.constant 0 : i32
    return %arg0, %arg1, %c0_i32 : i32, i32, i32
  }
  func.func @transform_1(%arg0: i32, %arg1: i32) -> (i32, i32, i32) {
    %c0_i32 = arith.constant 0 : i32
    %c0_i32_0 = arith.constant 0 : i32
    %c0_i32_1 = arith.constant 0 : i32
    return %arg0, %c0_i32, %c0_i32_0 : i32, i32, i32
  }
  func.func @transform_2(%arg0: i32, %arg1: i32) -> (i32, i32, i32) {
    %c0_i32 = arith.constant 0 : i32
    %c0_i32_0 = arith.constant 0 : i32
    %c0_i32_1 = arith.constant 0 : i32
    return %arg0, %c0_i32, %c0_i32_0 : i32, i32, i32
  }
  func.func @transform_3(%arg0: i32, %arg1: i32) -> (i32, i32, i32) {
    %c0_i32 = arith.constant 0 : i32
    %c0_i32_0 = arith.constant 0 : i32
    return %arg0, %arg1, %c0_i32 : i32, i32, i32
  }
  func.func @transform_4(%arg0: i32, %arg1: i32) -> (i32, i32, i32) {
    %c0_i32 = arith.constant 0 : i32
    %c0_i32_0 = arith.constant 0 : i32
    return %arg0, %arg1, %c0_i32 : i32, i32, i32
  }
  func.func @transform_5(%arg0: i32, %arg1: i32) -> (i32, i32, i32) {
    %c0_i32 = arith.constant 0 : i32
    %c0_i32_0 = arith.constant 0 : i32
    return %arg0, %arg1, %c0_i32 : i32, i32, i32
  }
  func.func @transform_6(%arg0: i32, %arg1: i32) -> (i32, i32, i32) {
    %c0_i32 = arith.constant 0 : i32
    %c0_i32_0 = arith.constant 0 : i32
    %c0_i32_1 = arith.constant 0 : i32
    %c0_i32_2 = arith.constant 0 : i32
    return %c0_i32, %c0_i32_0, %c0_i32_1 : i32, i32, i32
  }
  func.func @transform_7(%arg0: i32, %arg1: i32) -> (i32, i32, i32) {
    %c0_i32 = arith.constant 0 : i32
    %c0_i32_0 = arith.constant 0 : i32
    %c0_i32_1 = arith.constant 0 : i32
    %c0_i32_2 = arith.constant 0 : i32
    return %c0_i32, %c0_i32_0, %c0_i32_1 : i32, i32, i32
  }
  func.func @transform_8(%arg0: i32, %arg1: i32) -> (i32, i32, i32) {
    %c0_i32 = arith.constant 0 : i32
    %c0_i32_0 = arith.constant 0 : i32
    %c0_i32_1 = arith.constant 0 : i32
    %c0_i32_2 = arith.constant 0 : i32
    return %c0_i32, %c0_i32_0, %c0_i32_1 : i32, i32, i32
  }
  func.func @transform_9(%arg0: i32, %arg1: i32) -> (i32, i32, i32) {
    %c0_i32 = arith.constant 0 : i32
    %c0_i32_0 = arith.constant 0 : i32
    %c0_i32_1 = arith.constant 0 : i32
    %c0_i32_2 = arith.constant 0 : i32
    return %c0_i32, %c0_i32_0, %c0_i32_1 : i32, i32, i32
  }
  func.func @transform_10(%arg0: i32, %arg1: i32) -> (i32, i32) {
    %c0_i32 = arith.constant 0 : i32
    %c0_i32_0 = arith.constant 0 : i32
    %c0_i32_1 = arith.constant 0 : i32
    return %c0_i32, %c0_i32_0 : i32, i32
  }
  func.func @transform_11(%arg0: i32, %arg1: i32) -> (i32, i32, i32) {
    %c0_i32 = arith.constant 0 : i32
    %c0_i32_0 = arith.constant 0 : i32
    return %arg0, %arg1, %c0_i32 : i32, i32, i32
  }
}

module attributes {stable_mosaic.version = 11 : i64} {
  func.func @_kv_proj_kernel(%arg0: i32, %arg1: i32, %arg2: memref<1x16x256xf32, #tpu.memory_space<vmem>>, %arg3: memref<256x512xbf16, #tpu.memory_space<vmem>>, %arg4: memref<1x512xf32, #tpu.memory_space<vmem>>, %arg5: memref<1x16x512xbf16, #tpu.memory_space<vmem>>) attributes {dimension_semantics = [#tpu.dimension_semantics<parallel>, #tpu.dimension_semantics<parallel>], iteration_bounds = array<i64: 2, 1>, scalar_prefetch = 0 : i64, scratch_operands = 0 : i64, tpu.core_type = #tpu.core_type<tc>, window_params = [{transform_indices = @transform_0, window_bounds = array<i64: 1, 16, 256>}, {pipeline_mode = #tpu.pipeline_mode<synchronous>, transform_indices = @transform_1, window_bounds = array<i64: 256, 512>}, {pipeline_mode = #tpu.pipeline_mode<synchronous>, transform_indices = @transform_2, window_bounds = array<i64: 1, 512>}, {transform_indices = @transform_3, window_bounds = array<i64: 1, 16, 512>}]} {
    %c0 = arith.constant 0 : index
    %c0_0 = arith.constant 0 : index
    %c0_1 = arith.constant 0 : index
    %0 = vector.load %arg2[%c0, %c0_0, %c0_1] : memref<1x16x256xf32, #tpu.memory_space<vmem>>, vector<1x16x256xf32>
    %1 = vector.shape_cast %0 : vector<1x16x256xf32> to vector<16x256xf32>
    %2 = arith.truncf %1 : vector<16x256xf32> to vector<16x256xbf16>
    %c0_2 = arith.constant 0 : index
    %c0_3 = arith.constant 0 : index
    %3 = vector.load %arg3[%c0_2, %c0_3] : memref<256x512xbf16, #tpu.memory_space<vmem>>, vector<256x512xbf16>
    %cst = arith.constant dense<0.000000e+00> : vector<16x512xf32>
    %4 = tpu.matmul %2, %3, %cst {dimension_numbers = #tpu.dot_dimension_numbers<[1], [0], [0], [1], [0, 0, 1, 1], [], []>} : vector<16x256xbf16>, vector<256x512xbf16>, vector<16x512xf32> -> vector<16x512xf32>
    %c0_4 = arith.constant 0 : index
    %c0_5 = arith.constant 0 : index
    %5 = vector.load %arg4[%c0_4, %c0_5] : memref<1x512xf32, #tpu.memory_space<vmem>>, vector<1x512xf32>
    %6 = vector.broadcast %5 : vector<1x512xf32> to vector<16x512xf32>
    %7 = arith.addf %4, %6 : vector<16x512xf32>
    %8 = arith.truncf %7 : vector<16x512xf32> to vector<16x512xbf16>
    %9 = vector.shape_cast %8 : vector<16x512xbf16> to vector<1x16x512xbf16>
    %c0_6 = arith.constant 0 : index
    %c0_7 = arith.constant 0 : index
    %c0_8 = arith.constant 0 : index
    %10 = vector.load %arg5[%c0_6, %c0_7, %c0_8] : memref<1x16x512xbf16, #tpu.memory_space<vmem>>, vector<1x16x512xbf16>
    tpu.vector_store %arg5[%c0_6, %c0_7, %c0_8], %9 {strides = array<i32>} : memref<1x16x512xbf16, #tpu.memory_space<vmem>>, vector<1x16x512xbf16>,
    return
  }
  func.func @transform_0(%arg0: i32, %arg1: i32) -> (i32, i32, i32) {
    %c0_i32 = arith.constant 0 : i32
    %c0_i32_0 = arith.constant 0 : i32
    return %arg0, %arg1, %c0_i32 : i32, i32, i32
  }
  func.func @transform_1(%arg0: i32, %arg1: i32) -> (i32, i32) {
    %c0_i32 = arith.constant 0 : i32
    %c0_i32_0 = arith.constant 0 : i32
    %c0_i32_1 = arith.constant 0 : i32
    return %c0_i32, %c0_i32_0 : i32, i32
  }
  func.func @transform_2(%arg0: i32, %arg1: i32) -> (i32, i32) {
    %c0_i32 = arith.constant 0 : i32
    %c0_i32_0 = arith.constant 0 : i32
    %c0_i32_1 = arith.constant 0 : i32
    return %c0_i32, %c0_i32_0 : i32, i32
  }
  func.func @transform_3(%arg0: i32, %arg1: i32) -> (i32, i32, i32) {
    %c0_i32 = arith.constant 0 : i32
    %c0_i32_0 = arith.constant 0 : i32
    return %arg0, %arg1, %c0_i32 : i32, i32, i32
  }
}

module attributes {stable_mosaic.version = 11 : i64} {
  func.func @_self_att_kernel(%arg0: i32, %arg1: i32, %arg2: memref<1x8x256xf32, #tpu.memory_space<vmem>>, %arg3: memref<1x8x512xbf16, #tpu.memory_space<vmem>>, %arg4: memref<1x8x8xbf16, #tpu.memory_space<vmem>>, %arg5: memref<1x8x1xf32, #tpu.memory_space<vmem>>, %arg6: memref<256x256xbf16, #tpu.memory_space<vmem>>, %arg7: memref<256x256xbf16, #tpu.memory_space<vmem>>, %arg8: memref<4x256xf32, #tpu.memory_space<vmem>>, %arg9: memref<1x8x256xf32, #tpu.memory_space<vmem>>) attributes {dimension_semantics = [#tpu.dimension_semantics<parallel>, #tpu.dimension_semantics<parallel>], iteration_bounds = array<i64: 2, 1>, scalar_prefetch = 0 : i64, scratch_operands = 0 : i64, tpu.core_type = #tpu.core_type<tc>, window_params = [{transform_indices = @transform_0, window_bounds = array<i64: 1, 8, 256>}, {transform_indices = @transform_1, window_bounds = array<i64: 1, 8, 512>}, {transform_indices = @transform_2, window_bounds = array<i64: 1, 8, 8>}, {transform_indices = @transform_3, window_bounds = array<i64: 1, 8, 1>}, {pipeline_mode = #tpu.pipeline_mode<synchronous>, transform_indices = @transform_4, window_bounds = array<i64: 256, 256>}, {pipeline_mode = #tpu.pipeline_mode<synchronous>, transform_indices = @transform_5, window_bounds = array<i64: 256, 256>}, {pipeline_mode = #tpu.pipeline_mode<synchronous>, transform_indices = @transform_6, window_bounds = array<i64: 4, 256>}, {transform_indices = @transform_7, window_bounds = array<i64: 1, 8, 256>}]} {
    %c0 = arith.constant 0 : index
    %c0_0 = arith.constant 0 : index
    %0 = vector.load %arg8[%c0, %c0_0] : memref<4x256xf32, #tpu.memory_space<vmem>>, vector<4x256xf32>
    %1 = vector.extract_strided_slice %0 {offsets = [0, 0], sizes = [1, 256], strides = [1, 1]} : vector<4x256xf32> to vector<1x256xf32>
    %2 = vector.extract_strided_slice %0 {offsets = [1, 0], sizes = [1, 256], strides = [1, 1]} : vector<4x256xf32> to vector<1x256xf32>
    %3 = vector.extract_strided_slice %0 {offsets = [2, 0], sizes = [1, 256], strides = [1, 1]} : vector<4x256xf32> to vector<1x256xf32>
    %4 = vector.extract_strided_slice %0 {offsets = [3, 0], sizes = [1, 256], strides = [1, 1]} : vector<4x256xf32> to vector<1x256xf32>
    %c0_1 = arith.constant 0 : index
    %c0_2 = arith.constant 0 : index
    %c0_3 = arith.constant 0 : index
    %5 = vector.load %arg2[%c0_1, %c0_2, %c0_3] : memref<1x8x256xf32, #tpu.memory_space<vmem>>, vector<1x8x256xf32>
    %6 = vector.shape_cast %5 : vector<1x8x256xf32> to vector<8x256xf32>
    %7 = arith.truncf %6 : vector<8x256xf32> to vector<8x256xbf16>
    %c0_4 = arith.constant 0 : index
    %c0_5 = arith.constant 0 : index
    %8 = vector.load %arg6[%c0_4, %c0_5] : memref<256x256xbf16, #tpu.memory_space<vmem>>, vector<256x256xbf16>
    %cst = arith.constant dense<0.000000e+00> : vector<8x256xf32>
    %9 = tpu.matmul %7, %8, %cst {dimension_numbers = #tpu.dot_dimension_numbers<[1], [0], [0], [1], [0, 0, 1, 1], [], []>} : vector<8x256xbf16>, vector<256x256xbf16>, vector<8x256xf32> -> vector<8x256xf32>
    %10 = vector.broadcast %1 : vector<1x256xf32> to vector<8x256xf32>
    %11 = arith.addf %9, %10 : vector<8x256xf32>
    %cst_6 = arith.constant 0.0883883461 : f32
    %12 = vector.broadcast %cst_6 : f32 to vector<8x256xf32>
    %13 = arith.mulf %11, %12 : vector<8x256xf32>
    %c0_7 = arith.constant 0 : index
    %c0_8 = arith.constant 0 : index
    %c0_9 = arith.constant 0 : index
    %14 = vector.load %arg3[%c0_7, %c0_8, %c0_9] : memref<1x8x512xbf16, #tpu.memory_space<vmem>>, vector<1x8x512xbf16>
    %15 = vector.shape_cast %14 : vector<1x8x512xbf16> to vector<8x512xbf16>
    %c0_10 = arith.constant 0 : index
    %c0_11 = arith.constant 0 : index
    %c0_12 = arith.constant 0 : index
    %16 = vector.load %arg4[%c0_10, %c0_11, %c0_12] : memref<1x8x8xbf16, #tpu.memory_space<vmem>>, vector<1x8x8xbf16>
    %17 = vector.shape_cast %16 : vector<1x8x8xbf16> to vector<8x8xbf16>
    %cst_13 = arith.constant 0.000000e+00 : bf16
    %18 = vector.broadcast %cst_13 : bf16 to vector<8x8xbf16>
    %19 = arith.cmpf one, %17, %18 : vector<8x8xbf16>
    %20 = arith.truncf %13 : vector<8x256xf32> to vector<8x256xbf16>
    %21 = vector.extract_strided_slice %20 {offsets = [0, 0], sizes = [8, 128], strides = [1, 1]} : vector<8x256xbf16> to vector<8x128xbf16>
    %22 = vector.extract_strided_slice %15 {offsets = [0, 0], sizes = [8, 128], strides = [1, 1]} : vector<8x512xbf16> to vector<8x128xbf16>
    "tpu.trace_start"() <{level = 10 : i32, message = "qd,kd->qk"}> : () -> ()
    %cst_14 = arith.constant dense<0.000000e+00> : vector<8x8xf32>
    %23 = tpu.matmul %21, %22, %cst_14 {dimension_numbers = #tpu.dot_dimension_numbers<[1], [1], [0], [0], [0, 0, 1, 0], [], []>} : vector<8x128xbf16>, vector<8x128xbf16>, vector<8x8xf32> -> vector<8x8xf32>
    %cst_15 = arith.constant -1.000000e+30 : f32
    "tpu.trace_stop"() : () -> ()
    %24 = vector.broadcast %cst_15 : f32 to vector<8x8xf32>
    %25 = arith.select %19, %24, %23 : vector<8x8xi1>, vector<8x8xf32>
    %cst_16 = arith.constant dense<0xFF800000> : vector<8xf32>
    %26 = vector.multi_reduction <maximumf>, %25, %cst_16 [1] : vector<8x8xf32> to vector<8xf32>
    %27 = vector.shape_cast %26 : vector<8xf32> to vector<8x1xf32>
    %28 = vector.broadcast %27 : vector<8x1xf32> to vector<8x8xf32>
    %29 = arith.subf %25, %28 : vector<8x8xf32>
    %30 = math.exp %29 : vector<8x8xf32>
    %cst_17 = arith.constant dense<0.000000e+00> : vector<8xf32>
    %31 = vector.multi_reduction <add>, %30, %cst_17 [1] : vector<8x8xf32> to vector<8xf32>
    %32 = vector.shape_cast %31 : vector<8xf32> to vector<8x1xf32>
    %33 = arith.truncf %30 : vector<8x8xf32> to vector<8x8xbf16>
    %34 = vector.extract_strided_slice %15 {offsets = [0, 256], sizes = [8, 128], strides = [1, 1]} : vector<8x512xbf16> to vector<8x128xbf16>
    %cst_18 = arith.constant dense<0.000000e+00> : vector<8x128xf32>
    %35 = tpu.matmul %33, %34, %cst_18 {dimension_numbers = #tpu.dot_dimension_numbers<[1], [0], [0], [1], [0, 0, 1, 1], [], []>} : vector<8x8xbf16>, vector<8x128xbf16>, vector<8x128xf32> -> vector<8x128xf32>
    %cst_19 = arith.constant 1.000000e+00 : f32
    %36 = vector.broadcast %cst_19 : f32 to vector<8x1xf32>
    %37 = arith.divf %36, %32 : vector<8x1xf32>
    %38 = vector.broadcast %37 : vector<8x1xf32> to vector<8x128xf32>
    %39 = arith.mulf %35, %38 : vector<8x128xf32>
    %40 = vector.extract_strided_slice %20 {offsets = [0, 128], sizes = [8, 128], strides = [1, 1]} : vector<8x256xbf16> to vector<8x128xbf16>
    %41 = vector.extract_strided_slice %15 {offsets = [0, 128], sizes = [8, 128], strides = [1, 1]} : vector<8x512xbf16> to vector<8x128xbf16>
    "tpu.trace_start"() <{level = 10 : i32, message = "qd,kd->qk"}> : () -> ()
    %cst_20 = arith.constant dense<0.000000e+00> : vector<8x8xf32>
    %42 = tpu.matmul %40, %41, %cst_20 {dimension_numbers = #tpu.dot_dimension_numbers<[1], [1], [0], [0], [0, 0, 1, 0], [], []>} : vector<8x128xbf16>, vector<8x128xbf16>, vector<8x8xf32> -> vector<8x8xf32>
    %cst_21 = arith.constant -1.000000e+30 : f32
    "tpu.trace_stop"() : () -> ()
    %43 = vector.broadcast %cst_21 : f32 to vector<8x8xf32>
    %44 = arith.select %19, %43, %42 : vector<8x8xi1>, vector<8x8xf32>
    %cst_22 = arith.constant dense<0xFF800000> : vector<8xf32>
    %45 = vector.multi_reduction <maximumf>, %44, %cst_22 [1] : vector<8x8xf32> to vector<8xf32>
    %46 = vector.shape_cast %45 : vector<8xf32> to vector<8x1xf32>
    %47 = vector.broadcast %46 : vector<8x1xf32> to vector<8x8xf32>
    %48 = arith.subf %44, %47 : vector<8x8xf32>
    %49 = math.exp %48 : vector<8x8xf32>
    %cst_23 = arith.constant dense<0.000000e+00> : vector<8xf32>
    %50 = vector.multi_reduction <add>, %49, %cst_23 [1] : vector<8x8xf32> to vector<8xf32>
    %51 = vector.shape_cast %50 : vector<8xf32> to vector<8x1xf32>
    %52 = arith.truncf %49 : vector<8x8xf32> to vector<8x8xbf16>
    %53 = vector.extract_strided_slice %15 {offsets = [0, 384], sizes = [8, 128], strides = [1, 1]} : vector<8x512xbf16> to vector<8x128xbf16>
    %cst_24 = arith.constant dense<0.000000e+00> : vector<8x128xf32>
    %54 = tpu.matmul %52, %53, %cst_24 {dimension_numbers = #tpu.dot_dimension_numbers<[1], [0], [0], [1], [0, 0, 1, 1], [], []>} : vector<8x8xbf16>, vector<8x128xbf16>, vector<8x128xf32> -> vector<8x128xf32>
    %cst_25 = arith.constant 1.000000e+00 : f32
    %55 = vector.broadcast %cst_25 : f32 to vector<8x1xf32>
    %56 = arith.divf %55, %51 : vector<8x1xf32>
    %57 = vector.broadcast %56 : vector<8x1xf32> to vector<8x128xf32>
    %58 = arith.mulf %54, %57 : vector<8x128xf32>
    %59 = tpu.concatenate %39, %58 in 1 : vector<8x128xf32>, vector<8x128xf32> -> vector<8x256xf32>
    %60 = arith.truncf %59 : vector<8x256xf32> to vector<8x256xbf16>
    %c0_26 = arith.constant 0 : index
    %c0_27 = arith.constant 0 : index
    %61 = vector.load %arg7[%c0_26, %c0_27] : memref<256x256xbf16, #tpu.memory_space<vmem>>, vector<256x256xbf16>
    %cst_28 = arith.constant dense<0.000000e+00> : vector<8x256xf32>
    %62 = tpu.matmul %60, %61, %cst_28 {dimension_numbers = #tpu.dot_dimension_numbers<[1], [0], [0], [1], [0, 0, 1, 1], [], []>} : vector<8x256xbf16>, vector<256x256xbf16>, vector<8x256xf32> -> vector<8x256xf32>
    %63 = arith.addf %6, %62 : vector<8x256xf32>
    %64 = vector.broadcast %2 : vector<1x256xf32> to vector<8x256xf32>
    %65 = arith.addf %63, %64 : vector<8x256xf32>
    %cst_29 = arith.constant dense<0.000000e+00> : vector<8xf32>
    %66 = vector.multi_reduction <add>, %65, %cst_29 [1] : vector<8x256xf32> to vector<8xf32>
    %67 = vector.shape_cast %66 : vector<8xf32> to vector<8x1xf32>
    %cst_30 = arith.constant 2.560000e+02 : f32
    %68 = vector.broadcast %cst_30 : f32 to vector<8x1xf32>
    %69 = arith.divf %67, %68 : vector<8x1xf32>
    %70 = vector.broadcast %69 : vector<8x1xf32> to vector<8x256xf32>
    %71 = arith.subf %65, %70 : vector<8x256xf32>
    %72 = arith.mulf %71, %71 : vector<8x256xf32>
    %cst_31 = arith.constant dense<0.000000e+00> : vector<8xf32>
    %73 = vector.multi_reduction <add>, %72, %cst_31 [1] : vector<8x256xf32> to vector<8xf32>
    %74 = vector.shape_cast %73 : vector<8xf32> to vector<8x1xf32>
    %cst_32 = arith.constant 2.560000e+02 : f32
    %75 = vector.broadcast %cst_32 : f32 to vector<8x1xf32>
    %76 = arith.divf %74, %75 : vector<8x1xf32>
    %77 = vector.broadcast %69 : vector<8x1xf32> to vector<8x256xf32>
    %78 = arith.subf %65, %77 : vector<8x256xf32>
    %cst_33 = arith.constant 9.99999974E-6 : f32
    %79 = vector.broadcast %cst_33 : f32 to vector<8x1xf32>
    %80 = arith.addf %76, %79 : vector<8x1xf32>
    %81 = math.rsqrt %80 : vector<8x1xf32>
    %82 = vector.broadcast %81 : vector<8x1xf32> to vector<8x256xf32>
    %83 = arith.mulf %78, %82 : vector<8x256xf32>
    %84 = vector.broadcast %3 : vector<1x256xf32> to vector<8x256xf32>
    %85 = arith.mulf %83, %84 : vector<8x256xf32>
    %86 = vector.broadcast %4 : vector<1x256xf32> to vector<8x256xf32>
    %87 = arith.addf %85, %86 : vector<8x256xf32>
    %c0_34 = arith.constant 0 : index
    %c0_35 = arith.constant 0 : index
    %c0_36 = arith.constant 0 : index
    %88 = vector.load %arg5[%c0_34, %c0_35, %c0_36] : memref<1x8x1xf32, #tpu.memory_space<vmem>>, vector<1x8x1xf32>
    %89 = vector.shape_cast %88 : vector<1x8x1xf32> to vector<8x1xf32>
    %90 = vector.broadcast %89 : vector<8x1xf32> to vector<8x256xf32>
    %91 = arith.mulf %87, %90 : vector<8x256xf32>
    %92 = vector.shape_cast %91 : vector<8x256xf32> to vector<1x8x256xf32>
    %c0_37 = arith.constant 0 : index
    %c0_38 = arith.constant 0 : index
    %c0_39 = arith.constant 0 : index
    %93 = vector.load %arg9[%c0_37, %c0_38, %c0_39] : memref<1x8x256xf32, #tpu.memory_space<vmem>>, vector<1x8x256xf32>
    tpu.vector_store %arg9[%c0_37, %c0_38, %c0_39], %92 {strides = array<i32>} : memref<1x8x256xf32, #tpu.memory_space<vmem>>, vector<1x8x256xf32>,
    return
  }
  func.func @transform_0(%arg0: i32, %arg1: i32) -> (i32, i32, i32) {
    %c0_i32 = arith.constant 0 : i32
    %c0_i32_0 = arith.constant 0 : i32
    return %arg0, %arg1, %c0_i32 : i32, i32, i32
  }
  func.func @transform_1(%arg0: i32, %arg1: i32) -> (i32, i32, i32) {
    %c0_i32 = arith.constant 0 : i32
    %c0_i32_0 = arith.constant 0 : i32
    %c0_i32_1 = arith.constant 0 : i32
    return %arg0, %c0_i32, %c0_i32_0 : i32, i32, i32
  }
  func.func @transform_2(%arg0: i32, %arg1: i32) -> (i32, i32, i32) {
    %c0_i32 = arith.constant 0 : i32
    %c0_i32_0 = arith.constant 0 : i32
    return %arg0, %arg1, %c0_i32 : i32, i32, i32
  }
  func.func @transform_3(%arg0: i32, %arg1: i32) -> (i32, i32, i32) {
    %c0_i32 = arith.constant 0 : i32
    %c0_i32_0 = arith.constant 0 : i32
    return %arg0, %arg1, %c0_i32 : i32, i32, i32
  }
  func.func @transform_4(%arg0: i32, %arg1: i32) -> (i32, i32) {
    %c0_i32 = arith.constant 0 : i32
    %c0_i32_0 = arith.constant 0 : i32
    %c0_i32_1 = arith.constant 0 : i32
    return %c0_i32, %c0_i32_0 : i32, i32
  }
  func.func @transform_5(%arg0: i32, %arg1: i32) -> (i32, i32) {
    %c0_i32 = arith.constant 0 : i32
    %c0_i32_0 = arith.constant 0 : i32
    %c0_i32_1 = arith.constant 0 : i32
    return %c0_i32, %c0_i32_0 : i32, i32
  }
  func.func @transform_6(%arg0: i32, %arg1: i32) -> (i32, i32) {
    %c0_i32 = arith.constant 0 : i32
    %c0_i32_0 = arith.constant 0 : i32
    %c0_i32_1 = arith.constant 0 : i32
    return %c0_i32, %c0_i32_0 : i32, i32
  }
  func.func @transform_7(%arg0: i32, %arg1: i32) -> (i32, i32, i32) {
    %c0_i32 = arith.constant 0 : i32
    %c0_i32_0 = arith.constant 0 : i32
    return %arg0, %arg1, %c0_i32 : i32, i32, i32
  }
}

module attributes {stable_mosaic.version = 11 : i64} {
  func.func @_pwff_kernel(%arg0: i32, %arg1: i32, %arg2: memref<1x8x256xf32, #tpu.memory_space<vmem>>, %arg3: memref<1x8x1xf32, #tpu.memory_space<vmem>>, %arg4: memref<256x512xbf16, #tpu.memory_space<vmem>>, %arg5: memref<1x512xf32, #tpu.memory_space<vmem>>, %arg6: memref<512x256xbf16, #tpu.memory_space<vmem>>, %arg7: memref<3x256xf32, #tpu.memory_space<vmem>>, %arg8: memref<1x8x256xf32, #tpu.memory_space<vmem>>) attributes {dimension_semantics = [#tpu.dimension_semantics<parallel>, #tpu.dimension_semantics<parallel>], iteration_bounds = array<i64: 2, 1>, scalar_prefetch = 0 : i64, scratch_operands = 0 : i64, tpu.core_type = #tpu.core_type<tc>, window_params = [{transform_indices = @transform_0, window_bounds = array<i64: 1, 8, 256>}, {transform_indices = @transform_1, window_bounds = array<i64: 1, 8, 1>}, {pipeline_mode = #tpu.pipeline_mode<synchronous>, transform_indices = @transform_2, window_bounds = array<i64: 256, 512>}, {pipeline_mode = #tpu.pipeline_mode<synchronous>, transform_indices = @transform_3, window_bounds = array<i64: 1, 512>}, {pipeline_mode = #tpu.pipeline_mode<synchronous>, transform_indices = @transform_4, window_bounds = array<i64: 512, 256>}, {pipeline_mode = #tpu.pipeline_mode<synchronous>, transform_indices = @transform_5, window_bounds = array<i64: 3, 256>}, {transform_indices = @transform_6, window_bounds = array<i64: 1, 8, 256>}]} {
    %c0 = arith.constant 0 : index
    %c0_0 = arith.constant 0 : index
    %0 = vector.load %arg7[%c0, %c0_0] : memref<3x256xf32, #tpu.memory_space<vmem>>, vector<3x256xf32>
    %1 = vector.extract_strided_slice %0 {offsets = [0, 0], sizes = [1, 256], strides = [1, 1]} : vector<3x256xf32> to vector<1x256xf32>
    %2 = vector.extract_strided_slice %0 {offsets = [1, 0], sizes = [1, 256], strides = [1, 1]} : vector<3x256xf32> to vector<1x256xf32>
    %3 = vector.extract_strided_slice %0 {offsets = [2, 0], sizes = [1, 256], strides = [1, 1]} : vector<3x256xf32> to vector<1x256xf32>
    %c0_1 = arith.constant 0 : index
    %c0_2 = arith.constant 0 : index
    %c0_3 = arith.constant 0 : index
    %4 = vector.load %arg2[%c0_1, %c0_2, %c0_3] : memref<1x8x256xf32, #tpu.memory_space<vmem>>, vector<1x8x256xf32>
    %5 = vector.shape_cast %4 : vector<1x8x256xf32> to vector<8x256xf32>
    %6 = arith.truncf %5 : vector<8x256xf32> to vector<8x256xbf16>
    %c0_4 = arith.constant 0 : index
    %c0_5 = arith.constant 0 : index
    %7 = vector.load %arg4[%c0_4, %c0_5] : memref<256x512xbf16, #tpu.memory_space<vmem>>, vector<256x512xbf16>
    %cst = arith.constant dense<0.000000e+00> : vector<8x512xf32>
    %8 = tpu.matmul %6, %7, %cst {dimension_numbers = #tpu.dot_dimension_numbers<[1], [0], [0], [1], [0, 0, 1, 1], [], []>} : vector<8x256xbf16>, vector<256x512xbf16>, vector<8x512xf32> -> vector<8x512xf32>
    %c0_6 = arith.constant 0 : index
    %c0_7 = arith.constant 0 : index
    %9 = vector.load %arg5[%c0_6, %c0_7] : memref<1x512xf32, #tpu.memory_space<vmem>>, vector<1x512xf32>
    %10 = vector.broadcast %9 : vector<1x512xf32> to vector<8x512xf32>
    %11 = arith.addf %8, %10 : vector<8x512xf32>
    %cst_8 = arith.constant 0.000000e+00 : f32
    %12 = vector.broadcast %cst_8 : f32 to vector<8x512xf32>
    %13 = arith.maximumf %11, %12 : vector<8x512xf32>
    %14 = arith.truncf %13 : vector<8x512xf32> to vector<8x512xbf16>
    %c0_9 = arith.constant 0 : index
    %c0_10 = arith.constant 0 : index
    %15 = vector.load %arg6[%c0_9, %c0_10] : memref<512x256xbf16, #tpu.memory_space<vmem>>, vector<512x256xbf16>
    %cst_11 = arith.constant dense<0.000000e+00> : vector<8x256xf32>
    %16 = tpu.matmul %14, %15, %cst_11 {dimension_numbers = #tpu.dot_dimension_numbers<[1], [0], [0], [1], [0, 0, 1, 1], [], []>} : vector<8x512xbf16>, vector<512x256xbf16>, vector<8x256xf32> -> vector<8x256xf32>
    %17 = vector.broadcast %1 : vector<1x256xf32> to vector<8x256xf32>
    %18 = arith.addf %16, %17 : vector<8x256xf32>
    %19 = arith.addf %5, %18 : vector<8x256xf32>
    %cst_12 = arith.constant dense<0.000000e+00> : vector<8xf32>
    %20 = vector.multi_reduction <add>, %19, %cst_12 [1] : vector<8x256xf32> to vector<8xf32>
    %21 = vector.shape_cast %20 : vector<8xf32> to vector<8x1xf32>
    %cst_13 = arith.constant 2.560000e+02 : f32
    %22 = vector.broadcast %cst_13 : f32 to vector<8x1xf32>
    %23 = arith.divf %21, %22 : vector<8x1xf32>
    %24 = vector.broadcast %23 : vector<8x1xf32> to vector<8x256xf32>
    %25 = arith.subf %19, %24 : vector<8x256xf32>
    %26 = arith.mulf %25, %25 : vector<8x256xf32>
    %cst_14 = arith.constant dense<0.000000e+00> : vector<8xf32>
    %27 = vector.multi_reduction <add>, %26, %cst_14 [1] : vector<8x256xf32> to vector<8xf32>
    %28 = vector.shape_cast %27 : vector<8xf32> to vector<8x1xf32>
    %cst_15 = arith.constant 2.560000e+02 : f32
    %29 = vector.broadcast %cst_15 : f32 to vector<8x1xf32>
    %30 = arith.divf %28, %29 : vector<8x1xf32>
    %31 = vector.broadcast %23 : vector<8x1xf32> to vector<8x256xf32>
    %32 = arith.subf %19, %31 : vector<8x256xf32>
    %cst_16 = arith.constant 9.99999974E-6 : f32
    %33 = vector.broadcast %cst_16 : f32 to vector<8x1xf32>
    %34 = arith.addf %30, %33 : vector<8x1xf32>
    %35 = math.rsqrt %34 : vector<8x1xf32>
    %36 = vector.broadcast %35 : vector<8x1xf32> to vector<8x256xf32>
    %37 = arith.mulf %32, %36 : vector<8x256xf32>
    %38 = vector.broadcast %2 : vector<1x256xf32> to vector<8x256xf32>
    %39 = arith.mulf %37, %38 : vector<8x256xf32>
    %40 = vector.broadcast %3 : vector<1x256xf32> to vector<8x256xf32>
    %41 = arith.addf %39, %40 : vector<8x256xf32>
    %c0_17 = arith.constant 0 : index
    %c0_18 = arith.constant 0 : index
    %c0_19 = arith.constant 0 : index
    %42 = vector.load %arg3[%c0_17, %c0_18, %c0_19] : memref<1x8x1xf32, #tpu.memory_space<vmem>>, vector<1x8x1xf32>
    %43 = vector.shape_cast %42 : vector<1x8x1xf32> to vector<8x1xf32>
    %44 = vector.broadcast %43 : vector<8x1xf32> to vector<8x256xf32>
    %45 = arith.mulf %41, %44 : vector<8x256xf32>
    %46 = vector.shape_cast %45 : vector<8x256xf32> to vector<1x8x256xf32>
    %c0_20 = arith.constant 0 : index
    %c0_21 = arith.constant 0 : index
    %c0_22 = arith.constant 0 : index
    %47 = vector.load %arg8[%c0_20, %c0_21, %c0_22] : memref<1x8x256xf32, #tpu.memory_space<vmem>>, vector<1x8x256xf32>
    tpu.vector_store %arg8[%c0_20, %c0_21, %c0_22], %46 {strides = array<i32>} : memref<1x8x256xf32, #tpu.memory_space<vmem>>, vector<1x8x256xf32>,
    return
  }
  func.func @transform_0(%arg0: i32, %arg1: i32) -> (i32, i32, i32) {
    %c0_i32 = arith.constant 0 : i32
    %c0_i32_0 = arith.constant 0 : i32
    return %arg0, %arg1, %c0_i32 : i32, i32, i32
  }
  func.func @transform_1(%arg0: i32, %arg1: i32) -> (i32, i32, i32) {
    %c0_i32 = arith.constant 0 : i32
    %c0_i32_0 = arith.constant 0 : i32
    return %arg0, %arg1, %c0_i32 : i32, i32, i32
  }
  func.func @transform_2(%arg0: i32, %arg1: i32) -> (i32, i32) {
    %c0_i32 = arith.constant 0 : i32
    %c0_i32_0 = arith.constant 0 : i32
    %c0_i32_1 = arith.constant 0 : i32
    return %c0_i32, %c0_i32_0 : i32, i32
  }
  func.func @transform_3(%arg0: i32, %arg1: i32) -> (i32, i32) {
    %c0_i32 = arith.constant 0 : i32
    %c0_i32_0 = arith.constant 0 : i32
    %c0_i32_1 = arith.constant 0 : i32
    return %c0_i32, %c0_i32_0 : i32, i32
  }
  func.func @transform_4(%arg0: i32, %arg1: i32) -> (i32, i32) {
    %c0_i32 = arith.constant 0 : i32
    %c0_i32_0 = arith.constant 0 : i32
    %c0_i32_1 = arith.constant 0 : i32
    return %c0_i32, %c0_i32_0 : i32, i32
  }
  func.func @transform_5(%arg0: i32, %arg1: i32) -> (i32, i32) {
    %c0_i32 = arith.constant 0 : i32
    %c0_i32_0 = arith.constant 0 : i32
    %c0_i32_1 = arith.constant 0 : i32
    return %c0_i32, %c0_i32_0 : i32, i32
  }
  func.func @transform_6(%arg0: i32, %arg1: i32) -> (i32, i32, i32) {
    %c0_i32 = arith.constant 0 : i32
    %c0_i32_0 = arith.constant 0 : i32
    return %arg0, %arg1, %c0_i32 : i32, i32, i32
  }
}

</mosaic_0001>

<bundles_post_ra>
// kernel: parallel_attention_layer.7
= control target key start
LH: loop header
LB: loop body
LE: loop exit
PB: predicated region body
PF: predicated region fallthrough
CT: control target
= control target key end

     0   :  { %s1086_s12 = smov 0   ;;  %s1088_s13 = smov 0   ;;  %s1331_s0 = inlined_call_operand.vmem [shape: f32[2,16,256], index: 0, kind: input, shape index: {}]   ;;  %s1332_s1 = inlined_call_operand.vmem [shape: bf16[256,512], index: 1, kind: input, shape index: {}]   ;;  %s1333_s2 = inlined_call_operand.vmem [shape: f32[1,512], index: 2, kind: input, shape index: {}]   ;;  %s1334_s3 = inlined_call_operand.vmem [shape: bf16[2,16,512], index: 3, kind: output, shape index: {}]  }
   0x1   :  { %s1090_s14 = smov 0  }
   0x2 LB: > { %s25_s15 = sadd.s32 1, %s1060_s13  ;;  %p841_p0 = scmp.ge.s32.totalorder %s1064_s14, 1  ;;  %s1064_s14 = sphi %s1090_s14, %s13_s14   ;;  %s1060_s13 = sphi %s1088_s13, %s1336_s13   ;;  %s1056_s12 = sphi %s1086_s12, %s1335_s12  }
   0x3   : > { %p27_p1 = scmp.ge.s32.totalorder %s25_s15, 2  ;;  %p159_p2 = scmp.lt.s32.totalorder %s1064_s14, 3 }
   0x5   : > { %s1338_s15 = smov (%p27_p1, %s25_s15), 0  ;;  %p160_p3 = pnand %p841_p0, %p159_p2 }
   0x6   : > { %p194_p4 = scmp.lt.s32.totalorder (!%p160_p3), %s1056_s12, 1 }
   0x7   : > { %163 = sbr.rel (%p160_p3) target bundleno = 281 (0x119), region = 32 }
   0xc   : > { %v946_v0 = vld [vmem:[%s1332_s1 + $0xe4] ss:$16 sps:$4 sm:$0xff]   ;;  %v948_v1 = vld [vmem:[%s1332_s1 + $0xec] ss:$16 sps:$4 sm:$0xff]   ;;  %v950_v2 = vld [vmem:[%s1332_s1 + $0xe0] ss:$16 sps:$4 sm:$0xff]  }
   0xd   : > { %627 = vmatprep.subr.bf16.mxu0 %v946_v0  ;;  %v951_v3 = vld [vmem:[%s1332_s1 + $0xe8] ss:$16 sps:$4 sm:$0xff]   ;;  %670 = vmatprep.subr.bf16.mxu1 %v948_v1  ;;  %v952_v4 = vld [vmem:[%s1332_s1 + $0xc4] ss:$16 sps:$4 sm:$0xff]   ;;  %v954_v5 = vld [vmem:[%s1332_s1 + $0xcc] ss:$16 sps:$4 sm:$0xff]  }
   0xe   : > { %628 = vmatpush1.bf16.msra.mxu0 %v950_v2  ;;  %671 = vmatpush1.bf16.msra.mxu1 %v951_v3  ;;  %v956_v6 = vld [vmem:[%s1332_s1 + $0xc0] ss:$16 sps:$4 sm:$0xff]   ;;  %v957_v7 = vld [vmem:[%s1332_s1 + $0xc8] ss:$16 sps:$4 sm:$0xff]   ;;  %v958_v8 = vld [vmem:[%s1332_s1 + $0xa4] ss:$16 sps:$4 sm:$0xff]  }
   0xf   : > { %629 = vmatprep.subr.bf16.mxu0 %v952_v4  ;;  %672 = vmatprep.subr.bf16.mxu1 %v954_v5  ;;  %v960_v9 = vld [vmem:[%s1332_s1 + $0xac] ss:$16 sps:$4 sm:$0xff]   ;;  %v962_v10 = vld [vmem:[%s1332_s1 + $0xa0] ss:$16 sps:$4 sm:$0xff]   ;;  %v963_v11 = vld [vmem:[%s1332_s1 + $0xa8] ss:$16 sps:$4 sm:$0xff]  }
  0x10   : > { %v964_v12 = vld [vmem:[%s1332_s1 + $0x84] ss:$16 sps:$4 sm:$0xff]   ;;  %v966_v13 = vld [vmem:[%s1332_s1 + $0x8c] ss:$16 sps:$4 sm:$0xff]   ;;  %v968_v14 = vld [vmem:[%s1332_s1 + $0x80] ss:$16 sps:$4 sm:$0xff]  }
  0x11   : > { %v969_v15 = vld [vmem:[%s1332_s1 + $0x88] ss:$16 sps:$4 sm:$0xff]   ;;  %v970_v16 = vld [vmem:[%s1332_s1 + $0x64] ss:$16 sps:$4 sm:$0xff]   ;;  %v972_v17 = vld [vmem:[%s1332_s1 + $0x6c] ss:$16 sps:$4 sm:$0xff]  }
  0x12   : > { %630 = vmatpush1.bf16.msra.mxu0 %v956_v6  ;;  %673 = vmatpush1.bf16.msra.mxu1 %v957_v7  ;;  %v974_v18 = vld [vmem:[%s1332_s1 + $0x60] ss:$16 sps:$4 sm:$0xff]   ;;  %v975_v19 = vld [vmem:[%s1332_s1 + $0x68] ss:$16 sps:$4 sm:$0xff]   ;;  %v976_v20 = vld [vmem:[%s1332_s1 + $0x44] ss:$16 sps:$4 sm:$0xff]   ;;  %v287_v6 = vlaneseq }
  0x13   : > { %631 = vmatprep.subr.bf16.mxu0 %v958_v8  ;;  %674 = vmatprep.subr.bf16.mxu1 %v960_v9  ;;  %v978_v21 = vld [vmem:[%s1332_s1 + $0x4c] ss:$16 sps:$4 sm:$0xff]   ;;  %v980_v22 = vld [vmem:[%s1332_s1 + $0x40] ss:$16 sps:$4 sm:$0xff]   ;;  %v981_v23 = vld [vmem:[%s1332_s1 + $0x48] ss:$16 sps:$4 sm:$0xff]  }
  0x14   : > { %v982_v24 = vld [vmem:[%s1332_s1 + $0x24] ss:$16 sps:$4 sm:$0xff]   ;;  %v984_v25 = vld [vmem:[%s1332_s1 + $0x2c] ss:$16 sps:$4 sm:$0xff]   ;;  %v986_v26 = vld [vmem:[%s1332_s1 + $0x20] ss:$16 sps:$4 sm:$0xff]  }
  0x15   : > { %v987_v27 = vld [vmem:[%s1332_s1 + $0x28] ss:$16 sps:$4 sm:$0xff]   ;;  %v988_v28 = vld [vmem:[%s1332_s1 + $0x4] ss:$16 sps:$4 sm:$0xff]   ;;  %v990_v29 = vld [vmem:[%s1332_s1 + $0xc] ss:$16 sps:$4 sm:$0xff]  }
  0x16   : > { %632 = vmatpush1.bf16.msra.mxu0 %v962_v10  ;;  %675 = vmatpush1.bf16.msra.mxu1 %v963_v11  ;;  %v992_v30 = vld [vmem:[%s1332_s1] ss:$16 sps:$4 sm:$0xff]   ;;  %v993_v31 = vld [vmem:[%s1332_s1 + $0x8] ss:$16 sps:$4 sm:$0xff]   ;;  %v994_v32 = vld [vmem:[%s1332_s1 + $0x1e4] ss:$16 sps:$4 sm:$0xff]  }
  0x17   : > { %633 = vmatprep.subr.bf16.mxu0 %v964_v12  ;;  %676 = vmatprep.subr.bf16.mxu1 %v966_v13  ;;  %v996_v33 = vld [vmem:[%s1332_s1 + $0x1ec] ss:$16 sps:$4 sm:$0xff]   ;;  %v998_v34 = vld [vmem:[%s1332_s1 + $0x1e0] ss:$16 sps:$4 sm:$0xff]   ;;  %v999_v35 = vld [vmem:[%s1332_s1 + $0x1e8] ss:$16 sps:$4 sm:$0xff]  }
  0x18   : > { %v1000_v36 = vld [vmem:[%s1332_s1 + $0x1c4] ss:$16 sps:$4 sm:$0xff]   ;;  %s1340_s12 = smov (!%p194_p4, %s1056_s12), 1  ;;  %v1002_v37 = vld [vmem:[%s1332_s1 + $0x1cc] ss:$16 sps:$4 sm:$0xff]   ;;  %v288_v7 = vshrl.u32 %v287_v6, 7 }
  0x19   : > { %v1004_v38 = vld [vmem:[%s1332_s1 + $0x1c0] ss:$16 sps:$4 sm:$0xff]   ;;  %v1005_v39 = vld [vmem:[%s1332_s1 + $0x1c8] ss:$16 sps:$4 sm:$0xff]   ;;  %v1006_v40 = vld [vmem:[%s1332_s1 + $0x1a4] ss:$16 sps:$4 sm:$0xff]  }
  0x1a   : > { %634 = vmatpush1.bf16.msra.mxu0 %v968_v14  ;;  %677 = vmatpush1.bf16.msra.mxu1 %v969_v15  ;;  %s916_s29 = sshll.u32 %s1340_s12, 5  ;;  %v1008_v41 = vld [vmem:[%s1332_s1 + $0x1ac] ss:$16 sps:$4 sm:$0xff]   ;;  %v1010_v42 = vld [vmem:[%s1332_s1 + $0x1a0] ss:$16 sps:$4 sm:$0xff]   ;;  %v289_v8 = vsub.s32 0, %v288_v7 }
  0x1b   : > { %635 = vmatprep.subr.bf16.mxu0 %v970_v16  ;;  %678 = vmatprep.subr.bf16.mxu1 %v972_v17  ;;  %v1011_v43 = vld [vmem:[%s1332_s1 + $0x1a8] ss:$16 sps:$4 sm:$0xff]   ;;  %s1248_s11 = scalar_lea.vmem %s1331_s0, %s916_s29  ;;  %v1012_v44 = vld [vmem:[%s1332_s1 + $0x184] ss:$16 sps:$4 sm:$0xff]   ;;  %v1014_v45 = vld [vmem:[%s1332_s1 + $0x18c] ss:$16 sps:$4 sm:$0xff]   ;;  %s213_s17 = scalar_lea.vmem %s1334_s3, %s916_s29 }
  0x1c   : > { %v216_v46 = vld [vmem:[%s1248_s11 + $0x8] sm:$0xff]  ;;  %v218_v47 = vld [vmem:[%s1248_s11 + $0x18] sm:$0xff]  ;;  %v1016_v48 = vld [vmem:[%s1332_s1 + $0x180] ss:$16 sps:$4 sm:$0xff]   ;;  %v297_v9 = vsub.s32 2, %v288_v7  ;;  %v293_v10 = vsub.s32 1, %v288_v7 }
  0x1d   : > { %v1017_v49 = vld [vmem:[%s1332_s1 + $0x188] ss:$16 sps:$4 sm:$0xff]   ;;  %v220_v50 = vpack.c.bf16 %v218_v47, %v216_v46  ;;  %v1018_v51 = vld [vmem:[%s1332_s1 + $0x164] ss:$16 sps:$4 sm:$0xff]   ;;  %v1020_v52 = vld [vmem:[%s1332_s1 + $0x16c] ss:$16 sps:$4 sm:$0xff]  }
  0x1e   : > { %636 = vmatpush1.bf16.msra.mxu0 %v974_v18  ;;  %679 = vmatpush1.bf16.msra.mxu1 %v975_v19  ;;  %v1022_v53 = vld [vmem:[%s1332_s1 + $0x160] ss:$16 sps:$4 sm:$0xff]   ;;  %v1023_v54 = vld [vmem:[%s1332_s1 + $0x168] ss:$16 sps:$4 sm:$0xff]   ;;  %v1024_v55 = vld [vmem:[%s1332_s1 + $0x144] ss:$16 sps:$4 sm:$0xff]  }
  0x1f   : > { %637 = vmatprep.subr.bf16.mxu0 %v976_v20  ;;  %680 = vmatprep.subr.bf16.mxu1 %v978_v21  ;;  %v1026_v56 = vld [vmem:[%s1332_s1 + $0x14c] ss:$16 sps:$4 sm:$0xff]   ;;  %v1028_v57 = vld [vmem:[%s1332_s1 + $0x140] ss:$16 sps:$4 sm:$0xff]   ;;  %v1029_v58 = vld [vmem:[%s1332_s1 + $0x148] ss:$16 sps:$4 sm:$0xff]  }
  0x20   : > { %659 = vmatprep.mubr.bf16.mxu0 %v220_v50  ;;  %702 = vmatprep.mubr.bf16.mxu1 %v220_v50  ;;  %v1030_v59 = vld [vmem:[%s1332_s1 + $0x124] ss:$16 sps:$4 sm:$0xff]   ;;  %v1032_v60 = vld [vmem:[%s1332_s1 + $0x12c] ss:$16 sps:$4 sm:$0xff]   ;;  %v1034_v61 = vld [vmem:[%s1332_s1 + $0x120] ss:$16 sps:$4 sm:$0xff]  }
  0x21   : > { %v1035_v62 = vld [vmem:[%s1332_s1 + $0x128] ss:$16 sps:$4 sm:$0xff]   ;;  %v1036_v63 = vld [vmem:[%s1332_s1 + $0x104] ss:$16 sps:$4 sm:$0xff]   ;;  %v1038_v0 = vld [vmem:[%s1332_s1 + $0x10c] ss:$16 sps:$4 sm:$0xff]  }
  0x22   : > { %638 = vmatpush1.bf16.msra.mxu0 %v980_v22  ;;  %681 = vmatpush1.bf16.msra.mxu1 %v981_v23  ;;  %v1040_v1 = vld [vmem:[%s1332_s1 + $0x100] ss:$16 sps:$4 sm:$0xff]   ;;  %v1041_v2 = vld [vmem:[%s1332_s1 + $0x108] ss:$16 sps:$4 sm:$0xff]   ;;  %v301_v11 = vsub.s32 3, %v288_v7 }
  0x23   : > { %639 = vmatprep.subr.bf16.mxu0 %v982_v24  ;;  %682 = vmatprep.subr.bf16.mxu1 %v984_v25  ;;  %v215_v3 = vld [vmem:[%s1248_s11] sm:$0xff]  ;;  %v217_v4 = vld [vmem:[%s1248_s11 + $0x10] sm:$0xff] }
  0x24   : > { %v219_v5 = vpack.c.bf16 %v217_v4, %v215_v3  ;;  %v285_v12 = vld [vmem:[%s1333_s2] sm:$0xf] }
  0x25   : > { %v290_v13 = vrot.slane %v285_v12, %v289_v8  ;;  %v298_v14 = vrot.slane %v285_v12, %v297_v9  ;;  %v294_v15 = vrot.slane %v285_v12, %v293_v10  ;;  %v302_v16 = vrot.slane %v285_v12, %v301_v11 }
  0x26   : > { %640 = vmatpush1.bf16.msra.mxu0 %v986_v26  ;;  %683 = vmatpush1.bf16.msra.mxu1 %v987_v27 }
  0x27   : > { %641 = vmatprep.subr.bf16.mxu0 %v988_v28  ;;  %684 = vmatprep.subr.bf16.mxu1 %v990_v29 }
  0x2a   : > { %642 = vmatpush1.bf16.msra.mxu0 %v992_v30  ;;  %685 = vmatpush1.bf16.msra.mxu1 %v993_v31 }
  0x2b   : > { %643 = vmatprep.subr.bf16.mxu0 %v994_v32  ;;  %686 = vmatprep.subr.bf16.mxu1 %v996_v33 }
  0x2e   : > { %644 = vmatpush2.bf16.msra.mxu0 %v998_v34  ;;  %687 = vmatpush2.bf16.msra.mxu1 %v999_v35 }
  0x2f   : > { %645 = vmatprep.subr.bf16.mxu0 %v1000_v36  ;;  %688 = vmatprep.subr.bf16.mxu1 %v1002_v37 }
  0x32   : > { %646 = vmatpush2.bf16.msra.mxu0 %v1004_v38  ;;  %689 = vmatpush2.bf16.msra.mxu1 %v1005_v39 }
  0x33   : > { %647 = vmatprep.subr.bf16.mxu0 %v1006_v40  ;;  %690 = vmatprep.subr.bf16.mxu1 %v1008_v41 }
  0x36   : > { %648 = vmatpush2.bf16.msra.mxu0 %v1010_v42  ;;  %691 = vmatpush2.bf16.msra.mxu1 %v1011_v43 }
  0x37   : > { %649 = vmatprep.subr.bf16.mxu0 %v1012_v44  ;;  %692 = vmatprep.subr.bf16.mxu1 %v1014_v45 }
  0x3a   : > { %650 = vmatpush2.bf16.msra.mxu0 %v1016_v48  ;;  %693 = vmatpush2.bf16.msra.mxu1 %v1017_v49 }
  0x3b   : > { %651 = vmatprep.subr.bf16.mxu0 %v1018_v51  ;;  %694 = vmatprep.subr.bf16.mxu1 %v1020_v52 }
  0x3e   : > { %652 = vmatpush2.bf16.msra.mxu0 %v1022_v53  ;;  %695 = vmatpush2.bf16.msra.mxu1 %v1023_v54 }
  0x3f   : > { %653 = vmatprep.subr.bf16.mxu0 %v1024_v55  ;;  %696 = vmatprep.subr.bf16.mxu1 %v1026_v56 }
  0x42   : > { %654 = vmatpush2.bf16.msra.mxu0 %v1028_v57  ;;  %697 = vmatpush2.bf16.msra.mxu1 %v1029_v58 }
  0x43   : > { %655 = vmatprep.subr.bf16.mxu0 %v1030_v59  ;;  %698 = vmatprep.subr.bf16.mxu1 %v1032_v60 }
  0x46   : > { %656 = vmatpush2.bf16.msra.mxu0 %v1034_v61  ;;  %699 = vmatpush2.bf16.msra.mxu1 %v1035_v62 }
  0x47   : > { %657 = vmatprep.subr.bf16.mxu0 %v1036_v63  ;;  %700 = vmatprep.subr.bf16.mxu1 %v1038_v0 }
  0x4a   : > { %658 = vmatpush2.bf16.msra.mxu0 %v1040_v1  ;;  %701 = vmatpush2.bf16.msra.mxu1 %v1041_v2 }
  0x4d   : > { %660 = vmatmul.mubr.bf16.vlgmr.msra.gmra.mxu0 %v219_v5  ;;  %703 = vmatmul.mubr.bf16.vlgmr.msra.gmra.mxu1 %v219_v5 }
 0x10d   : > { %v661_v17 = vpop.f32.mrf.mxu0  ;;  %v704_v18 = vpop.f32.mrf.mxu1 }
 0x10e   : > { %v662_v21 = vadd.f32 %v661_v17, %v290_v13  ;;  %v705_v22 = vadd.f32 %v704_v18, %v298_v14 }
 0x10f   : > { %v663_v19 = vpop.f32.mrf.mxu0  ;;  %v706_v20 = vpop.f32.mrf.mxu1 }
 0x110   : > { %v664_v23 = vadd.f32 %v663_v19, %v294_v15  ;;  %v707_v24 = vadd.f32 %v706_v20, %v302_v16 }
 0x111   : > { %v665_v25 = vpop.f32.mrf.mxu0  ;;  %v708_v26 = vpop.f32.mrf.mxu1 }
 0x112   : > { %v918_v27 = vpack.c.bf16 %v664_v23, %v662_v21  ;;  %v919_v28 = vpack.c.bf16 %v707_v24, %v705_v22  ;;  %v666_v31 = vadd.f32 %v665_v25, %v290_v13  ;;  %v709_v32 = vadd.f32 %v708_v26, %v298_v14 }
 0x113   : > { %v667_v29 = vpop.f32.mrf.mxu0  ;;  %v710_v30 = vpop.f32.mrf.mxu1 }
 0x114   : > { %737 = vst [vmem:[%s213_s17] sm:$0xff] %v918_v27  ;;  %738 = vst [vmem:[%s213_s17 + $0x8] sm:$0xff] %v919_v28  ;;  %v668_v33 = vadd.f32 %v667_v29, %v294_v15  ;;  %v711_v34 = vadd.f32 %v710_v30, %v302_v16 }
 0x116   : > { %v920_v35 = vpack.c.bf16 %v668_v33, %v666_v31  ;;  %v921_v36 = vpack.c.bf16 %v711_v34, %v709_v32 }
 0x118   : > { %739 = vst [vmem:[%s213_s17 + $0x10] sm:$0xff] %v920_v35  ;;  %740 = vst [vmem:[%s213_s17 + $0x18] sm:$0xff] %v921_v36 }
 0x119 PF: > { %s13_s14 = sadd.s32 1, %s1064_s14   ;;  %s1335_s12 = smov %s1060_s13 }
 0x11a   : > { %p10_p5 = scmp.ge.s32.totalorder %s13_s14, 4   ;;  %s1336_s13 = smov %s1338_s15 }
 0x11c   :  { %12 = sbr.rel (!%p10_p5) target bundleno = 2 (0x2), region = 62 }

// kernel: parallel_attention_layer.6
= control target key start
LH: loop header
LB: loop body
LE: loop exit
PB: predicated region body
PF: predicated region fallthrough
CT: control target
= control target key end

     0   :  { %8 = vsyncpa [#allocation3], 0  ;;  %s1130_s12 = smov 0   ;;  %s1132_s13 = smov 0   ;;  %s1203_s0 = inlined_call_operand.vmem [shape: f32[2,8,256], index: 0, kind: input, shape index: {}]   ;;  %s1204_s1 = inlined_call_operand.hbm [shape: bf16[256,512], index: 1, kind: input, shape index: {}]   ;;  %s1205_s2 = inlined_call_operand.vmem [shape: f32[1,512], index: 2, kind: input, shape index: {}]   ;;  %s1206_s3 = inlined_call_operand.vmem [shape: bf16[2,8,512], index: 3, kind: output, shape index: {}]  }
   0x1   :  { %s1134_s14 = smov 0  }
   0x2 LB: > { %s837_s15 = sadd.s32 4294967295, %s1105_s14   ;;  %s26_s16 = sadd.s32 1, %s1101_s13  ;;  %s1105_s14 = sphi %s1134_s14, %s14_s14   ;;  %s1101_s13 = sphi %s1132_s13, %s1210_s13   ;;  %s1097_s12 = sphi %s1130_s12, %s1209_s12  }
   0x3   : > { %p28_p0 = scmp.ge.s32.totalorder %s26_s16, 2  ;;  %p839_p1 = scmp.ge.s32.totalorder %s1105_s14, 1 }
   0x4   : > { %p129_p2 = scmp.lt.s32.totalorder %s1105_s14, 3  ;;  %p1155_p4 = scmp.eq.s32.totalorder %s837_s15, 0 }
   0x5   : > { %s1212_s16 = smov (%p28_p0, %s26_s16), 0  ;;  %s1107_s19 = smov [#allocation2]  }
   0x6   : > { %p1151_p3 = pnand %p839_p1, %p129_p2  ;;  %s141_s20 = sshll.u32 %s1107_s19, 4  ;;  %s142_s20 = int_to_ptr.vmem [resolvable:$true] %s141_s20 }
   0x7   : > { %s1064_s21 = scalar_lea.vmem %s142_s20, 8192  ;;  %p1072_p11 = scmp.lt.s32.totalorder %s142_s20, %s142_s20 }
   0x8   : > { %p924_p5 = pneg %p1151_p3  ;;  %p1065_p8 = scmp.ne.s32.totalorder %s142_s20, %s1064_s21 }
   0x9   : > { %p1073_p12 = scmp.lt.s32.totalorder %s1064_s21, %s1064_s21 }
   0xa   : > { %p925_p6 = pnand %p1155_p4, %p924_p5 }
   0xb   : > { %p1074_p13 = por %p1073_p12, %p1072_p11 }
   0xc   : > { %p1055_p7 = pneg %p925_p6 }
   0xe   : > { %p1067_p9 = pnand %p1065_p8, %p1055_p7 }
  0x10   : > { %p1068_p10 = pneg %p1067_p9 }
  0x12   : > { %p1075_p0 = pnand %p1074_p13, %p1068_p10 }
  0x14   : > { %1078 = shalt.err (!%p1075_p0)
}
  0x15   : > { %s1108_s22 = smov 256   ;;  %s1109_s23 = smov 16  }
  0x16   : > { %927 = dma.hbm_to_vmem [thread:$0]  (!%p925_p6), %s1204_s1, 8192, %s142_s20, [#allocation3], %s1108_s22, %s1108_s22, %s1109_s23  }
  0x17   : > { %172 = sbr.rel (%p1151_p3) target bundleno = 294 (0x126), region = 32 }
  0x1c   : > { %1092 = dma.done.wait (%p1155_p4), [#allocation3], 8192  }
  0x1d   : > { %1094 = vsyncadd (%p1155_p4), [#allocation3], 4294959104  ;;  %v957_v0 = vld [vmem:[#allocation2 + $0xe4] ss:$16 sps:$4 sm:$0xff]   ;;  %v959_v1 = vld [vmem:[#allocation2 + $0xec] ss:$16 sps:$4 sm:$0xff]  }
  0x1e   : > { %632 = vmatprep.subr.bf16.mxu0 %v957_v0  ;;  %v961_v2 = vld [vmem:[#allocation2 + $0xe0] ss:$16 sps:$4 sm:$0xff]   ;;  %v962_v3 = vld [vmem:[#allocation2 + $0xe8] ss:$16 sps:$4 sm:$0xff]   ;;  %673 = vmatprep.subr.bf16.mxu1 %v959_v1  ;;  %v963_v4 = vld [vmem:[#allocation2 + $0xc4] ss:$16 sps:$4 sm:$0xff]  }
  0x1f   : > { %633 = vmatpush1.bf16.msra.mxu0 %v961_v2  ;;  %674 = vmatpush1.bf16.msra.mxu1 %v962_v3  ;;  %v965_v5 = vld [vmem:[#allocation2 + $0xcc] ss:$16 sps:$4 sm:$0xff]   ;;  %v967_v6 = vld [vmem:[#allocation2 + $0xc0] ss:$16 sps:$4 sm:$0xff]   ;;  %v968_v7 = vld [vmem:[#allocation2 + $0xc8] ss:$16 sps:$4 sm:$0xff]  }
  0x20   : > { %634 = vmatprep.subr.bf16.mxu0 %v963_v4  ;;  %675 = vmatprep.subr.bf16.mxu1 %v965_v5  ;;  %v969_v8 = vld [vmem:[#allocation2 + $0xa4] ss:$16 sps:$4 sm:$0xff]   ;;  %v971_v9 = vld [vmem:[#allocation2 + $0xac] ss:$16 sps:$4 sm:$0xff]   ;;  %v973_v10 = vld [vmem:[#allocation2 + $0xa0] ss:$16 sps:$4 sm:$0xff]   ;;  %v292_v4 = vlaneseq }
  0x21   : > { %v974_v11 = vld [vmem:[#allocation2 + $0xa8] ss:$16 sps:$4 sm:$0xff]   ;;  %v975_v12 = vld [vmem:[#allocation2 + $0x84] ss:$16 sps:$4 sm:$0xff]   ;;  %v977_v13 = vld [vmem:[#allocation2 + $0x8c] ss:$16 sps:$4 sm:$0xff]  }
  0x22   : > { %v979_v14 = vld [vmem:[#allocation2 + $0x80] ss:$16 sps:$4 sm:$0xff]   ;;  %v980_v15 = vld [vmem:[#allocation2 + $0x88] ss:$16 sps:$4 sm:$0xff]   ;;  %v981_v16 = vld [vmem:[#allocation2 + $0x64] ss:$16 sps:$4 sm:$0xff]  }
  0x23   : > { %635 = vmatpush1.bf16.msra.mxu0 %v967_v6  ;;  %676 = vmatpush1.bf16.msra.mxu1 %v968_v7  ;;  %v983_v17 = vld [vmem:[#allocation2 + $0x6c] ss:$16 sps:$4 sm:$0xff]   ;;  %v985_v18 = vld [vmem:[#allocation2 + $0x60] ss:$16 sps:$4 sm:$0xff]   ;;  %v986_v19 = vld [vmem:[#allocation2 + $0x68] ss:$16 sps:$4 sm:$0xff]  }
  0x24   : > { %636 = vmatprep.subr.bf16.mxu0 %v969_v8  ;;  %677 = vmatprep.subr.bf16.mxu1 %v971_v9  ;;  %v987_v20 = vld [vmem:[#allocation2 + $0x44] ss:$16 sps:$4 sm:$0xff]   ;;  %v989_v21 = vld [vmem:[#allocation2 + $0x4c] ss:$16 sps:$4 sm:$0xff]   ;;  %v991_v22 = vld [vmem:[#allocation2 + $0x40] ss:$16 sps:$4 sm:$0xff]  }
  0x25   : > { %v992_v23 = vld [vmem:[#allocation2 + $0x48] ss:$16 sps:$4 sm:$0xff]   ;;  %v993_v24 = vld [vmem:[#allocation2 + $0x24] ss:$16 sps:$4 sm:$0xff]   ;;  %v995_v25 = vld [vmem:[#allocation2 + $0x2c] ss:$16 sps:$4 sm:$0xff]  }
  0x26   : > { %v997_v26 = vld [vmem:[#allocation2 + $0x20] ss:$16 sps:$4 sm:$0xff]   ;;  %v998_v27 = vld [vmem:[#allocation2 + $0x28] ss:$16 sps:$4 sm:$0xff]   ;;  %v999_v28 = vld [vmem:[#allocation2 + $0x4] ss:$16 sps:$4 sm:$0xff]  }
  0x27   : > { %637 = vmatpush1.bf16.msra.mxu0 %v973_v10  ;;  %678 = vmatpush1.bf16.msra.mxu1 %v974_v11  ;;  %v1001_v29 = vld [vmem:[#allocation2 + $0xc] ss:$16 sps:$4 sm:$0xff]   ;;  %v1003_v30 = vld [vmem:[#allocation2] ss:$16 sps:$4 sm:$0xff]   ;;  %v1004_v31 = vld [vmem:[#allocation2 + $0x8] ss:$16 sps:$4 sm:$0xff]  }
  0x28   : > { %638 = vmatprep.subr.bf16.mxu0 %v975_v12  ;;  %679 = vmatprep.subr.bf16.mxu1 %v977_v13  ;;  %v1005_v32 = vld [vmem:[#allocation2 + $0x1e4] ss:$16 sps:$4 sm:$0xff]   ;;  %v1007_v33 = vld [vmem:[#allocation2 + $0x1ec] ss:$16 sps:$4 sm:$0xff]   ;;  %p204_p1 = scmp.lt.s32.totalorder %s1097_s12, 1  ;;  %v293_v5 = vshrl.u32 %v292_v4, 7 }
  0x29   : > { %v1009_v34 = vld [vmem:[#allocation2 + $0x1e0] ss:$16 sps:$4 sm:$0xff]   ;;  %v1010_v35 = vld [vmem:[#allocation2 + $0x1e8] ss:$16 sps:$4 sm:$0xff]   ;;  %v1011_v36 = vld [vmem:[#allocation2 + $0x1c4] ss:$16 sps:$4 sm:$0xff]  }
  0x2a   : > { %v1013_v37 = vld [vmem:[#allocation2 + $0x1cc] ss:$16 sps:$4 sm:$0xff]   ;;  %s1214_s12 = smov (!%p204_p1, %s1097_s12), 1  ;;  %v1015_v38 = vld [vmem:[#allocation2 + $0x1c0] ss:$16 sps:$4 sm:$0xff]   ;;  %v294_v6 = vsub.s32 0, %v293_v5 }
  0x2b   : > { %639 = vmatpush1.bf16.msra.mxu0 %v979_v14  ;;  %680 = vmatpush1.bf16.msra.mxu1 %v980_v15  ;;  %v1016_v39 = vld [vmem:[#allocation2 + $0x1c8] ss:$16 sps:$4 sm:$0xff]   ;;  %v1017_v40 = vld [vmem:[#allocation2 + $0x1a4] ss:$16 sps:$4 sm:$0xff]   ;;  %v1019_v41 = vld [vmem:[#allocation2 + $0x1ac] ss:$16 sps:$4 sm:$0xff]  }
  0x2c   : > { %640 = vmatprep.subr.bf16.mxu0 %v981_v16  ;;  %681 = vmatprep.subr.bf16.mxu1 %v983_v17  ;;  %s916_s26 = sshll.u32 %s1214_s12, 4  ;;  %v1021_v42 = vld [vmem:[#allocation2 + $0x1a0] ss:$16 sps:$4 sm:$0xff]   ;;  %v1022_v43 = vld [vmem:[#allocation2 + $0x1a8] ss:$16 sps:$4 sm:$0xff]   ;;  %v302_v7 = vsub.s32 2, %v293_v5 }
  0x2d   : > { %v1023_v44 = vld [vmem:[#allocation2 + $0x184] ss:$16 sps:$4 sm:$0xff]   ;;  %s1182_s29 = scalar_lea.vmem %s1203_s0, %s916_s26  ;;  %v1025_v45 = vld [vmem:[#allocation2 + $0x18c] ss:$16 sps:$4 sm:$0xff]   ;;  %v1027_v47 = vld [vmem:[#allocation2 + $0x180] ss:$16 sps:$4 sm:$0xff]   ;;  %s221_s7 = scalar_lea.vmem %s1206_s3, %s916_s26 }
  0x2e   : > { %v223_v46 = vld [vmem:[%s1182_s29 + $0x8] sm:$0xff]  ;;  %v1029_v50 = vld [vmem:[#allocation2 + $0x164] ss:$16 sps:$4 sm:$0xff]   ;;  %v1033_v52 = vld [vmem:[#allocation2 + $0x160] ss:$16 sps:$4 sm:$0xff]   ;;  %v298_v8 = vsub.s32 1, %v293_v5 }
  0x2f   : > { %641 = vmatpush1.bf16.msra.mxu0 %v985_v18  ;;  %682 = vmatpush1.bf16.msra.mxu1 %v986_v19  ;;  %v1028_v48 = vld [vmem:[#allocation2 + $0x188] ss:$16 sps:$4 sm:$0xff]   ;;  %v225_v49 = vpack.c.bf16 %v223_v46, %v223_v46  ;;  %v1031_v51 = vld [vmem:[#allocation2 + $0x16c] ss:$16 sps:$4 sm:$0xff]   ;;  %v1035_v54 = vld [vmem:[#allocation2 + $0x144] ss:$16 sps:$4 sm:$0xff]  }
  0x30   : > { %642 = vmatprep.subr.bf16.mxu0 %v987_v20  ;;  %683 = vmatprep.subr.bf16.mxu1 %v989_v21  ;;  %v1034_v53 = vld [vmem:[#allocation2 + $0x168] ss:$16 sps:$4 sm:$0xff]   ;;  %v1037_v55 = vld [vmem:[#allocation2 + $0x14c] ss:$16 sps:$4 sm:$0xff]   ;;  %v1039_v56 = vld [vmem:[#allocation2 + $0x140] ss:$16 sps:$4 sm:$0xff]  }
  0x31   : > { %664 = vmatprep.mubr.bf16.mxu0 %v225_v49  ;;  %705 = vmatprep.mubr.bf16.mxu1 %v225_v49  ;;  %v1040_v57 = vld [vmem:[#allocation2 + $0x148] ss:$16 sps:$4 sm:$0xff]   ;;  %v1041_v58 = vld [vmem:[#allocation2 + $0x124] ss:$16 sps:$4 sm:$0xff]   ;;  %v1043_v59 = vld [vmem:[#allocation2 + $0x12c] ss:$16 sps:$4 sm:$0xff]  }
  0x32   : > { %v1045_v60 = vld [vmem:[#allocation2 + $0x120] ss:$16 sps:$4 sm:$0xff]   ;;  %v1046_v61 = vld [vmem:[#allocation2 + $0x128] ss:$16 sps:$4 sm:$0xff]   ;;  %v1047_v62 = vld [vmem:[#allocation2 + $0x104] ss:$16 sps:$4 sm:$0xff]  }
  0x33   : > { %643 = vmatpush1.bf16.msra.mxu0 %v991_v22  ;;  %684 = vmatpush1.bf16.msra.mxu1 %v992_v23  ;;  %v1049_v63 = vld [vmem:[#allocation2 + $0x10c] ss:$16 sps:$4 sm:$0xff]   ;;  %v1051_v0 = vld [vmem:[#allocation2 + $0x100] ss:$16 sps:$4 sm:$0xff]   ;;  %v1052_v1 = vld [vmem:[#allocation2 + $0x108] ss:$16 sps:$4 sm:$0xff]  }
  0x34   : > { %644 = vmatprep.subr.bf16.mxu0 %v993_v24  ;;  %685 = vmatprep.subr.bf16.mxu1 %v995_v25  ;;  %v222_v2 = vld [vmem:[%s1182_s29] sm:$0xff]  ;;  %v306_v9 = vsub.s32 3, %v293_v5 }
  0x35   : > { %v224_v3 = vpack.c.bf16 %v222_v2, %v222_v2  ;;  %v290_v10 = vld [vmem:[%s1205_s2] sm:$0xf] }
  0x36   : > { %v295_v11 = vrot.slane %v290_v10, %v294_v6  ;;  %v303_v12 = vrot.slane %v290_v10, %v302_v7  ;;  %v299_v13 = vrot.slane %v290_v10, %v298_v8  ;;  %v307_v14 = vrot.slane %v290_v10, %v306_v9 }
  0x37   : > { %645 = vmatpush1.bf16.msra.mxu0 %v997_v26  ;;  %686 = vmatpush1.bf16.msra.mxu1 %v998_v27 }
  0x38   : > { %646 = vmatprep.subr.bf16.mxu0 %v999_v28  ;;  %687 = vmatprep.subr.bf16.mxu1 %v1001_v29 }
  0x3b   : > { %647 = vmatpush1.bf16.msra.mxu0 %v1003_v30  ;;  %688 = vmatpush1.bf16.msra.mxu1 %v1004_v31 }
  0x3c   : > { %648 = vmatprep.subr.bf16.mxu0 %v1005_v32  ;;  %689 = vmatprep.subr.bf16.mxu1 %v1007_v33 }
  0x3f   : > { %649 = vmatpush2.bf16.msra.mxu0 %v1009_v34  ;;  %690 = vmatpush2.bf16.msra.mxu1 %v1010_v35 }
  0x40   : > { %650 = vmatprep.subr.bf16.mxu0 %v1011_v36  ;;  %691 = vmatprep.subr.bf16.mxu1 %v1013_v37 }
  0x43   : > { %651 = vmatpush2.bf16.msra.mxu0 %v1015_v38  ;;  %692 = vmatpush2.bf16.msra.mxu1 %v1016_v39 }
  0x44   : > { %652 = vmatprep.subr.bf16.mxu0 %v1017_v40  ;;  %693 = vmatprep.subr.bf16.mxu1 %v1019_v41 }
  0x47   : > { %653 = vmatpush2.bf16.msra.mxu0 %v1021_v42  ;;  %694 = vmatpush2.bf16.msra.mxu1 %v1022_v43 }
  0x48   : > { %654 = vmatprep.subr.bf16.mxu0 %v1023_v44  ;;  %695 = vmatprep.subr.bf16.mxu1 %v1025_v45 }
  0x4b   : > { %655 = vmatpush2.bf16.msra.mxu0 %v1027_v47  ;;  %696 = vmatpush2.bf16.msra.mxu1 %v1028_v48 }
  0x4c   : > { %656 = vmatprep.subr.bf16.mxu0 %v1029_v50  ;;  %697 = vmatprep.subr.bf16.mxu1 %v1031_v51 }
  0x4f   : > { %657 = vmatpush2.bf16.msra.mxu0 %v1033_v52  ;;  %698 = vmatpush2.bf16.msra.mxu1 %v1034_v53 }
  0x50   : > { %658 = vmatprep.subr.bf16.mxu0 %v1035_v54  ;;  %699 = vmatprep.subr.bf16.mxu1 %v1037_v55 }
  0x53   : > { %659 = vmatpush2.bf16.msra.mxu0 %v1039_v56  ;;  %700 = vmatpush2.bf16.msra.mxu1 %v1040_v57 }
  0x54   : > { %660 = vmatprep.subr.bf16.mxu0 %v1041_v58  ;;  %701 = vmatprep.subr.bf16.mxu1 %v1043_v59 }
  0x57   : > { %661 = vmatpush2.bf16.msra.mxu0 %v1045_v60  ;;  %702 = vmatpush2.bf16.msra.mxu1 %v1046_v61 }
  0x58   : > { %662 = vmatprep.subr.bf16.mxu0 %v1047_v62  ;;  %703 = vmatprep.subr.bf16.mxu1 %v1049_v63 }
  0x5b   : > { %663 = vmatpush2.bf16.msra.mxu0 %v1051_v0  ;;  %704 = vmatpush2.bf16.msra.mxu1 %v1052_v1 }
  0x5e   : > { %665 = vmatmul.mubr.bf16.vlgmr.msra.gmra.mxu0 %v224_v3  ;;  %706 = vmatmul.mubr.bf16.vlgmr.msra.gmra.mxu1 %v224_v3 }
 0x11e   : > { %v666_v15 = vpop.f32.mrf.mxu0  ;;  %v707_v16 = vpop.f32.mrf.mxu1 }
 0x11f   : > { %v667_v19 = vadd.f32 %v666_v15, %v295_v11  ;;  %v708_v20 = vadd.f32 %v707_v16, %v303_v12 }
 0x120   : > { %v668_v17 = vpop.f32.mrf.mxu0  ;;  %v709_v18 = vpop.f32.mrf.mxu1 }
 0x121   : > { %v669_v21 = vadd.f32 %v668_v17, %v299_v13  ;;  %v710_v22 = vadd.f32 %v709_v18, %v307_v14 }
 0x122   : > { %v670_v23 = vpop.f32.mrf.mxu0  ;;  %v711_v24 = vpop.f32.mrf.mxu1 }
 0x123   : > { %v918_v25 = vpack.c.bf16 %v669_v21, %v667_v19  ;;  %v919_v26 = vpack.c.bf16 %v710_v22, %v708_v20 }
 0x124   : > { %v671_v27 = vpop.f32.mrf.mxu0  ;;  %v712_v28 = vpop.f32.mrf.mxu1 }
 0x125   : > { %730 = vst [vmem:[%s221_s7] sm:$0xff] %v918_v25  ;;  %731 = vst [vmem:[%s221_s7 + $0x8] sm:$0xff] %v919_v26 }
 0x126 PF: > { %s14_s14 = sadd.s32 1, %s1105_s14   ;;  %s1209_s12 = smov %s1101_s13 }
 0x127   : > { %p11_p2 = scmp.ge.s32.totalorder %s14_s14, 4   ;;  %s1210_s13 = smov %s1212_s16 }
 0x129   :  { %13 = sbr.rel (!%p11_p2) target bundleno = 2 (0x2), region = 67 }
 0x12e   :  { %761 = vsyncpa [#allocation3], 1 }
 0x12f   :  { %763 = vsyncpa [#allocation3 + $0x1], 1 }

// kernel: parallel_attention_layer.9
= control target key start
LH: loop header
LB: loop body
LE: loop exit
PB: predicated region body
PF: predicated region fallthrough
CT: control target
= control target key end

     0   :  { %12 = vsyncpa [#allocation3], 0  ;;  %s1726_s24 = smov 0   ;;  %s1728_s25 = smov 0   ;;  %s1959_s0 = inlined_call_operand.vmem [shape: f32[2,8,256], index: 0, kind: input, shape index: {}]   ;;  %s1960_s1 = inlined_call_operand.vmem [shape: bf16[2,8,512], index: 1, kind: input, shape index: {}]   ;;  %s1961_s2 = inlined_call_operand.vmem [shape: bf16[2,8,8], index: 2, kind: input, shape index: {}]   ;;  %s1962_s3 = inlined_call_operand.vmem [shape: f32[2,8,1], index: 3, kind: input, shape index: {}]   ;;  %s1963_s4 = inlined_call_operand.vmem [shape: bf16[256,256], index: 4, kind: input, shape index: {}]   ;;  %s1964_s5 = inlined_call_operand.hbm [shape: bf16[256,256], index: 5, kind: input, shape index: {}]   ;;  %s1965_s6 = inlined_call_operand.vmem [shape: f32[4,256], index: 6, kind: input, shape index: {}]   ;;  %s1966_s7 = inlined_call_operand.vmem [shape: f32[2,8,256], index: 7, kind: output, shape index: {}]  }
   0x1   :  { %s1730_s26 = smov 0  }
   0x2 LB: > { %s1357_s27 = sadd.s32 4294967295, %s1678_s26   ;;  %s30_s28 = sadd.s32 1, %s1674_s25  ;;  %s1678_s26 = sphi %s1730_s26, %s18_s26   ;;  %s1674_s25 = sphi %s1728_s25, %s1970_s25   ;;  %s1670_s24 = sphi %s1726_s24, %s1969_s24  }
   0x3   : > { %p32_p0 = scmp.ge.s32.totalorder %s30_s28, 2  ;;  %p1359_p1 = scmp.ge.s32.totalorder %s1678_s26, 1 }
   0x4   : > { %p236_p2 = scmp.lt.s32.totalorder %s1678_s26, 3  ;;  %p1751_p4 = scmp.eq.s32.totalorder %s1357_s27, 0 }
   0x5   : > { %s1972_s28 = smov (%p32_p0, %s30_s28), 0  ;;  %s1680_s8 = smov [#allocation2]  }
   0x6   : > { %p1747_p3 = pnand %p1359_p1, %p236_p2  ;;  %s251_s9 = sshll.u32 %s1680_s8, 4  ;;  %s252_s9 = int_to_ptr.vmem [resolvable:$true] %s251_s9 }
   0x7   : > { %s1637_s10 = scalar_lea.vmem %s252_s9, 4096  ;;  %p1645_p11 = scmp.lt.s32.totalorder %s252_s9, %s252_s9 }
   0x8   : > { %p1481_p5 = pneg %p1747_p3  ;;  %p1638_p8 = scmp.ne.s32.totalorder %s252_s9, %s1637_s10 }
   0x9   : > { %p1646_p12 = scmp.lt.s32.totalorder %s1637_s10, %s1637_s10 }
   0xa   : > { %p1482_p6 = pnand %p1751_p4, %p1481_p5 }
   0xb   : > { %p1647_p13 = por %p1646_p12, %p1645_p11 }
   0xc   : > { %p1628_p7 = pneg %p1482_p6 }
   0xe   : > { %p1640_p9 = pnand %p1638_p8, %p1628_p7 }
  0x10   : > { %p1641_p10 = pneg %p1640_p9 }
  0x12   : > { %p1648_p0 = pnand %p1647_p13, %p1641_p10 }
  0x14   : > { %1651 = shalt.err (!%p1648_p0)
}
  0x15   : > { %s1681_s11 = smov 128   ;;  %s1682_s12 = smov 8  }
  0x16   : > { %1484 = dma.hbm_to_vmem [thread:$0]  (!%p1482_p6), %s1964_s5, 4096, %s252_s9, [#allocation3], %s1681_s11, %s1681_s11, %s1682_s12  }
  0x17   : > { %310 = sbr.rel (%p1747_p3) target bundleno = 1361 (0x551), region = 48 }
  0x1c   : > { %1665 = dma.done.wait (%p1751_p4), [#allocation3], 4096  }
  0x1d   : > { %1667 = vsyncadd (%p1751_p4), [#allocation3], 4294963200  ;;  %v1683_v0 = vmov 0.0   ;;  %v1518_v1 = vld [vmem:[%s1963_s4 + $0x74] ss:$8 sps:$4 sm:$0xff]   ;;  %p369_p1 = scmp.lt.s32.totalorder %s1670_s24, 1  ;;  %v447_v39 = vlaneseq }
  0x1e   : > { %1465 = vmatprep.subr.bf16.mxu1 %v1683_v0  ;;  %v1520_v2 = vld [vmem:[%s1963_s4 + $0x70] ss:$8 sps:$4 sm:$0xff]   ;;  %625 = vmatprep.subr.bf16.mxu0 %v1518_v1  ;;  %v1521_v3 = vld [vmem:[%s1963_s4 + $0x64] ss:$8 sps:$4 sm:$0xff]   ;;  %v1523_v4 = vld [vmem:[%s1963_s4 + $0x60] ss:$8 sps:$4 sm:$0xff]  }
  0x1f   : > { %626 = vmatpush1.bf16.msra.mxu0 %v1520_v2  ;;  %v1524_v5 = vld [vmem:[%s1963_s4 + $0x54] ss:$8 sps:$4 sm:$0xff]   ;;  %v1526_v6 = vld [vmem:[%s1963_s4 + $0x50] ss:$8 sps:$4 sm:$0xff]   ;;  %v1527_v7 = vld [vmem:[%s1963_s4 + $0x44] ss:$8 sps:$4 sm:$0xff]  }
  0x20   : > { %627 = vmatprep.subr.bf16.mxu0 %v1521_v3  ;;  %v1529_v8 = vld [vmem:[%s1963_s4 + $0x40] ss:$8 sps:$4 sm:$0xff]   ;;  %s1974_s24 = smov (!%p369_p1, %s1670_s24), 1  ;;  %v1530_v9 = vld [vmem:[%s1963_s4 + $0x34] ss:$8 sps:$4 sm:$0xff]   ;;  %vm1684_vm0 = vmmov 0  }
  0x21   : > { %v1532_v10 = vld [vmem:[%s1963_s4 + $0x30] ss:$8 sps:$4 sm:$0xff]   ;;  %s1804_s16 = sshll.u32 %s1974_s24, 4  ;;  %v1533_v11 = vld [vmem:[%s1963_s4 + $0x24] ss:$8 sps:$4 sm:$0xff]   ;;  %1467 = vmatprep.mubr.msk.bf16.mxu1 %vm1684_vm0, %v1683_v0  ;;  %v1902_v40 = vshrl.u32 %v447_v39, 7 }
  0x22   : > { %s1813_s21 = scalar_lea.vmem %s1959_s0, %s1804_s16  ;;  %v1535_v12 = vld [vmem:[%s1963_s4 + $0x20] ss:$8 sps:$4 sm:$0xff]   ;;  %v1536_v13 = vld [vmem:[%s1963_s4 + $0x14] ss:$8 sps:$4 sm:$0xff]   ;;  %v1538_v14 = vld [vmem:[%s1963_s4 + $0x10] ss:$8 sps:$4 sm:$0xff]   ;;  %s1893_s13 = scalar_lea.vmem %s1960_s1, %s1804_s16 }
  0x23   : > { %628 = vmatpush1.bf16.msra.mxu0 %v1523_v4  ;;  %v1825_v15 = vld [vmem:[%s1813_s21 + $0x8] sm:$0xff]  ;;  %v1542_v19 = vld [vmem:[%s1963_s4 + $0xf4] ss:$8 sps:$4 sm:$0xff]   ;;  %v1544_v20 = vld [vmem:[%s1963_s4 + $0xf0] ss:$8 sps:$4 sm:$0xff]   ;;  %v449_v41 = vsub.s32 0, %v1902_v40  ;;  %s405_s30 = scalar_lea.vmem %s1966_s7, %s1804_s16 }
  0x24   : > { %629 = vmatprep.subr.bf16.mxu0 %v1524_v5  ;;  %v1539_v16 = vld [vmem:[%s1963_s4 + $0x4] ss:$8 sps:$4 sm:$0xff]   ;;  %v413_v17 = vpack.c.bf16 %v1825_v15, %v1825_v15  ;;  %v1541_v18 = vld [vmem:[%s1963_s4] ss:$8 sps:$4 sm:$0xff]   ;;  %v1548_v23 = vld [vmem:[%s1963_s4 + $0xd4] ss:$8 sps:$4 sm:$0xff]  }
  0x25   : > { %v1545_v21 = vld [vmem:[%s1963_s4 + $0xe4] ss:$8 sps:$4 sm:$0xff]   ;;  %v1547_v22 = vld [vmem:[%s1963_s4 + $0xe0] ss:$8 sps:$4 sm:$0xff]   ;;  %v1550_v24 = vld [vmem:[%s1963_s4 + $0xd0] ss:$8 sps:$4 sm:$0xff]  }
  0x26   : > { %657 = vmatprep.mubr.bf16.mxu0 %v413_v17  ;;  %v1551_v25 = vld [vmem:[%s1963_s4 + $0xc4] ss:$8 sps:$4 sm:$0xff]   ;;  %v1553_v26 = vld [vmem:[%s1963_s4 + $0xc0] ss:$8 sps:$4 sm:$0xff]   ;;  %v1554_v27 = vld [vmem:[%s1963_s4 + $0xb4] ss:$8 sps:$4 sm:$0xff]  }
  0x27   : > { %630 = vmatpush1.bf16.msra.mxu0 %v1526_v6  ;;  %v1556_v28 = vld [vmem:[%s1963_s4 + $0xb0] ss:$8 sps:$4 sm:$0xff]   ;;  %v1557_v29 = vld [vmem:[%s1963_s4 + $0xa4] ss:$8 sps:$4 sm:$0xff]   ;;  %v1559_v30 = vld [vmem:[%s1963_s4 + $0xa0] ss:$8 sps:$4 sm:$0xff]  }
  0x28   : > { %631 = vmatprep.subr.bf16.mxu0 %v1527_v7  ;;  %v1560_v31 = vld [vmem:[%s1963_s4 + $0x94] ss:$8 sps:$4 sm:$0xff]   ;;  %v1562_v32 = vld [vmem:[%s1963_s4 + $0x90] ss:$8 sps:$4 sm:$0xff]   ;;  %v1563_v33 = vld [vmem:[%s1963_s4 + $0x84] ss:$8 sps:$4 sm:$0xff]  }
  0x29   : > { %v1565_v34 = vld [vmem:[%s1963_s4 + $0x80] ss:$8 sps:$4 sm:$0xff]   ;;  %v453_v43 = vsub.s32 4, %v1902_v40  ;;  %v1685_v58 = vmov 0   ;;  %s1368_s15 = sshll.u32 %s1974_s24, 2  ;;  %vm718_vm3 = vcmask 64512  }
  0x2a   : > { %v1884_v35 = vld [vmem:[%s1813_s21] sm:$0xff]  ;;  %1517 = vset.pattern.permute.xlu0 %v1685_v58  ;;  %s389_s19 = scalar_lea.vmem %s1961_s2, %s1368_s15  ;;  %vm732_vm4 = vcmask 1043456   ;;  %s1369_s20 = sshll.u32 %s1974_s24, 3 }
  0x2b   : > { %632 = vmatpush1.bf16.msra.mxu0 %v1529_v8  ;;  %v412_v36 = vpack.c.bf16 %v1884_v35, %v1884_v35  ;;  %v668_v37 = vld [vmem:[%s1893_s13] sm:$0xff]  ;;  %s396_s27 = scalar_lea.vmem %s1962_s3, %s1369_s20 }
  0x2c   : > { %633 = vmatprep.subr.bf16.mxu0 %v1530_v9  ;;  %v1405_v38 = vcombine.high %v668_v37, %v668_v37  ;;  %v1908_v42 = vld [vmem:[%s1965_s6] sm:$0xff] }
  0x2d   : > { %v450_v44 = vrot.slane %v1908_v42, %v449_v41  ;;  %v454_v45 = vrot.slane %v1908_v42, %v453_v43  ;;  %v670_v59 = vld [vmem:[%s389_s19] sm:$0xf]  ;;  %v1586_v43 = vld [vmem:[#allocation2 + $0x10] ss:$8 sps:$4 sm:$0xff]  }
  0x2e   : > { %1466 = vmatpush3.bf16.xpose.msra.mxu1 %v1405_v38  ;;  %vm671_vm1 = vcmp.ne.bf16.partialorder %v670_v59, 0  ;;  %v1585_v38 = vld [vmem:[#allocation2 + $0x24] ss:$8 sps:$4 sm:$0xff]   ;;  %v1583_v39 = vld [vmem:[#allocation2 + $0x20] ss:$8 sps:$4 sm:$0xff]  }
  0x2f   : > { %634 = vmatpush1.bf16.msra.mxu0 %v1532_v10  ;;  %1471 = vmatprep.subr.bf16.mxu1 %v1683_v0  ;;  %v460_v46 = vrot.slane %v450_v44, %v449_v41  ;;  %v464_v47 = vrot.slane %v454_v45, %v449_v41  ;;  %v714_v60 = vsel %vm671_vm1, 65537, %v1685_v58  ;;  %v669_v10 = vld [vmem:[%s1893_s13 + $0x8] sm:$0xff]  ;;  %v1588_v41 = vld [vmem:[#allocation2 + $0x14] ss:$8 sps:$4 sm:$0xff]   ;;  %v1610_v59 = vld [vmem:[#allocation2 + $0x90] ss:$8 sps:$4 sm:$0xff]  }
  0x30   : > { %635 = vmatprep.subr.bf16.mxu0 %v1533_v11  ;;  %v715_v61 = vunpack.c.l.b16 %v714_v60  ;;  %v1406_v11 = vcombine.high %v669_v10, %v669_v10  ;;  %v1591_v44 = vld [vmem:[#allocation2 + $0x4] ss:$8 sps:$4 sm:$0xff]   ;;  %v1589_v45 = vld [vmem:[#allocation2] ss:$8 sps:$4 sm:$0xff]   ;;  %v1612_v58 = vld [vmem:[#allocation2 + $0x94] ss:$8 sps:$4 sm:$0xff]  }
  0x31   : > { %v1615_v60 = vld [vmem:[#allocation2 + $0x84] ss:$8 sps:$4 sm:$0xff]  }
  0x32   : > { %vm716_vm2 = vcmp.ne.s32.totalorder %v715_v61, 0  ;;  %v1613_v61 = vld [vmem:[#allocation2 + $0x80] ss:$8 sps:$4 sm:$0xff]  }
  0x33   : > { %636 = vmatpush1.bf16.msra.mxu0 %v1535_v12  ;;  %v734_v12 = vsel %vm732_vm4, %v669_v10, 0 }
  0x34   : > { %637 = vmatprep.subr.bf16.mxu0 %v1536_v13  ;;  %v841_v13 = vsel %vm732_vm4, %v1406_v11, 0 }
  0x37   : > { %638 = vmatpush1.bf16.msra.mxu0 %v1538_v14 }
  0x38   : > { %639 = vmatprep.subr.bf16.mxu0 %v1539_v16 }
  0x3b   : > { %640 = vmatpush1.bf16.msra.mxu0 %v1541_v18 }
  0x3c   : > { %641 = vmatprep.subr.bf16.mxu0 %v1542_v19 }
  0x3f   : > { %642 = vmatpush2.bf16.msra.mxu0 %v1544_v20 }
  0x40   : > { %643 = vmatprep.subr.bf16.mxu0 %v1545_v21 }
  0x43   : > { %644 = vmatpush2.bf16.msra.mxu0 %v1547_v22 }
  0x44   : > { %645 = vmatprep.subr.bf16.mxu0 %v1548_v23 }
  0x47   : > { %646 = vmatpush2.bf16.msra.mxu0 %v1550_v24 }
  0x48   : > { %647 = vmatprep.subr.bf16.mxu0 %v1551_v25 }
  0x4b   : > { %648 = vmatpush2.bf16.msra.mxu0 %v1553_v26 }
  0x4c   : > { %649 = vmatprep.subr.bf16.mxu0 %v1554_v27  ;;  %v1570_v27 = vld [vmem:[#allocation2 + $0x74] ss:$8 sps:$4 sm:$0xff]  }
  0x4f   : > { %650 = vmatpush2.bf16.msra.mxu0 %v1556_v28  ;;  %v1568_v28 = vld [vmem:[#allocation2 + $0x70] ss:$8 sps:$4 sm:$0xff]  }
  0x50   : > { %651 = vmatprep.subr.bf16.mxu0 %v1557_v29  ;;  %v1573_v29 = vld [vmem:[#allocation2 + $0x64] ss:$8 sps:$4 sm:$0xff]  }
  0x53   : > { %652 = vmatpush2.bf16.msra.mxu0 %v1559_v30  ;;  %v1571_v30 = vld [vmem:[#allocation2 + $0x60] ss:$8 sps:$4 sm:$0xff]  }
  0x54   : > { %653 = vmatprep.subr.bf16.mxu0 %v1560_v31  ;;  %v1576_v31 = vld [vmem:[#allocation2 + $0x54] ss:$8 sps:$4 sm:$0xff]  }
  0x57   : > { %654 = vmatpush2.bf16.msra.mxu0 %v1562_v32  ;;  %v1574_v32 = vld [vmem:[#allocation2 + $0x50] ss:$8 sps:$4 sm:$0xff]  }
  0x58   : > { %655 = vmatprep.subr.bf16.mxu0 %v1563_v33  ;;  %v1579_v33 = vld [vmem:[#allocation2 + $0x44] ss:$8 sps:$4 sm:$0xff]  }
  0x5b   : > { %656 = vmatpush2.bf16.msra.mxu0 %v1565_v34  ;;  %v1577_v34 = vld [vmem:[#allocation2 + $0x40] ss:$8 sps:$4 sm:$0xff]  }
  0x5c   : > { %1453 = vmatprep.subr.bf16.mxu0 %v1683_v0 }
  0x5e   : > { %658 = vmatmul.mubr.bf16.vlgmr.msra.gmra.mxu0 %v412_v36  ;;  %v1582_v36 = vld [vmem:[#allocation2 + $0x34] ss:$8 sps:$4 sm:$0xff]  }
  0x5f   : > { %1454 = vmatpush3.bf16.xpose.msra.mxu0 %v668_v37  ;;  %1455 = vmatprep.mubr.msk.bf16.mxu0 %vm1684_vm0, %v1683_v0  ;;  %v1580_v37 = vld [vmem:[#allocation2 + $0x30] ss:$8 sps:$4 sm:$0xff]  }
  0x60   : > { %1459 = vmatprep.subr.bf16.mxu0 %v1683_v0 }
 0x11e   : > { %v659_v48 = vpop.f32.mrf.mxu0 }
 0x11f   : > { %v660_v49 = vadd.f32 %v659_v48, %v460_v46  ;;  %v1594_v46 = vld [vmem:[#allocation2 + $0xf4] ss:$8 sps:$4 sm:$0xff]   ;;  %v1597_v48 = vld [vmem:[#allocation2 + $0xe4] ss:$8 sps:$4 sm:$0xff]  }
 0x120   : > { %v661_v50 = vpop.f32.mrf.mxu0 }
 0x121   : > { %v666_v51 = vmul.f32 0.088388346, %v660_v49  ;;  %v662_v52 = vadd.f32 %v661_v50, %v464_v47  ;;  %v1592_v47 = vld [vmem:[#allocation2 + $0xf0] ss:$8 sps:$4 sm:$0xff]   ;;  %v1595_v49 = vld [vmem:[#allocation2 + $0xe0] ss:$8 sps:$4 sm:$0xff]  }
 0x122   : > { %v663_v53 = vpop.f32.mrf.mxu0  ;;  %v1600_v50 = vld [vmem:[#allocation2 + $0xd4] ss:$8 sps:$4 sm:$0xff]  }
 0x123   : > { %v672_v54 = vpack.c.bf16 %v666_v51, %v666_v51  ;;  %v667_v55 = vmul.f32 0.088388346, %v662_v52  ;;  %v1598_v51 = vld [vmem:[#allocation2 + $0xd0] ss:$8 sps:$4 sm:$0xff]   ;;  %v1603_v52 = vld [vmem:[#allocation2 + $0xc4] ss:$8 sps:$4 sm:$0xff]  }
 0x124   : > { %v664_v56 = vpop.f32.mrf.mxu0  ;;  %v1601_v53 = vld [vmem:[#allocation2 + $0xc0] ss:$8 sps:$4 sm:$0xff]  }
 0x125   : > { %v673_v57 = vpack.c.bf16 %v667_v55, %v667_v55  ;;  %1456 = vmatmul.mubr.bf16.vlgmr.msra.gmra.mxu0 %v672_v54  ;;  %v1606_v54 = vld [vmem:[#allocation2 + $0xb4] ss:$8 sps:$4 sm:$0xff]   ;;  %v1604_v55 = vld [vmem:[#allocation2 + $0xb0] ss:$8 sps:$4 sm:$0xff]   ;;  %v1609_v56 = vld [vmem:[#allocation2 + $0xa4] ss:$8 sps:$4 sm:$0xff]  }
 0x126   : > { %1461 = vmatprep.mubr.msk.bf16.mxu0 %vm1684_vm0, %v1683_v0  ;;  %1460 = vmatpush3.bf16.msra.mxu0 %v734_v12 }
 0x127   : > { %1468 = vmatmul.mubr.bf16.vlgmr.msra.gmra.mxu1 %v673_v57  ;;  %v1607_v57 = vld [vmem:[#allocation2 + $0xa0] ss:$8 sps:$4 sm:$0xff]  }
 0x128   : > { %1473 = vmatprep.mubr.msk.bf16.mxu1 %vm1684_vm0, %v1683_v0  ;;  %1472 = vmatpush3.bf16.msra.mxu1 %v841_v13 }
 0x129   : > { %1080 = vmatprep.subr.bf16.mxu1 %v1570_v27 }
 0x1e5   : > { %v708_v62 = vpop.f32.mrf.mxu0 }
 0x1e6   : > { %v717_v5 = vsel %vm716_vm2, -1e+30, %v708_v62 }
 0x1e7   : > { %v1457_v63 = vpop.f32.mrf.mxu0  ;;  %v817_v1 = vpop.f32.mrf.mxu1  ;;  %v719_v9 = vsel %vm718_vm3, %v717_v5, -inf }
 0x1e8   : > { %v823_v2 = vsel %vm716_vm2, -1e+30, %v817_v1 }
 0x1e9   : > { %v711_v3 = vpop.f32.mrf.mxu0  ;;  %v1469_v0 = vpop.f32.mrf.mxu1  ;;  %v824_v4 = vsel %vm718_vm3, %v823_v2, -inf }
 0x1ea   : > { %825 = vmax.xlane.f32.xlu0 %v824_v4 }
 0x1eb   : > { %v1458_v6 = vpop.f32.mrf.mxu0  ;;  %v820_v7 = vpop.f32.mrf.mxu1 }
 0x1ed   : > { %v1470_v8 = vpop.f32.mrf.mxu1 }
 0x1ee   : > { %720 = vmax.xlane.f32.xlu0 %v719_v9 }
 0x273   : > { %v826_v14 = vpop.xlane.xlu0 %825 }
 0x274   : > { %v827_v16 = vsub.f32 %v823_v2, %v826_v14  ;;  %v1125_v14 = vsub.s32 1, %v1902_v40 }
 0x276   : > { %v828_v17 = vmul.f32 1.442695, %v827_v16  ;;  %v1129_v16 = vsub.s32 5, %v1902_v40 }
 0x277   : > { %v721_v18 = vpop.xlane.xlu0 %720 }
 0x278   : > { %1616 = vpow2.f32 %v828_v17  ;;  %v722_v19 = vsub.f32 %v717_v5, %v721_v18  ;;  %v1126_v17 = vrot.slane %v1908_v42, %v1125_v14  ;;  %v1130_v18 = vrot.slane %v1908_v42, %v1129_v16 }
 0x27a   : > { %v723_v20 = vmul.f32 1.442695, %v722_v19 }
 0x27c   : > { %1618 = vpow2.f32 %v723_v20 }
 0x285   : > { %v1617_v21 = vpop.eup %1616 }
 0x286   : > { %v830_v22 = vsel %vm718_vm3, %v1617_v21, 0.0  ;;  %v833_v23 = vpack.c.bf16 %v1617_v21, %v1617_v21  ;;  %v1136_v21 = vrot.slane %v1126_v17, %v1125_v14 }
 0x287   : > { %831 = vadd.xlane.f32.xlu1 %v830_v22  ;;  %v1140_v22 = vrot.slane %v1130_v18, %v1125_v14 }
 0x288   : > { %1474 = vmatmul.mubr.msk.bf16.vlgmr.msra.gmra.mxu1 %vm718_vm3, %v833_v23 }
 0x289   : > { %v1619_v24 = vpop.eup %1618  ;;  %1081 = vmatpush1.bf16.msra.mxu1 %v1568_v28 }
 0x28a   : > { %v725_v25 = vsel %vm718_vm3, %v1619_v24, 0.0  ;;  %v728_v26 = vpack.c.bf16 %v1619_v24, %v1619_v24  ;;  %1082 = vmatprep.subr.bf16.mxu1 %v1573_v29 }
 0x28b   : > { %726 = vadd.xlane.f32.xlu1 %v725_v25 }
 0x28c   : > { %1462 = vmatmul.mubr.msk.bf16.vlgmr.msra.gmra.mxu0 %vm718_vm3, %v728_v26 }
 0x28d   : > { %1083 = vmatpush1.bf16.msra.mxu1 %v1571_v30  ;;  %v1200_v30 = vld [vmem:[%s396_s27] sm:$0xff] }
 0x28e   : > { %1084 = vmatprep.subr.bf16.mxu1 %v1576_v31 }
 0x291   : > { %1085 = vmatpush1.bf16.msra.mxu1 %v1574_v32 }
 0x292   : > { %1086 = vmatprep.subr.bf16.mxu1 %v1579_v33 }
 0x295   : > { %1087 = vmatpush1.bf16.msra.mxu1 %v1577_v34 }
 0x296   : > { %1088 = vmatprep.subr.bf16.mxu1 %v1582_v36 }
 0x299   : > { %1089 = vmatpush1.bf16.msra.mxu1 %v1580_v37 }
 0x29a   : > { %1090 = vmatprep.subr.bf16.mxu1 %v1585_v38 }
 0x29d   : > { %1091 = vmatpush1.bf16.msra.mxu1 %v1583_v39 }
 0x29e   : > { %1092 = vmatprep.subr.bf16.mxu1 %v1588_v41  ;;  %v1162_v41 = vsub.s32 2, %v1902_v40 }
 0x2a1   : > { %1093 = vmatpush1.bf16.msra.mxu1 %v1586_v43  ;;  %v1166_v43 = vsub.s32 6, %v1902_v40 }
 0x2a2   : > { %1094 = vmatprep.subr.bf16.mxu1 %v1591_v44  ;;  %v1182_v44 = vsub.s32 3, %v1902_v40 }
 0x2a5   : > { %1095 = vmatpush1.bf16.msra.mxu1 %v1589_v45  ;;  %v1186_v45 = vsub.s32 7, %v1902_v40 }
 0x2a6   : > { %1096 = vmatprep.subr.bf16.mxu1 %v1594_v46  ;;  %v1163_v46 = vrot.slane %v1908_v42, %v1162_v41 }
 0x2a9   : > { %1097 = vmatpush2.bf16.msra.mxu1 %v1592_v47  ;;  %v1167_v47 = vrot.slane %v1908_v42, %v1166_v43 }
 0x2aa   : > { %1098 = vmatprep.subr.bf16.mxu1 %v1597_v48  ;;  %v1183_v48 = vrot.slane %v1908_v42, %v1182_v44 }
 0x2ad   : > { %1099 = vmatpush2.bf16.msra.mxu1 %v1595_v49  ;;  %v1187_v49 = vrot.slane %v1908_v42, %v1186_v45 }
 0x2ae   : > { %1100 = vmatprep.subr.bf16.mxu1 %v1600_v50  ;;  %v1173_v50 = vrot.slane %v1163_v46, %v1162_v41 }
 0x2b1   : > { %1101 = vmatpush2.bf16.msra.mxu1 %v1598_v51  ;;  %v1177_v51 = vrot.slane %v1167_v47, %v1162_v41 }
 0x2b2   : > { %1102 = vmatprep.subr.bf16.mxu1 %v1603_v52 }
 0x2b5   : > { %1103 = vmatpush2.bf16.msra.mxu1 %v1601_v53 }
 0x2b6   : > { %1104 = vmatprep.subr.bf16.mxu1 %v1606_v54 }
 0x2b9   : > { %1105 = vmatpush2.bf16.msra.mxu1 %v1604_v55  ;;  %v1193_v55 = vrot.slane %v1183_v48, %v1182_v44 }
 0x2ba   : > { %1106 = vmatprep.subr.bf16.mxu1 %v1609_v56  ;;  %v1197_v56 = vrot.slane %v1187_v49, %v1182_v44 }
 0x2bd   : > { %1107 = vmatpush2.bf16.msra.mxu1 %v1607_v57 }
 0x2be   : > { %1108 = vmatprep.subr.bf16.mxu1 %v1612_v58 }
 0x2c1   : > { %1109 = vmatpush2.bf16.msra.mxu1 %v1610_v59 }
 0x2c2   : > { %1110 = vmatprep.subr.bf16.mxu1 %v1615_v60 }
 0x2c5   : > { %1111 = vmatpush2.bf16.msra.mxu1 %v1613_v61 }
 0x310   : > { %v832_v62 = vpop.xlane.xlu1 %831 }
 0x311   : > { %1620 = vrcp.f32 %v832_v62 }
 0x314   : > { %v727_v63 = vpop.xlane.xlu1 %726 }
 0x315   : > { %1622 = vrcp.f32 %v727_v63 }
 0x31e   : > { %v1621_v1 = vpop.eup %1620 }
 0x322   : > { %v1623_v5 = vpop.eup %1622 }
 0x348   : > { %v877_v2 = vpop.f32.mrf.mxu1 }
 0x349   : > { %v885_v3 = vmul.f32 %v1621_v1, %v877_v2 }
 0x34a   : > { %v1475_v0 = vpop.f32.mrf.mxu1 }
 0x34b   : > { %v887_v4 = vpack.c.bf16 %v885_v3, %v885_v3 }
 0x34c   : > { %v770_v6 = vpop.f32.mrf.mxu0  ;;  %v880_v7 = vpop.f32.mrf.mxu1 }
 0x34d   : > { %v778_v8 = vmul.f32 %v1623_v5, %v770_v6  ;;  %1112 = vmatprep.mubr.bf16.mxu1 %v887_v4 }
 0x34e   : > { %v1463_v9 = vpop.f32.mrf.mxu0  ;;  %v1476_v10 = vpop.f32.mrf.mxu1 }
 0x34f   : > { %v886_v11 = vpack.c.bf16 %v778_v8, %v778_v8 }
 0x350   : > { %v773_v12 = vpop.f32.mrf.mxu0 }
 0x351   : > { %1113 = vmatmul.mubr.bf16.vlgmr.msra.gmra.mxu1 %v886_v11 }
 0x352   : > { %v1464_v13 = vpop.f32.mrf.mxu0 }
 0x411   : > { %v1114_v19 = vpop.f32.mrf.mxu1 }
 0x412   : > { %v1121_v20 = vadd.f32 %v1114_v19, %v1884_v35 }
 0x413   : > { %v1116_v23 = vpop.f32.mrf.mxu1 }
 0x414   : > { %v1122_v24 = vadd.f32 %v1116_v23, %v1825_v15  ;;  %v1141_v26 = vadd.f32 %v1136_v21, %v1121_v20 }
 0x415   : > { %v1118_v25 = vpop.f32.mrf.mxu1 }
 0x416   : > { %v1142_v27 = vadd.f32 %v1140_v22, %v1122_v24 }
 0x417   : > { %v1119_v28 = vpop.f32.mrf.mxu1 }
 0x418   : > { %v1143_v29 = vadd.f32 %v1142_v27, %v1141_v26 }
 0x41a   : > { %1144 = vadd.xlane.f32.xlu0 %v1143_v29 }
 0x430   : > { %1203 = vperm.xlu0 %1517, %v1200_v30  }
 0x4a3   : > { %v1145_v31 = vpop.xlane.xlu0 %1144 }
 0x4a4   : > { %v1147_v35 = vmul.f32 0.00390625, %v1145_v31 }
 0x4a6   : > { %v1148_v32 = vsub.f32 %v1141_v26, %v1147_v35  ;;  %v1149_v33 = vsub.f32 %v1142_v27, %v1147_v35 }
 0x4a8   : > { %v1150_v34 = vmul.f32 %v1148_v32, %v1148_v32  ;;  %v1151_v36 = vmul.f32 %v1149_v33, %v1149_v33 }
 0x4aa   : > { %v1152_v15 = vadd.f32 %v1151_v36, %v1150_v34 }
 0x4ab   : > { %v1204_v59 = vpop.permute.xlu0 %1203 }
 0x4ac   : > { %1153 = vadd.xlane.f32.xlu1 %v1152_v15 }
 0x535   : > { %v1154_v37 = vpop.xlane.xlu1 %1153 }
 0x536   : > { %v1155_v38 = vmul.f32 0.00390625, %v1154_v37 }
 0x538   : > { %v1156_v39 = vadd.f32 1e-05, %v1155_v38 }
 0x53a   : > { %1624 = vrsqrt.f32 %v1156_v39 }
 0x547   : > { %v1625_v52 = vpop.eup %1624 }
 0x548   : > { %v1158_v53 = vmul.f32 %v1625_v52, %v1148_v32  ;;  %v1159_v54 = vmul.f32 %v1625_v52, %v1149_v33 }
 0x54a   : > { %v1178_v57 = vmul.f32 %v1173_v50, %v1158_v53  ;;  %v1179_v58 = vmul.f32 %v1177_v51, %v1159_v54 }
 0x54c   : > { %v1198_v40 = vadd.f32 %v1193_v55, %v1178_v57  ;;  %v1199_v60 = vadd.f32 %v1197_v56, %v1179_v58 }
 0x54e   : > { %v1206_v61 = vmul.f32 %v1204_v59, %v1198_v40  ;;  %v1207_v62 = vmul.f32 %v1204_v59, %v1199_v60 }
 0x550   : > { %1208 = vst [vmem:[%s405_s30] sm:$0xff] %v1206_v61  ;;  %1209 = vst [vmem:[%s405_s30 + $0x8] sm:$0xff] %v1207_v62 }
 0x551 PF: > { %s18_s26 = sadd.s32 1, %s1678_s26   ;;  %s1969_s24 = smov %s1674_s25 }
 0x552   : > { %p15_p2 = scmp.ge.s32.totalorder %s18_s26, 4   ;;  %s1970_s25 = smov %s1972_s28 }
 0x554   :  { %17 = sbr.rel (!%p15_p2) target bundleno = 2 (0x2), region = 92 }
 0x559   :  { %1239 = vsyncpa [#allocation3], 1 }
 0x55a   :  { %1241 = vsyncpa [#allocation3 + $0x1], 1 }

// kernel: parallel_attention_layer.10
= control target key start
LH: loop header
LB: loop body
LE: loop exit
PB: predicated region body
PF: predicated region fallthrough
CT: control target
= control target key end

     0   :  { %16 = vsyncpa [#allocation3], 0  ;;  %s3988_s17 = smov 0   ;;  %s3990_s18 = smov 0   ;;  %s4719_s0 = inlined_call_operand.vmem [shape: f32[2,8,256], index: 0, kind: input, shape index: {}]   ;;  %s4720_s1 = inlined_call_operand.vmem [shape: bf16[2,16,512], index: 1, kind: input, shape index: {}]   ;;  %s4721_s2 = inlined_call_operand.vmem [shape: bf16[2,16,512], index: 2, kind: input, shape index: {}]   ;;  %s4722_s3 = inlined_call_operand.vmem [shape: bf16[2,8,16], index: 3, kind: input, shape index: {}]   ;;  %s4723_s4 = inlined_call_operand.vmem [shape: bf16[2,8,16], index: 4, kind: input, shape index: {}]   ;;  %s4724_s5 = inlined_call_operand.vmem [shape: f32[2,8,1], index: 5, kind: input, shape index: {}]   ;;  %s4725_s6 = inlined_call_operand.vmem [shape: bf16[2,256,256], index: 6, kind: input, shape index: {}]   ;;  %s4726_s7 = inlined_call_operand.vmem [shape: bf16[2,256,256], index: 7, kind: input, shape index: {}]   ;;  %s4727_s8 = inlined_call_operand.vmem [shape: f32[2,4,256], index: 8, kind: input, shape index: {}]   ;;  %s4728_s9 = inlined_call_operand.hbm [shape: bf16[2,256,256], index: 9, kind: input, shape index: {}]   ;;  %s4729_s10 = inlined_call_operand.vmem [shape: f32[1,256], index: 10, kind: input, shape index: {}]   ;;  %s4730_s11 = inlined_call_operand.vmem [shape: f32[2,8,256], index: 11, kind: output, shape index: {}]  }
   0x1   :  { %s3992_s19 = smov 0  }
   0x2 LB: > { %s3100_s20 = sadd.s32 4294967295, %s3920_s19   ;;  %s34_s21 = sadd.s32 1, %s3916_s18  ;;  %s3920_s19 = sphi %s3992_s19, %s22_s19   ;;  %s3916_s18 = sphi %s3990_s18, %s4738_s18   ;;  %s3912_s17 = sphi %s3988_s17, %s4737_s17  }
   0x3   : > { %p36_p0 = scmp.ge.s32.totalorder %s34_s21, 2  ;;  %p3102_p1 = scmp.ge.s32.totalorder %s3920_s19, 1 }
   0x4   : > { %p336_p2 = scmp.lt.s32.totalorder %s3920_s19, 3  ;;  %p4013_p4 = scmp.eq.s32.totalorder %s3100_s20, 0 }
   0x5   : > { %s4740_s21 = smov (%p36_p0, %s34_s21), 0  ;;  %s3922_s24 = smov [#allocation2]  }
   0x6   : > { %p4009_p3 = pnand %p3102_p1, %p336_p2  ;;  %s357_s25 = sshll.u32 %s3922_s24, 4  ;;  %s358_s25 = int_to_ptr.vmem [resolvable:$true] %s357_s25 }
   0x7   : > { %s3879_s26 = scalar_lea.vmem %s358_s25, 8192  ;;  %p3887_p11 = scmp.lt.s32.totalorder %s358_s25, %s358_s25 }
   0x8   : > { %p3493_p5 = pneg %p4009_p3  ;;  %p3880_p8 = scmp.ne.s32.totalorder %s358_s25, %s3879_s26 }
   0x9   : > { %p3888_p12 = scmp.lt.s32.totalorder %s3879_s26, %s3879_s26 }
   0xa   : > { %p3494_p6 = pnand %p4013_p4, %p3493_p5 }
   0xb   : > { %p3889_p13 = por %p3888_p12, %p3887_p11 }
   0xc   : > { %p3870_p7 = pneg %p3494_p6 }
   0xe   : > { %p3882_p9 = pnand %p3880_p8, %p3870_p7 }
  0x10   : > { %p3883_p10 = pneg %p3882_p9 }
  0x12   : > { %p3890_p0 = pnand %p3889_p13, %p3883_p10 }
  0x14   : > { %3893 = shalt.err (!%p3890_p0)
}
  0x15   : > { %s3923_s27 = smov 128   ;;  %s3924_s28 = smov 8  }
  0x16   : > { %3496 = dma.hbm_to_vmem [thread:$0]  (!%p3494_p6), %s4728_s9, 8192, %s358_s25, [#allocation3], %s3923_s27, %s3923_s27, %s3924_s28  }
  0x17   : > { %434 = sbr.rel (%p4009_p3) target bundleno = 3393 (0xd41), region = 64 }
  0x1c   : > { %3907 = dma.done.wait (%p4013_p4), [#allocation3], 8192  }
  0x1d   : > { %3909 = vsyncadd (%p4013_p4), [#allocation3], 4294959104  ;;  %v3530_v0 = vld [vmem:[%s4725_s6 + $0x74] ss:$8 sps:$4 sm:$0xff]   ;;  %v3532_v1 = vld [vmem:[%s4725_s6 + $0x70] ss:$8 sps:$4 sm:$0xff]   ;;  %v604_v38 = vlaneseq }
  0x1e   : > { %1027 = vmatprep.subr.bf16.mxu1 %v3530_v0  ;;  %v3533_v2 = vld [vmem:[%s4725_s6 + $0x64] ss:$8 sps:$4 sm:$0xff]   ;;  %v3535_v3 = vld [vmem:[%s4725_s6 + $0x60] ss:$8 sps:$4 sm:$0xff]   ;;  %v3536_v4 = vld [vmem:[%s4725_s6 + $0x54] ss:$8 sps:$4 sm:$0xff]  }
  0x1f   : > { %1028 = vmatpush1.bf16.msra.mxu1 %v3532_v1  ;;  %v3538_v5 = vld [vmem:[%s4725_s6 + $0x50] ss:$8 sps:$4 sm:$0xff]   ;;  %p513_p1 = scmp.lt.s32.totalorder %s3912_s17, 1  ;;  %v3539_v6 = vld [vmem:[%s4725_s6 + $0x44] ss:$8 sps:$4 sm:$0xff]   ;;  %v3925_v37 = vmov 0.0  }
  0x20   : > { %1029 = vmatprep.subr.bf16.mxu1 %v3533_v2  ;;  %v3541_v7 = vld [vmem:[%s4725_s6 + $0x40] ss:$8 sps:$4 sm:$0xff]   ;;  %v3542_v8 = vld [vmem:[%s4725_s6 + $0x34] ss:$8 sps:$4 sm:$0xff]   ;;  %v3544_v9 = vld [vmem:[%s4725_s6 + $0x30] ss:$8 sps:$4 sm:$0xff]  }
  0x21   : > { %s4742_s17 = smov (!%p513_p1, %s3912_s17), 1  ;;  %v3545_v10 = vld [vmem:[%s4725_s6 + $0x24] ss:$8 sps:$4 sm:$0xff]   ;;  %v3547_v11 = vld [vmem:[%s4725_s6 + $0x20] ss:$8 sps:$4 sm:$0xff]   ;;  %vm3926_vm0 = vmmov 0  }
  0x22   : > { %s3421_s20 = sshll.u32 %s4742_s17, 4  ;;  %s3422_s27 = sshll.u32 %s4742_s17, 5  ;;  %v3548_v12 = vld [vmem:[%s4725_s6 + $0x14] ss:$8 sps:$4 sm:$0xff]   ;;  %v3550_v14 = vld [vmem:[%s4725_s6 + $0x10] ss:$8 sps:$4 sm:$0xff]  }
  0x23   : > { %1030 = vmatpush1.bf16.msra.mxu1 %v3535_v3  ;;  %s4073_s26 = scalar_lea.vmem %s4719_s0, %s3421_s20  ;;  %s4088_s15 = scalar_lea.vmem %s4720_s1, %s3422_s27  ;;  %v3551_v16 = vld [vmem:[%s4725_s6 + $0x4] ss:$8 sps:$4 sm:$0xff]   ;;  %v3553_v17 = vld [vmem:[%s4725_s6] ss:$8 sps:$4 sm:$0xff]   ;;  %v3554_v18 = vld [vmem:[%s4725_s6 + $0xf4] ss:$8 sps:$4 sm:$0xff]  }
  0x24   : > { %1031 = vmatprep.subr.bf16.mxu1 %v3536_v4  ;;  %v566_v13 = vld [vmem:[%s4073_s26 + $0x8] sm:$0xff]  ;;  %v3556_v19 = vld [vmem:[%s4725_s6 + $0xf0] ss:$8 sps:$4 sm:$0xff]   ;;  %v3560_v22 = vld [vmem:[%s4725_s6 + $0xd4] ss:$8 sps:$4 sm:$0xff]   ;;  %v4164_v39 = vshrl.u32 %v604_v38, 7  ;;  %s4470_s22 = scalar_lea.vmem %s4721_s2, %s3422_s27 }
  0x25   : > { %v4093_v15 = vpack.c.bf16 %v566_v13, %v566_v13  ;;  %v3557_v20 = vld [vmem:[%s4725_s6 + $0xe4] ss:$8 sps:$4 sm:$0xff]   ;;  %v3559_v21 = vld [vmem:[%s4725_s6 + $0xe0] ss:$8 sps:$4 sm:$0xff]   ;;  %v3562_v23 = vld [vmem:[%s4725_s6 + $0xd0] ss:$8 sps:$4 sm:$0xff]  }
  0x26   : > { %v3563_v24 = vld [vmem:[%s4725_s6 + $0xc4] ss:$8 sps:$4 sm:$0xff]   ;;  %v3565_v25 = vld [vmem:[%s4725_s6 + $0xc0] ss:$8 sps:$4 sm:$0xff]   ;;  %v3566_v26 = vld [vmem:[%s4725_s6 + $0xb4] ss:$8 sps:$4 sm:$0xff]  }
  0x27   : > { %1032 = vmatpush1.bf16.msra.mxu1 %v3538_v5  ;;  %1059 = vmatprep.mubr.bf16.mxu1 %v4093_v15  ;;  %v3568_v27 = vld [vmem:[%s4725_s6 + $0xb0] ss:$8 sps:$4 sm:$0xff]   ;;  %v3569_v28 = vld [vmem:[%s4725_s6 + $0xa4] ss:$8 sps:$4 sm:$0xff]   ;;  %v3571_v29 = vld [vmem:[%s4725_s6 + $0xa0] ss:$8 sps:$4 sm:$0xff]  }
  0x28   : > { %1033 = vmatprep.subr.bf16.mxu1 %v3539_v6  ;;  %806 = vmatprep.mubr.bf16.mxu0 %v4093_v15  ;;  %v3572_v30 = vld [vmem:[%s4725_s6 + $0x94] ss:$8 sps:$4 sm:$0xff]   ;;  %v3574_v31 = vld [vmem:[%s4725_s6 + $0x90] ss:$8 sps:$4 sm:$0xff]   ;;  %v3575_v32 = vld [vmem:[%s4725_s6 + $0x84] ss:$8 sps:$4 sm:$0xff]  }
  0x29   : > { %v3577_v33 = vld [vmem:[%s4725_s6 + $0x80] ss:$8 sps:$4 sm:$0xff]   ;;  %v4167_v40 = vsub.s32 0, %v4164_v39  ;;  %v3927_v51 = vmov 0   ;;  %s3113_s30 = sshll.u32 %s4742_s17, 2  ;;  %vm1128_vm3 = vcmask 130048  }
  0x2a   : > { %v4152_v34 = vld [vmem:[%s4073_s26] sm:$0xff]  ;;  %3529 = vset.pattern.permute.xlu0 %v3927_v51  ;;  %s538_s14 = scalar_lea.vmem %s4722_s3, %s3113_s30  ;;  %v3580_v62 = vld [vmem:[%s4088_s15 + $0x8] ss:$16 sps:$4 sm:$0xff]   ;;  %v855_v2 = vsub.s32 4, %v4164_v39  ;;  %v3602_v38 = vld [vmem:[#allocation2 + $0x14] ss:$8 sps:$4 sm:$0xff]   ;;  %s545_s28 = scalar_lea.vmem %s4723_s4, %s3113_s30 }
  0x2b   : > { %1034 = vmatpush1.bf16.msra.mxu1 %v3541_v7  ;;  %v3578_v35 = vld [vmem:[%s4088_s15] ss:$16 sps:$4 sm:$0xff]   ;;  %v4157_v36 = vpack.c.bf16 %v4152_v34, %v4152_v34  ;;  %v3582_v6 = vld [vmem:[%s4088_s15 + $0x4] ss:$16 sps:$4 sm:$0xff]   ;;  %s3115_s29 = sshll.u32 %s4742_s17, 3  ;;  %s561_s30 = scalar_lea.vmem %s4730_s11, %s3421_s20 }
  0x2c   : > { %1035 = vmatprep.subr.bf16.mxu1 %v3542_v8  ;;  %v4172_v41 = vld [vmem:[%s4727_s8] sm:$0xff]  ;;  %v3622_v55 = vld [vmem:[#allocation2 + $0xb0] ss:$8 sps:$4 sm:$0xff]  }
  0x2d   : > { %v852_v42 = vrot.slane %v4172_v41, %v4167_v40  ;;  %v1074_v52 = vld [vmem:[%s538_s14] sm:$0xf]  ;;  %v856_v3 = vrot.slane %v4172_v41, %v855_v2  ;;  %s552_s14 = scalar_lea.vmem %s4724_s5, %s3115_s29 }
  0x2e   : > { %vm1075_vm1 = vcmp.ne.bf16.partialorder %v1074_v52, 0  ;;  %v3617_v52 = vld [vmem:[#allocation2 + $0xc4] ss:$8 sps:$4 sm:$0xff]  }
  0x2f   : > { %1036 = vmatpush1.bf16.msra.mxu1 %v3544_v9  ;;  %v862_v43 = vrot.slane %v852_v42, %v4167_v40  ;;  %v1124_v53 = vsel %vm1075_vm1, 65537, %v3927_v51  ;;  %v866_v4 = vrot.slane %v856_v3, %v4167_v40  ;;  %v3604_v42 = vld [vmem:[#allocation2 + $0x10] ss:$8 sps:$4 sm:$0xff]  }
  0x30   : > { %1037 = vmatprep.subr.bf16.mxu1 %v3545_v10  ;;  %v1125_v54 = vunpack.c.l.b16 %v1124_v53  ;;  %v3619_v53 = vld [vmem:[#allocation2 + $0xc0] ss:$8 sps:$4 sm:$0xff]  }
  0x32   : > { %vm4187_vm2 = vcmp.ne.s32.totalorder %v1125_v54, 0  ;;  %v3620_v54 = vld [vmem:[#allocation2 + $0xb4] ss:$8 sps:$4 sm:$0xff]  }
  0x33   : > { %1038 = vmatpush1.bf16.msra.mxu1 %v3547_v11 }
  0x34   : > { %1039 = vmatprep.subr.bf16.mxu1 %v3548_v12 }
  0x37   : > { %1040 = vmatpush1.bf16.msra.mxu1 %v3550_v14 }
  0x38   : > { %1041 = vmatprep.subr.bf16.mxu1 %v3551_v16 }
  0x3b   : > { %1042 = vmatpush1.bf16.msra.mxu1 %v3553_v17 }
  0x3c   : > { %1043 = vmatprep.subr.bf16.mxu1 %v3554_v18 }
  0x3f   : > { %1044 = vmatpush2.bf16.msra.mxu1 %v3556_v19 }
  0x40   : > { %1045 = vmatprep.subr.bf16.mxu1 %v3557_v20 }
  0x43   : > { %1046 = vmatpush2.bf16.msra.mxu1 %v3559_v21 }
  0x44   : > { %1047 = vmatprep.subr.bf16.mxu1 %v3560_v22  ;;  %v3583_v22 = vld [vmem:[%s4088_s15 + $0xc] ss:$16 sps:$4 sm:$0xff]  }
  0x47   : > { %1048 = vmatpush2.bf16.msra.mxu1 %v3562_v23  ;;  %v3584_v23 = vld [vmem:[#allocation2 + $0x74] ss:$8 sps:$4 sm:$0xff]  }
  0x48   : > { %1049 = vmatprep.subr.bf16.mxu1 %v3563_v24  ;;  %v3586_v24 = vld [vmem:[#allocation2 + $0x70] ss:$8 sps:$4 sm:$0xff]   ;;  %774 = vmatprep.subr.bf16.mxu0 %v3584_v23  ;;  %v3653_v23 = vld [vmem:[%s4726_s7] ss:$8 sps:$4 sm:$0xff]  }
  0x49   : > { %775 = vmatpush1.bf16.msra.mxu0 %v3586_v24  ;;  %v3658_v24 = vld [vmem:[%s4726_s7 + $0xf4] ss:$8 sps:$4 sm:$0xff]  }
  0x4b   : > { %1050 = vmatpush2.bf16.msra.mxu1 %v3565_v25  ;;  %v3587_v25 = vld [vmem:[#allocation2 + $0x64] ss:$8 sps:$4 sm:$0xff]  }
  0x4c   : > { %1051 = vmatprep.subr.bf16.mxu1 %v3566_v26  ;;  %v3589_v26 = vld [vmem:[#allocation2 + $0x60] ss:$8 sps:$4 sm:$0xff]   ;;  %776 = vmatprep.subr.bf16.mxu0 %v3587_v25  ;;  %v3656_v25 = vld [vmem:[%s4726_s7 + $0xf0] ss:$8 sps:$4 sm:$0xff]  }
  0x4d   : > { %777 = vmatpush1.bf16.msra.mxu0 %v3589_v26  ;;  %v3661_v26 = vld [vmem:[%s4726_s7 + $0xe4] ss:$8 sps:$4 sm:$0xff]  }
  0x4f   : > { %1052 = vmatpush2.bf16.msra.mxu1 %v3568_v27  ;;  %v3590_v27 = vld [vmem:[#allocation2 + $0x54] ss:$8 sps:$4 sm:$0xff]  }
  0x50   : > { %1053 = vmatprep.subr.bf16.mxu1 %v3569_v28  ;;  %v3592_v28 = vld [vmem:[#allocation2 + $0x50] ss:$8 sps:$4 sm:$0xff]   ;;  %778 = vmatprep.subr.bf16.mxu0 %v3590_v27  ;;  %v3659_v27 = vld [vmem:[%s4726_s7 + $0xe0] ss:$8 sps:$4 sm:$0xff]  }
  0x51   : > { %779 = vmatpush1.bf16.msra.mxu0 %v3592_v28  ;;  %v3664_v28 = vld [vmem:[%s4726_s7 + $0xd4] ss:$8 sps:$4 sm:$0xff]  }
  0x53   : > { %1054 = vmatpush2.bf16.msra.mxu1 %v3571_v29  ;;  %v3593_v29 = vld [vmem:[#allocation2 + $0x44] ss:$8 sps:$4 sm:$0xff]  }
  0x54   : > { %1055 = vmatprep.subr.bf16.mxu1 %v3572_v30  ;;  %v3595_v30 = vld [vmem:[#allocation2 + $0x40] ss:$8 sps:$4 sm:$0xff]   ;;  %780 = vmatprep.subr.bf16.mxu0 %v3593_v29  ;;  %v3662_v29 = vld [vmem:[%s4726_s7 + $0xd0] ss:$8 sps:$4 sm:$0xff]  }
  0x55   : > { %781 = vmatpush1.bf16.msra.mxu0 %v3595_v30  ;;  %v3667_v30 = vld [vmem:[%s4726_s7 + $0xc4] ss:$8 sps:$4 sm:$0xff]  }
  0x57   : > { %1056 = vmatpush2.bf16.msra.mxu1 %v3574_v31  ;;  %v3596_v31 = vld [vmem:[#allocation2 + $0x34] ss:$8 sps:$4 sm:$0xff]  }
  0x58   : > { %1057 = vmatprep.subr.bf16.mxu1 %v3575_v32  ;;  %v3598_v32 = vld [vmem:[#allocation2 + $0x30] ss:$8 sps:$4 sm:$0xff]   ;;  %782 = vmatprep.subr.bf16.mxu0 %v3596_v31  ;;  %v3665_v31 = vld [vmem:[%s4726_s7 + $0xc0] ss:$8 sps:$4 sm:$0xff]  }
  0x59   : > { %783 = vmatpush1.bf16.msra.mxu0 %v3598_v32  ;;  %v3670_v32 = vld [vmem:[%s4726_s7 + $0xb4] ss:$8 sps:$4 sm:$0xff]  }
  0x5b   : > { %1058 = vmatpush2.bf16.msra.mxu1 %v3577_v33  ;;  %v3599_v33 = vld [vmem:[#allocation2 + $0x24] ss:$8 sps:$4 sm:$0xff]  }
  0x5c   : > { %3441 = vmatprep.subr.bf16.mxu1 %v3925_v37  ;;  %784 = vmatprep.subr.bf16.mxu0 %v3599_v33  ;;  %v3668_v33 = vld [vmem:[%s4726_s7 + $0xb0] ss:$8 sps:$4 sm:$0xff]  }
  0x5e   : > { %1060 = vmatmul.mubr.bf16.vlgmr.msra.gmra.mxu1 %v4157_v36 }
  0x5f   : > { %3442 = vmatpush3.bf16.xpose.msra.mxu1 %v3578_v35  ;;  %3443 = vmatprep.mubr.msk.bf16.mxu1 %vm3926_vm0, %v3925_v37  ;;  %v3601_v35 = vld [vmem:[#allocation2 + $0x20] ss:$8 sps:$4 sm:$0xff]  }
  0x60   : > { %3447 = vmatprep.subr.bf16.mxu1 %v3925_v37  ;;  %785 = vmatpush1.bf16.msra.mxu0 %v3601_v35  ;;  %v3673_v35 = vld [vmem:[%s4726_s7 + $0xa4] ss:$8 sps:$4 sm:$0xff]  }
  0x61   : > { %786 = vmatprep.subr.bf16.mxu0 %v3602_v38  ;;  %v3671_v38 = vld [vmem:[%s4726_s7 + $0xa0] ss:$8 sps:$4 sm:$0xff]  }
  0x64   : > { %787 = vmatpush1.bf16.msra.mxu0 %v3604_v42  ;;  %v3676_v42 = vld [vmem:[%s4726_s7 + $0x94] ss:$8 sps:$4 sm:$0xff]  }
 0x11e   : > { %v1061_v44 = vpop.f32.mrf.mxu1 }
 0x11f   : > { %v1062_v45 = vadd.f32 %v1061_v44, %v862_v43  ;;  %v3605_v43 = vld [vmem:[#allocation2 + $0x4] ss:$8 sps:$4 sm:$0xff]   ;;  %v3607_v44 = vld [vmem:[#allocation2] ss:$8 sps:$4 sm:$0xff]  }
 0x120   : > { %v1063_v46 = vpop.f32.mrf.mxu1  ;;  %788 = vmatprep.subr.bf16.mxu0 %v3605_v43  ;;  %v3674_v43 = vld [vmem:[%s4726_s7 + $0x90] ss:$8 sps:$4 sm:$0xff]  }
 0x121   : > { %v1068_v47 = vmul.f32 0.088388346, %v1062_v45  ;;  %v1064_v7 = vadd.f32 %v1063_v46, %v866_v4  ;;  %v3608_v45 = vld [vmem:[#allocation2 + $0xf4] ss:$8 sps:$4 sm:$0xff]   ;;  %789 = vmatpush1.bf16.msra.mxu0 %v3607_v44  ;;  %v3610_v46 = vld [vmem:[#allocation2 + $0xf0] ss:$8 sps:$4 sm:$0xff]  }
 0x122   : > { %v1065_v48 = vpop.f32.mrf.mxu1  ;;  %790 = vmatprep.subr.bf16.mxu0 %v3608_v45  ;;  %v3679_v44 = vld [vmem:[%s4726_s7 + $0x84] ss:$8 sps:$4 sm:$0xff]   ;;  %v3677_v45 = vld [vmem:[%s4726_s7 + $0x80] ss:$8 sps:$4 sm:$0xff]  }
 0x123   : > { %v1076_v49 = vpack.c.bf16 %v1068_v47, %v1068_v47  ;;  %v1069_v9 = vmul.f32 0.088388346, %v1064_v7  ;;  %v3611_v47 = vld [vmem:[#allocation2 + $0xe4] ss:$8 sps:$4 sm:$0xff]   ;;  %v3613_v48 = vld [vmem:[#allocation2 + $0xe0] ss:$8 sps:$4 sm:$0xff]  }
 0x124   : > { %v1066_v50 = vpop.f32.mrf.mxu1 }
 0x125   : > { %3444 = vmatmul.mubr.bf16.vlgmr.msra.gmra.mxu1 %v1076_v49  ;;  %v1077_v10 = vpack.c.bf16 %v1069_v9, %v1069_v9  ;;  %791 = vmatpush2.bf16.msra.mxu0 %v3610_v46  ;;  %v3614_v49 = vld [vmem:[#allocation2 + $0xd4] ss:$8 sps:$4 sm:$0xff]   ;;  %v3616_v50 = vld [vmem:[#allocation2 + $0xd0] ss:$8 sps:$4 sm:$0xff]   ;;  %v3637_v9 = vld [vmem:[%s4726_s7 + $0x64] ss:$8 sps:$4 sm:$0xff]  }
 0x126   : > { %3449 = vmatprep.mubr.msk.bf16.mxu1 %vm3926_vm0, %v3925_v37  ;;  %3448 = vmatpush3.bf16.msra.mxu1 %v3580_v62  ;;  %v3634_v62 = vld [vmem:[%s4726_s7 + $0x74] ss:$8 sps:$4 sm:$0xff]  }
 0x127   : > { %3453 = vmatprep.subr.bf16.mxu1 %v3925_v37  ;;  %792 = vmatprep.subr.bf16.mxu0 %v3611_v47 }
 0x129   : > { %793 = vmatpush2.bf16.msra.mxu0 %v3613_v48 }
 0x12a   : > { %794 = vmatprep.subr.bf16.mxu0 %v3614_v49 }
 0x12d   : > { %795 = vmatpush2.bf16.msra.mxu0 %v3616_v50 }
 0x12e   : > { %796 = vmatprep.subr.bf16.mxu0 %v3617_v52 }
 0x131   : > { %797 = vmatpush2.bf16.msra.mxu0 %v3619_v53 }
 0x132   : > { %798 = vmatprep.subr.bf16.mxu0 %v3620_v54 }
 0x135   : > { %799 = vmatpush2.bf16.msra.mxu0 %v3622_v55 }
 0x1e5   : > { %v1118_v56 = vpop.f32.mrf.mxu1 }
 0x1e6   : > { %v1127_v57 = vsel %vm4187_vm2, -1e+30, %v1118_v56  ;;  %v3623_v56 = vld [vmem:[#allocation2 + $0xa4] ss:$8 sps:$4 sm:$0xff]  }
 0x1e7   : > { %v3445_v58 = vpop.f32.mrf.mxu1  ;;  %v1129_v59 = vsel %vm1128_vm3, %v1127_v57, -inf  ;;  %800 = vmatprep.subr.bf16.mxu0 %v3623_v56 }
 0x1e8   : > { %1130 = vmax.xlane.f32.xlu0 %v1129_v59  ;;  %v3626_v58 = vld [vmem:[#allocation2 + $0x94] ss:$8 sps:$4 sm:$0xff]   ;;  %v3628_v59 = vld [vmem:[#allocation2 + $0x90] ss:$8 sps:$4 sm:$0xff]  }
 0x1e9   : > { %v1121_v60 = vpop.f32.mrf.mxu1 }
 0x1ea   : > { %v3629_v60 = vld [vmem:[#allocation2 + $0x84] ss:$8 sps:$4 sm:$0xff]  }
 0x1eb   : > { %v3446_v61 = vpop.f32.mrf.mxu1 }
 0x1ec   : > { %v3631_v61 = vld [vmem:[#allocation2 + $0x80] ss:$8 sps:$4 sm:$0xff]  }
 0x271   : > { %v1131_v63 = vpop.xlane.xlu0 %1130 }
 0x272   : > { %v1132_v0 = vsub.f32 %v1127_v57, %v1131_v63  ;;  %v3625_v57 = vld [vmem:[#allocation2 + $0xa0] ss:$8 sps:$4 sm:$0xff]   ;;  %v3632_v63 = vld [vmem:[%s4726_s7 + $0x70] ss:$8 sps:$4 sm:$0xff]  }
 0x273   : > { %801 = vmatpush2.bf16.msra.mxu0 %v3625_v57 }
 0x274   : > { %v1133_v1 = vmul.f32 1.442695, %v1132_v0  ;;  %802 = vmatprep.subr.bf16.mxu0 %v3626_v58 }
 0x276   : > { %3830 = vpow2.f32 %v1133_v1 }
 0x277   : > { %803 = vmatpush2.bf16.msra.mxu0 %v3628_v59 }
 0x278   : > { %804 = vmatprep.subr.bf16.mxu0 %v3629_v60 }
 0x27b   : > { %805 = vmatpush2.bf16.msra.mxu0 %v3631_v61 }
 0x27c   : > { %1490 = vmatprep.subr.bf16.mxu0 %v3634_v62 }
 0x27e   : > { %807 = vmatmul.mubr.bf16.vlgmr.msra.gmra.mxu0 %v4157_v36 }
 0x27f   : > { %1491 = vmatpush1.bf16.msra.mxu0 %v3632_v63  ;;  %v3680_v63 = vld [vmem:[%s4725_s6 + $0x170] ss:$8 sps:$4 sm:$0xff]  }
 0x280   : > { %1492 = vmatprep.subr.bf16.mxu0 %v3637_v9  ;;  %v3697_v9 = vld [vmem:[%s4725_s6 + $0x124] ss:$8 sps:$4 sm:$0xff]  }
 0x283   : > { %v4201_v5 = vpop.eup %3830 }
 0x284   : > { %v1138_v8 = vpack.c.bf16 %v4201_v5, %v4201_v5 }
 0x286   : > { %3450 = vmatmul.mubr.msk.bf16.vlgmr.msra.gmra.mxu1 %vm1128_vm3, %v1138_v8  ;;  %v1135_v8 = vsel %vm1128_vm3, %v4201_v5, 0.0  ;;  %v3643_v5 = vld [vmem:[%s4726_s7 + $0x44] ss:$8 sps:$4 sm:$0xff]  }
 0x287   : > { %3454 = vmatpush3.bf16.xpose.msra.mxu1 %v3582_v6  ;;  %3455 = vmatprep.mubr.msk.bf16.mxu1 %vm3926_vm0, %v3925_v37 }
 0x288   : > { %3459 = vmatprep.subr.bf16.mxu1 %v3925_v37 }
 0x28e   : > { %3456 = vmatmul.mubr.bf16.vlgmr.msra.gmra.mxu1 %v1077_v10  ;;  %v3635_v10 = vld [vmem:[%s4726_s7 + $0x60] ss:$8 sps:$4 sm:$0xff]  }
 0x28f   : > { %3461 = vmatprep.mubr.msk.bf16.mxu1 %vm3926_vm0, %v3925_v37  ;;  %3460 = vmatpush3.bf16.msra.mxu1 %v3583_v22  ;;  %v3655_v22 = vld [vmem:[%s4726_s7 + $0x4] ss:$8 sps:$4 sm:$0xff]  }
 0x290   : > { %1493 = vmatpush1.bf16.msra.mxu0 %v3635_v10  ;;  %v3695_v10 = vld [vmem:[%s4725_s6 + $0x120] ss:$8 sps:$4 sm:$0xff]  }
 0x33e   : > { %v4323_v46 = vpop.f32.mrf.mxu0 }
 0x340   : > { %v4325_v47 = vpop.f32.mrf.mxu0 }
 0x342   : > { %v812_v48 = vpop.f32.mrf.mxu0 }
 0x343   : > { %v4439_v48 = vld [vmem:[%s4073_s26 + $0x8] sm:$0xff] }
 0x344   : > { %v813_v49 = vpop.f32.mrf.mxu0 }
 0x346   : > { %v4212_v11 = vpop.f32.mrf.mxu1 }
 0x348   : > { %v3451_v12 = vpop.f32.mrf.mxu1 }
 0x349   : > { %v3640_v12 = vld [vmem:[%s4726_s7 + $0x54] ss:$8 sps:$4 sm:$0xff]  }
 0x34a   : > { %v1185_v13 = vpop.f32.mrf.mxu1  ;;  %1494 = vmatprep.subr.bf16.mxu0 %v3640_v12  ;;  %v3700_v12 = vld [vmem:[%s4725_s6 + $0x114] ss:$8 sps:$4 sm:$0xff]  }
 0x34b   : > { %v3638_v13 = vld [vmem:[%s4726_s7 + $0x50] ss:$8 sps:$4 sm:$0xff]  }
 0x34c   : > { %v3452_v14 = vpop.f32.mrf.mxu1  ;;  %1495 = vmatpush1.bf16.msra.mxu0 %v3638_v13  ;;  %v3698_v13 = vld [vmem:[%s4725_s6 + $0x110] ss:$8 sps:$4 sm:$0xff]  }
 0x34d   : > { %v3641_v14 = vld [vmem:[%s4726_s7 + $0x40] ss:$8 sps:$4 sm:$0xff]   ;;  %1496 = vmatprep.subr.bf16.mxu0 %v3643_v5  ;;  %v3703_v5 = vld [vmem:[%s4725_s6 + $0x104] ss:$8 sps:$4 sm:$0xff]  }
 0x34e   : > { %v1229_v16 = vpop.f32.mrf.mxu1 }
 0x34f   : > { %v4216_v17 = vsel %vm4187_vm2, -1e+30, %v1229_v16  ;;  %v3646_v16 = vld [vmem:[%s4726_s7 + $0x34] ss:$8 sps:$4 sm:$0xff]  }
 0x350   : > { %v3457_v18 = vpop.f32.mrf.mxu1  ;;  %v1236_v19 = vsel %vm1128_vm3, %v4216_v17, -inf  ;;  %1497 = vmatpush1.bf16.msra.mxu0 %v3641_v14  ;;  %v3701_v14 = vld [vmem:[%s4725_s6 + $0x100] ss:$8 sps:$4 sm:$0xff]  }
 0x351   : > { %1237 = vmax.xlane.f32.xlu0 %v1236_v19  ;;  %1498 = vmatprep.subr.bf16.mxu0 %v3646_v16  ;;  %v3649_v18 = vld [vmem:[%s4726_s7 + $0x24] ss:$8 sps:$4 sm:$0xff]   ;;  %v3647_v19 = vld [vmem:[%s4726_s7 + $0x20] ss:$8 sps:$4 sm:$0xff]   ;;  %v3706_v16 = vld [vmem:[%s4725_s6 + $0x1f4] ss:$8 sps:$4 sm:$0xff]  }
 0x352   : > { %v1232_v20 = vpop.f32.mrf.mxu1 }
 0x353   : > { %v3652_v20 = vld [vmem:[%s4726_s7 + $0x14] ss:$8 sps:$4 sm:$0xff]  }
 0x354   : > { %v3458_v21 = vpop.f32.mrf.mxu1 }
 0x355   : > { %v3650_v21 = vld [vmem:[%s4726_s7 + $0x10] ss:$8 sps:$4 sm:$0xff]  }
 0x3da   : > { %v1238_v0 = vpop.xlane.xlu0 %1237 }
 0x3db   : > { %v1239_v1 = vsub.f32 %v4216_v17, %v1238_v0  ;;  %v3644_v17 = vld [vmem:[%s4726_s7 + $0x30] ss:$8 sps:$4 sm:$0xff]   ;;  %v3682_v0 = vld [vmem:[%s4725_s6 + $0x174] ss:$8 sps:$4 sm:$0xff]  }
 0x3dc   : > { %1499 = vmatpush1.bf16.msra.mxu0 %v3644_v17  ;;  %v3704_v17 = vld [vmem:[%s4725_s6 + $0x1f0] ss:$8 sps:$4 sm:$0xff]  }
 0x3dd   : > { %v1240_v3 = vmul.f32 1.442695, %v1239_v1  ;;  %1500 = vmatprep.subr.bf16.mxu0 %v3649_v18  ;;  %v3683_v1 = vld [vmem:[%s4725_s6 + $0x160] ss:$8 sps:$4 sm:$0xff]   ;;  %v3709_v18 = vld [vmem:[%s4725_s6 + $0x1e4] ss:$8 sps:$4 sm:$0xff]  }
 0x3df   : > { %3832 = vpow2.f32 %v1240_v3  ;;  %v3686_v3 = vld [vmem:[%s4725_s6 + $0x150] ss:$8 sps:$4 sm:$0xff]  }
 0x3e0   : > { %1501 = vmatpush1.bf16.msra.mxu0 %v3647_v19  ;;  %v3707_v19 = vld [vmem:[%s4725_s6 + $0x1e0] ss:$8 sps:$4 sm:$0xff]  }
 0x3e1   : > { %1502 = vmatprep.subr.bf16.mxu0 %v3652_v20  ;;  %v3712_v20 = vld [vmem:[%s4725_s6 + $0x1d4] ss:$8 sps:$4 sm:$0xff]  }
 0x3e4   : > { %1503 = vmatpush1.bf16.msra.mxu0 %v3650_v21  ;;  %v3710_v21 = vld [vmem:[%s4725_s6 + $0x1d0] ss:$8 sps:$4 sm:$0xff]  }
 0x3e5   : > { %1504 = vmatprep.subr.bf16.mxu0 %v3655_v22  ;;  %v3715_v22 = vld [vmem:[%s4725_s6 + $0x1c4] ss:$8 sps:$4 sm:$0xff]  }
 0x3e8   : > { %1505 = vmatpush1.bf16.msra.mxu0 %v3653_v23  ;;  %v3713_v23 = vld [vmem:[%s4725_s6 + $0x1c0] ss:$8 sps:$4 sm:$0xff]  }
 0x3e9   : > { %1506 = vmatprep.subr.bf16.mxu0 %v3658_v24  ;;  %v3718_v24 = vld [vmem:[%s4725_s6 + $0x1b4] ss:$8 sps:$4 sm:$0xff]  }
 0x3ec   : > { %v3833_v4 = vpop.eup %3832  ;;  %1507 = vmatpush2.bf16.msra.mxu0 %v3656_v25  ;;  %v3716_v25 = vld [vmem:[%s4725_s6 + $0x1b0] ss:$8 sps:$4 sm:$0xff]  }
 0x3ed   : > { %v1242_v6 = vsel %vm1128_vm3, %v3833_v4, 0.0  ;;  %v1245_v7 = vpack.c.bf16 %v3833_v4, %v3833_v4  ;;  %1508 = vmatprep.subr.bf16.mxu0 %v3661_v26  ;;  %v3691_v4 = vld [vmem:[%s4725_s6 + $0x144] ss:$8 sps:$4 sm:$0xff]  }
 0x3ee   : > { %1243 = vadd.xlane.f32.xlu1 %v1242_v6  ;;  %v3689_v6 = vld [vmem:[%s4725_s6 + $0x140] ss:$8 sps:$4 sm:$0xff]   ;;  %v3721_v26 = vld [vmem:[%s4725_s6 + $0x1a4] ss:$8 sps:$4 sm:$0xff]  }
 0x3ef   : > { %3462 = vmatmul.mubr.msk.bf16.vlgmr.msra.gmra.mxu1 %vm1128_vm3, %v1245_v7  ;;  %v3694_v7 = vld [vmem:[%s4725_s6 + $0x134] ss:$8 sps:$4 sm:$0xff]  }
 0x3f0   : > { %1509 = vmatpush2.bf16.msra.mxu0 %v3659_v27  ;;  %v3719_v27 = vld [vmem:[%s4725_s6 + $0x1a0] ss:$8 sps:$4 sm:$0xff]  }
 0x3f1   : > { %1510 = vmatprep.subr.bf16.mxu0 %v3664_v28  ;;  %v3724_v28 = vld [vmem:[%s4725_s6 + $0x194] ss:$8 sps:$4 sm:$0xff]  }
 0x3f2   : > { %1136 = vadd.xlane.f32.xlu1 %v1135_v8  ;;  %v3692_v8 = vld [vmem:[%s4725_s6 + $0x130] ss:$8 sps:$4 sm:$0xff]  }
 0x3f4   : > { %1511 = vmatpush2.bf16.msra.mxu0 %v3662_v29  ;;  %v3722_v29 = vld [vmem:[%s4725_s6 + $0x190] ss:$8 sps:$4 sm:$0xff]  }
 0x3f5   : > { %1512 = vmatprep.subr.bf16.mxu0 %v3667_v30  ;;  %v3727_v30 = vld [vmem:[%s4725_s6 + $0x184] ss:$8 sps:$4 sm:$0xff]  }
 0x3f8   : > { %1513 = vmatpush2.bf16.msra.mxu0 %v3665_v31  ;;  %v3725_v31 = vld [vmem:[%s4725_s6 + $0x180] ss:$8 sps:$4 sm:$0xff]  }
 0x3f9   : > { %1514 = vmatprep.subr.bf16.mxu0 %v3670_v32  ;;  %v1539_v32 = vsub.s32 5, %v4164_v39 }
 0x3fc   : > { %1515 = vmatpush2.bf16.msra.mxu0 %v3668_v33  ;;  %v4428_v33 = vsub.s32 1, %v4164_v39 }
 0x3fd   : > { %1516 = vmatprep.subr.bf16.mxu0 %v3673_v35 }
 0x3fe   : > { %v1536_v35 = vrot.slane %v4172_v41, %v4428_v33 }
 0x400   : > { %1517 = vmatpush2.bf16.msra.mxu0 %v3671_v38  ;;  %v1540_v38 = vrot.slane %v4172_v41, %v1539_v32 }
 0x401   : > { %1518 = vmatprep.subr.bf16.mxu0 %v3676_v42 }
 0x404   : > { %1519 = vmatpush2.bf16.msra.mxu0 %v3674_v43 }
 0x405   : > { %1520 = vmatprep.subr.bf16.mxu0 %v3679_v44  ;;  %v1546_v44 = vrot.slane %v1536_v35, %v4428_v33 }
 0x408   : > { %1521 = vmatpush2.bf16.msra.mxu0 %v3677_v45 }
 0x409   : > { %2083 = vmatprep.subr.bf16.mxu0 %v3682_v0  ;;  %v3742_v0 = vld [vmem:[#allocation2 + $0x134] ss:$8 sps:$4 sm:$0xff]  }
 0x477   : > { %v1244_v50 = vpop.xlane.xlu1 %1243 }
 0x47b   : > { %v1137_v52 = vpop.xlane.xlu1 %1136 }
 0x47c   : > { %3834 = vrcp.f32 %v1137_v52 }
 0x47d   : > { %3836 = vrcp.f32 %v1244_v50 }
 0x489   : > { %v3835_v53 = vpop.eup %3834 }
 0x48a   : > { %v3837_v54 = vpop.eup %3836  ;;  %v1190_v56 = vmul.f32 %v3835_v53, %v4212_v11  ;;  %v3685_v11 = vld [vmem:[%s4725_s6 + $0x164] ss:$8 sps:$4 sm:$0xff]  }
 0x48c   : > { %v1296_v61 = vpack.c.bf16 %v1190_v56, %v1190_v56  ;;  %v3730_v56 = vld [vmem:[#allocation2 + $0x174] ss:$8 sps:$4 sm:$0xff]  }
 0x48d   : > { %1812 = vmatprep.subr.bf16.mxu1 %v3730_v56 }
 0x4af   : > { %v1287_v55 = vpop.f32.mrf.mxu1 }
 0x4b0   : > { %v1295_v57 = vmul.f32 %v3837_v54, %v1287_v55 }
 0x4b1   : > { %v3463_v58 = vpop.f32.mrf.mxu1 }
 0x4b2   : > { %v1297_v59 = vpack.c.bf16 %v1295_v57, %v1295_v57  ;;  %v3733_v57 = vld [vmem:[#allocation2 + $0x164] ss:$8 sps:$4 sm:$0xff]  }
 0x4b3   : > { %v1290_v60 = vpop.f32.mrf.mxu1  ;;  %v569_v58 = vld [vmem:[%s552_s14] sm:$0xff] }
 0x4b4   : > { %1522 = vmatprep.mubr.bf16.mxu0 %v1297_v59  ;;  %v3731_v59 = vld [vmem:[#allocation2 + $0x160] ss:$8 sps:$4 sm:$0xff]   ;;  %v3736_v60 = vld [vmem:[#allocation2 + $0x154] ss:$8 sps:$4 sm:$0xff]  }
 0x4b5   : > { %v3464_v62 = vpop.f32.mrf.mxu1  ;;  %1523 = vmatmul.mubr.bf16.vlgmr.msra.gmra.mxu0 %v1296_v61  ;;  %v3734_v61 = vld [vmem:[#allocation2 + $0x150] ss:$8 sps:$4 sm:$0xff]  }
 0x4b6   : > { %2115 = vmatprep.mubr.bf16.mxu0 %v4093_v15  ;;  %2084 = vmatpush1.bf16.msra.mxu0 %v3680_v63  ;;  %v3688_v15 = vld [vmem:[%s4725_s6 + $0x154] ss:$8 sps:$4 sm:$0xff]   ;;  %v3739_v62 = vld [vmem:[#allocation2 + $0x144] ss:$8 sps:$4 sm:$0xff]   ;;  %v3737_v63 = vld [vmem:[#allocation2 + $0x140] ss:$8 sps:$4 sm:$0xff]  }
 0x4b7   : > { %2085 = vmatprep.subr.bf16.mxu0 %v3685_v11  ;;  %v3740_v11 = vld [vmem:[#allocation2 + $0x130] ss:$8 sps:$4 sm:$0xff]  }
 0x4ba   : > { %2086 = vmatpush1.bf16.msra.mxu0 %v3683_v1  ;;  %v3745_v1 = vld [vmem:[#allocation2 + $0x124] ss:$8 sps:$4 sm:$0xff]  }
 0x4bb   : > { %2087 = vmatprep.subr.bf16.mxu0 %v3688_v15  ;;  %v3743_v15 = vld [vmem:[#allocation2 + $0x120] ss:$8 sps:$4 sm:$0xff]  }
 0x4be   : > { %2088 = vmatpush1.bf16.msra.mxu0 %v3686_v3  ;;  %v3748_v3 = vld [vmem:[#allocation2 + $0x114] ss:$8 sps:$4 sm:$0xff]  }
 0x4bf   : > { %2089 = vmatprep.subr.bf16.mxu0 %v3691_v4  ;;  %v3746_v4 = vld [vmem:[#allocation2 + $0x110] ss:$8 sps:$4 sm:$0xff]  }
 0x4c2   : > { %2090 = vmatpush1.bf16.msra.mxu0 %v3689_v6  ;;  %v3751_v6 = vld [vmem:[#allocation2 + $0x104] ss:$8 sps:$4 sm:$0xff]  }
 0x4c3   : > { %2091 = vmatprep.subr.bf16.mxu0 %v3694_v7  ;;  %v3749_v7 = vld [vmem:[#allocation2 + $0x100] ss:$8 sps:$4 sm:$0xff]  }
 0x4c6   : > { %2092 = vmatpush1.bf16.msra.mxu0 %v3692_v8  ;;  %v3754_v8 = vld [vmem:[#allocation2 + $0x1f4] ss:$8 sps:$4 sm:$0xff]  }
 0x4c7   : > { %2093 = vmatprep.subr.bf16.mxu0 %v3697_v9  ;;  %v3752_v9 = vld [vmem:[#allocation2 + $0x1f0] ss:$8 sps:$4 sm:$0xff]  }
 0x4ca   : > { %2094 = vmatpush1.bf16.msra.mxu0 %v3695_v10 }
 0x4cb   : > { %2095 = vmatprep.subr.bf16.mxu0 %v3700_v12 }
 0x4ce   : > { %2096 = vmatpush1.bf16.msra.mxu0 %v3698_v13 }
 0x4cf   : > { %2097 = vmatprep.subr.bf16.mxu0 %v3703_v5 }
 0x4d2   : > { %2098 = vmatpush1.bf16.msra.mxu0 %v3701_v14 }
 0x4d3   : > { %2099 = vmatprep.subr.bf16.mxu0 %v3706_v16 }
 0x4d6   : > { %2100 = vmatpush2.bf16.msra.mxu0 %v3704_v17 }
 0x4d7   : > { %2101 = vmatprep.subr.bf16.mxu0 %v3709_v18  ;;  %v3757_v18 = vld [vmem:[#allocation2 + $0x1e4] ss:$8 sps:$4 sm:$0xff]  }
 0x4da   : > { %2102 = vmatpush2.bf16.msra.mxu0 %v3707_v19  ;;  %v3755_v19 = vld [vmem:[#allocation2 + $0x1e0] ss:$8 sps:$4 sm:$0xff]  }
 0x4db   : > { %2103 = vmatprep.subr.bf16.mxu0 %v3712_v20  ;;  %v3760_v20 = vld [vmem:[#allocation2 + $0x1d4] ss:$8 sps:$4 sm:$0xff]  }
 0x4de   : > { %2104 = vmatpush2.bf16.msra.mxu0 %v3710_v21  ;;  %v3758_v21 = vld [vmem:[#allocation2 + $0x1d0] ss:$8 sps:$4 sm:$0xff]  }
 0x4df   : > { %2105 = vmatprep.subr.bf16.mxu0 %v3715_v22  ;;  %v3763_v22 = vld [vmem:[#allocation2 + $0x1c4] ss:$8 sps:$4 sm:$0xff]  }
 0x4e2   : > { %2106 = vmatpush2.bf16.msra.mxu0 %v3713_v23  ;;  %v3761_v23 = vld [vmem:[#allocation2 + $0x1c0] ss:$8 sps:$4 sm:$0xff]  }
 0x4e3   : > { %2107 = vmatprep.subr.bf16.mxu0 %v3718_v24  ;;  %v3766_v24 = vld [vmem:[#allocation2 + $0x1b4] ss:$8 sps:$4 sm:$0xff]  }
 0x4e6   : > { %2108 = vmatpush2.bf16.msra.mxu0 %v3716_v25  ;;  %v3764_v25 = vld [vmem:[#allocation2 + $0x1b0] ss:$8 sps:$4 sm:$0xff]  }
 0x4e7   : > { %2109 = vmatprep.subr.bf16.mxu0 %v3721_v26  ;;  %v3769_v26 = vld [vmem:[#allocation2 + $0x1a4] ss:$8 sps:$4 sm:$0xff]  }
 0x4ea   : > { %2110 = vmatpush2.bf16.msra.mxu0 %v3719_v27  ;;  %v3767_v27 = vld [vmem:[#allocation2 + $0x1a0] ss:$8 sps:$4 sm:$0xff]  }
 0x4eb   : > { %2111 = vmatprep.subr.bf16.mxu0 %v3724_v28  ;;  %v3772_v28 = vld [vmem:[#allocation2 + $0x194] ss:$8 sps:$4 sm:$0xff]  }
 0x4ee   : > { %2112 = vmatpush2.bf16.msra.mxu0 %v3722_v29  ;;  %v3770_v29 = vld [vmem:[#allocation2 + $0x190] ss:$8 sps:$4 sm:$0xff]  }
 0x4ef   : > { %2113 = vmatprep.subr.bf16.mxu0 %v3727_v30  ;;  %v3775_v30 = vld [vmem:[#allocation2 + $0x184] ss:$8 sps:$4 sm:$0xff]  }
 0x4f2   : > { %2114 = vmatpush2.bf16.msra.mxu0 %v3725_v31  ;;  %v3773_v31 = vld [vmem:[#allocation2 + $0x180] ss:$8 sps:$4 sm:$0xff]  }
 0x4f3   : > { %2861 = vmatprep.subr.bf16.mxu0 %v3730_v56  ;;  %v4490_v56 = vld [vmem:[%s4727_s8 + $0x8] sm:$0xff] }
 0x4f5   : > { %2116 = vmatmul.mubr.bf16.vlgmr.msra.gmra.mxu0 %v4157_v36  ;;  %v1550_v36 = vrot.slane %v1540_v38, %v4428_v33 }
 0x575   : > { %v1524_v42 = vpop.f32.mrf.mxu0 }
 0x576   : > { %v1531_v43 = vadd.f32 %v1524_v42, %v4152_v34  ;;  %v3728_v34 = vld [vmem:[#allocation2 + $0x170] ss:$8 sps:$4 sm:$0xff]  }
 0x577   : > { %v1526_v45 = vpop.f32.mrf.mxu0  ;;  %1813 = vmatpush1.bf16.msra.mxu1 %v3728_v34  ;;  %2862 = vmatpush1.bf16.msra.mxu0 %v3728_v34 }
 0x578   : > { %v1532_v49 = vadd.f32 %v4439_v48, %v1526_v45  ;;  %v4442_v52 = vadd.f32 %v1546_v44, %v1531_v43  ;;  %1814 = vmatprep.subr.bf16.mxu1 %v3733_v57  ;;  %2863 = vmatprep.subr.bf16.mxu0 %v3733_v57 }
 0x579   : > { %v1528_v50 = vpop.f32.mrf.mxu0 }
 0x57a   : > { %v4444_v53 = vadd.f32 %v1550_v36, %v1532_v49  ;;  %v4473_v49 = vsub.s32 2, %v4164_v39  ;;  %v1576_v50 = vsub.s32 6, %v4164_v39 }
 0x57b   : > { %v1529_v54 = vpop.f32.mrf.mxu0  ;;  %1815 = vmatpush1.bf16.msra.mxu1 %v3731_v59  ;;  %2864 = vmatpush1.bf16.msra.mxu0 %v3731_v59 }
 0x57c   : > { %v1553_v55 = vadd.f32 %v4444_v53, %v4442_v52  ;;  %1816 = vmatprep.subr.bf16.mxu1 %v3736_v60  ;;  %2865 = vmatprep.subr.bf16.mxu0 %v3736_v60  ;;  %v1573_v54 = vrot.slane %v4172_v41, %v4473_v49 }
 0x57e   : > { %1554 = vadd.xlane.f32.xlu0 %v1553_v55  ;;  %v1577_v55 = vrot.slane %v4172_v41, %v1576_v50 }
 0x57f   : > { %1817 = vmatpush1.bf16.msra.mxu1 %v3734_v61  ;;  %2866 = vmatpush1.bf16.msra.mxu0 %v3734_v61  ;;  %v1908_v61 = vrot.slane %v4490_v56, %v4167_v40 }
 0x580   : > { %1818 = vmatprep.subr.bf16.mxu1 %v3739_v62  ;;  %2867 = vmatprep.subr.bf16.mxu0 %v3739_v62  ;;  %v1587_v59 = vrot.slane %v1577_v55, %v4473_v49 }
 0x583   : > { %1819 = vmatpush1.bf16.msra.mxu1 %v3737_v63  ;;  %2868 = vmatpush1.bf16.msra.mxu0 %v3737_v63 }
 0x584   : > { %1820 = vmatprep.subr.bf16.mxu1 %v3742_v0  ;;  %2869 = vmatprep.subr.bf16.mxu0 %v3742_v0 }
 0x587   : > { %1821 = vmatpush1.bf16.msra.mxu1 %v3740_v11  ;;  %2870 = vmatpush1.bf16.msra.mxu0 %v3740_v11 }
 0x588   : > { %1822 = vmatprep.subr.bf16.mxu1 %v3745_v1  ;;  %2871 = vmatprep.subr.bf16.mxu0 %v3745_v1 }
 0x58b   : > { %1823 = vmatpush1.bf16.msra.mxu1 %v3743_v15  ;;  %2872 = vmatpush1.bf16.msra.mxu0 %v3743_v15 }
 0x58c   : > { %1824 = vmatprep.subr.bf16.mxu1 %v3748_v3  ;;  %2873 = vmatprep.subr.bf16.mxu0 %v3748_v3  ;;  %v1918_v3 = vrot.slane %v1908_v61, %v4167_v40 }
 0x58f   : > { %1825 = vmatpush1.bf16.msra.mxu1 %v3746_v4  ;;  %2874 = vmatpush1.bf16.msra.mxu0 %v3746_v4 }
 0x590   : > { %1826 = vmatprep.subr.bf16.mxu1 %v3751_v6  ;;  %2875 = vmatprep.subr.bf16.mxu0 %v3751_v6 }
 0x593   : > { %1827 = vmatpush1.bf16.msra.mxu1 %v3749_v7  ;;  %2876 = vmatpush1.bf16.msra.mxu0 %v3749_v7 }
 0x594   : > { %1612 = vperm.xlu0 %3529, %v569_v58   ;;  %1828 = vmatprep.subr.bf16.mxu1 %v3754_v8  ;;  %v1583_v58 = vrot.slane %v1573_v54, %v4473_v49  ;;  %v1912_v54 = vrot.slane %v4490_v56, %v855_v2 }
 0x595   : > { %2877 = vmatprep.subr.bf16.mxu0 %v3754_v8 }
 0x596   : > { %v1922_v55 = vrot.slane %v1912_v54, %v4167_v40  ;;  %v3817_v54 = vld [vmem:[%s4726_s7 + $0x1c4] ss:$8 sps:$4 sm:$0xff]  }
 0x597   : > { %1829 = vmatpush2.bf16.msra.mxu1 %v3752_v9  ;;  %2878 = vmatpush2.bf16.msra.mxu0 %v3752_v9 }
 0x598   : > { %1830 = vmatprep.subr.bf16.mxu1 %v3757_v18  ;;  %2879 = vmatprep.subr.bf16.mxu0 %v3757_v18 }
 0x59b   : > { %1831 = vmatpush2.bf16.msra.mxu1 %v3755_v19  ;;  %2880 = vmatpush2.bf16.msra.mxu0 %v3755_v19 }
 0x59c   : > { %1832 = vmatprep.subr.bf16.mxu1 %v3760_v20  ;;  %2881 = vmatprep.subr.bf16.mxu0 %v3760_v20 }
 0x59f   : > { %1833 = vmatpush2.bf16.msra.mxu1 %v3758_v21  ;;  %2882 = vmatpush2.bf16.msra.mxu0 %v3758_v21 }
 0x5a0   : > { %1834 = vmatprep.subr.bf16.mxu1 %v3763_v22  ;;  %2883 = vmatprep.subr.bf16.mxu0 %v3763_v22 }
 0x5a3   : > { %1835 = vmatpush2.bf16.msra.mxu1 %v3761_v23  ;;  %2884 = vmatpush2.bf16.msra.mxu0 %v3761_v23 }
 0x5a4   : > { %1836 = vmatprep.subr.bf16.mxu1 %v3766_v24  ;;  %2885 = vmatprep.subr.bf16.mxu0 %v3766_v24 }
 0x5a7   : > { %1837 = vmatpush2.bf16.msra.mxu1 %v3764_v25  ;;  %2886 = vmatpush2.bf16.msra.mxu0 %v3764_v25 }
 0x5a8   : > { %1838 = vmatprep.subr.bf16.mxu1 %v3769_v26  ;;  %2887 = vmatprep.subr.bf16.mxu0 %v3769_v26 }
 0x5ab   : > { %1839 = vmatpush2.bf16.msra.mxu1 %v3767_v27  ;;  %2888 = vmatpush2.bf16.msra.mxu0 %v3767_v27 }
 0x5ac   : > { %1840 = vmatprep.subr.bf16.mxu1 %v3772_v28  ;;  %2889 = vmatprep.subr.bf16.mxu0 %v3772_v28 }
 0x5af   : > { %1841 = vmatpush2.bf16.msra.mxu1 %v3770_v29  ;;  %2890 = vmatpush2.bf16.msra.mxu0 %v3770_v29 }
 0x5b0   : > { %1842 = vmatprep.subr.bf16.mxu1 %v3775_v30  ;;  %2891 = vmatprep.subr.bf16.mxu0 %v3775_v30 }
 0x5b3   : > { %1843 = vmatpush2.bf16.msra.mxu1 %v3773_v31  ;;  %2892 = vmatpush2.bf16.msra.mxu0 %v3773_v31 }
 0x5b4   : > { %3465 = vmatprep.subr.bf16.mxu1 %v3925_v37 }
 0x5b5   : > { %v2117_v35 = vpop.f32.mrf.mxu0 }
 0x5b6   : > { %v2118_v9 = vadd.f32 %v2117_v35, %v1918_v3 }
 0x5b7   : > { %v4462_v38 = vpop.f32.mrf.mxu0 }
 0x5b9   : > { %v2121_v42 = vpop.f32.mrf.mxu0 }
 0x5bb   : > { %v2122_v43 = vpop.f32.mrf.mxu0 }
 0x5bc   : > { %v3778_v43 = vld [vmem:[%s4470_s22 + $0x8] ss:$16 sps:$4 sm:$0xff]  }
 0x607   : > { %v1555_v10 = vpop.xlane.xlu0 %1554 }
 0x608   : > { %v1557_v12 = vmul.f32 0.00390625, %v1555_v10 }
 0x60a   : > { %v4453_v13 = vsub.f32 %v4442_v52, %v1557_v12  ;;  %v4456_v5 = vsub.f32 %v4444_v53, %v1557_v12  ;;  %v4477_v52 = vsub.s32 3, %v4164_v39  ;;  %v1596_v53 = vsub.s32 7, %v4164_v39 }
 0x60c   : > { %v1560_v14 = vmul.f32 %v4453_v13, %v4453_v13  ;;  %v1561_v16 = vmul.f32 %v4456_v5, %v4456_v5  ;;  %v1593_v34 = vrot.slane %v4172_v41, %v4477_v52  ;;  %v1597_v57 = vrot.slane %v4172_v41, %v1596_v53 }
 0x60e   : > { %v1562_v17 = vadd.f32 %v1561_v16, %v1560_v14  ;;  %v1603_v63 = vrot.slane %v1593_v34, %v4477_v52  ;;  %v1607_v11 = vrot.slane %v1597_v57, %v4477_v52  ;;  %v602_v16 = vld [vmem:[%s4729_s10] sm:$0x3]  ;;  %v3780_v57 = vld [vmem:[%s4470_s22 + $0x4] ss:$16 sps:$4 sm:$0xff]  }
 0x60f   : > { %v4503_v41 = vpop.permute.xlu0 %1612  ;;  %v607_v18 = vrot.slane %v602_v16, %v4167_v40  ;;  %v611_v19 = vrot.slane %v602_v16, %v4428_v33 }
 0x610   : > { %1563 = vadd.xlane.f32.xlu1 %v1562_v17  ;;  %v2130_v17 = vld [vmem:[%s545_s28] sm:$0xf] }
 0x611   : > { %vm2131_vm4 = vcmp.ne.bf16.partialorder %v2130_v17, 0  ;;  %v4533_v20 = vadd.f32 %v4323_v46, %v607_v18  ;;  %v4537_v23 = vadd.f32 %v4325_v47, %v611_v19  ;;  %v3787_v17 = vld [vmem:[%s4726_s7 + $0x164] ss:$8 sps:$4 sm:$0xff]   ;;  %v3785_v18 = vld [vmem:[%s4726_s7 + $0x160] ss:$8 sps:$4 sm:$0xff]  }
 0x612   : > { %v2180_v21 = vsel %vm2131_vm4, 65537, %v3927_v51  ;;  %v3790_v19 = vld [vmem:[%s4726_s7 + $0x154] ss:$8 sps:$4 sm:$0xff]   ;;  %v3797_v46 = vld [vmem:[%s4726_s7 + $0x120] ss:$8 sps:$4 sm:$0xff]  }
 0x613   : > { %v2181_v26 = vunpack.c.l.b16 %v2180_v21  ;;  %v3788_v21 = vld [vmem:[%s4726_s7 + $0x150] ss:$8 sps:$4 sm:$0xff]  }
 0x615   : > { %vm4545_vm5 = vcmp.ne.s32.totalorder %v2181_v26, 0  ;;  %v3796_v26 = vld [vmem:[%s4726_s7 + $0x134] ss:$8 sps:$4 sm:$0xff]  }
 0x699   : > { %v1564_v44 = vpop.xlane.xlu1 %1563 }
 0x69a   : > { %v1565_v36 = vmul.f32 0.00390625, %v1564_v44 }
 0x69c   : > { %v1566_v45 = vadd.f32 1e-05, %v1565_v36 }
 0x69e   : > { %3838 = vrsqrt.f32 %v1566_v45 }
 0x6ab   : > { %v3839_v60 = vpop.eup %3838 }
 0x6ac   : > { %v1568_v62 = vmul.f32 %v3839_v60, %v4453_v13  ;;  %v1569_v0 = vmul.f32 %v3839_v60, %v4456_v5  ;;  %v3776_v13 = vld [vmem:[%s4470_s22] ss:$16 sps:$4 sm:$0xff]   ;;  %v2124_v5 = vmul.f32 0.088388346, %v2118_v9 }
 0x6ae   : > { %v1588_v1 = vmul.f32 %v1583_v58, %v1568_v62  ;;  %v1589_v15 = vmul.f32 %v1587_v59, %v1569_v0  ;;  %v2132_v14 = vpack.c.bf16 %v2124_v5, %v2124_v5  ;;  %v2120_v58 = vadd.f32 %v4462_v38, %v1922_v55  ;;  %v3815_v55 = vld [vmem:[%s4726_s7 + $0x1c0] ss:$8 sps:$4 sm:$0xff]  }
 0x6b0   : > { %v1608_v4 = vadd.f32 %v1603_v63, %v1588_v1  ;;  %v1609_v6 = vadd.f32 %v1607_v11, %v1589_v15  ;;  %v2125_v60 = vmul.f32 0.088388346, %v2120_v58  ;;  %v3823_v58 = vld [vmem:[%s4726_s7 + $0x1a4] ss:$8 sps:$4 sm:$0xff]  }
 0x6b2   : > { %v4507_v7 = vmul.f32 %v4503_v41, %v1608_v4  ;;  %v4510_v8 = vmul.f32 %v4503_v41, %v1609_v6  ;;  %v2133_v61 = vpack.c.bf16 %v2125_v60, %v2125_v60  ;;  %v3781_v4 = vld [vmem:[%s4470_s22 + $0xc] ss:$16 sps:$4 sm:$0xff]  }
 0x6b3   : > { %v3826_v60 = vld [vmem:[%s4726_s7 + $0x194] ss:$8 sps:$4 sm:$0xff]  }
 0x6b4   : > { %v1618_v10 = vpack.c.bf16 %v4510_v8, %v4510_v8  ;;  %v1617_v12 = vpack.c.bf16 %v4507_v7, %v4507_v7 }
 0x6b6   : > { %1844 = vmatprep.mubr.bf16.mxu1 %v1618_v10 }
 0x6b7   : > { %1845 = vmatmul.mubr.bf16.vlgmr.msra.gmra.mxu1 %v1617_v12 }
 0x6b8   : > { %3466 = vmatpush3.bf16.xpose.msra.mxu1 %v3776_v13  ;;  %3467 = vmatprep.mubr.msk.bf16.mxu1 %vm3926_vm0, %v3925_v37  ;;  %v3782_v13 = vld [vmem:[%s4726_s7 + $0x170] ss:$8 sps:$4 sm:$0xff]  }
 0x6b9   : > { %3471 = vmatprep.subr.bf16.mxu1 %v3925_v37 }
 0x6bf   : > { %3468 = vmatmul.mubr.bf16.vlgmr.msra.gmra.mxu1 %v2132_v14 }
 0x6c0   : > { %3473 = vmatprep.mubr.msk.bf16.mxu1 %vm3926_vm0, %v3925_v37  ;;  %3472 = vmatpush3.bf16.msra.mxu1 %v3778_v43  ;;  %v3811_v43 = vld [vmem:[%s4726_s7 + $0x1e4] ss:$8 sps:$4 sm:$0xff]  }
 0x6c1   : > { %3477 = vmatprep.subr.bf16.mxu1 %v3925_v37 }
 0x777   : > { %v1846_v22 = vpop.f32.mrf.mxu1 }
 0x778   : > { %v4540_v24 = vadd.f32 %v1846_v22, %v4533_v20  ;;  %v3793_v22 = vld [vmem:[%s4726_s7 + $0x144] ss:$8 sps:$4 sm:$0xff]  }
 0x779   : > { %v1848_v25 = vpop.f32.mrf.mxu1 }
 0x77a   : > { %v4543_v27 = vadd.f32 %v1848_v25, %v4537_v23  ;;  %v3791_v25 = vld [vmem:[%s4726_s7 + $0x140] ss:$8 sps:$4 sm:$0xff]  }
 0x77b   : > { %v1850_v28 = vpop.f32.mrf.mxu1 }
 0x77c   : > { %v3794_v28 = vld [vmem:[%s4726_s7 + $0x130] ss:$8 sps:$4 sm:$0xff]  }
 0x77d   : > { %v1851_v29 = vpop.f32.mrf.mxu1 }
 0x77e   : > { %v3799_v29 = vld [vmem:[%s4726_s7 + $0x124] ss:$8 sps:$4 sm:$0xff]  }
 0x77f   : > { %v2174_v51 = vpop.f32.mrf.mxu1 }
 0x780   : > { %v2183_v30 = vsel %vm4545_vm5, -1e+30, %v2174_v51  ;;  %v3802_v51 = vld [vmem:[%s4726_s7 + $0x114] ss:$8 sps:$4 sm:$0xff]  }
 0x781   : > { %v3469_v47 = vpop.f32.mrf.mxu1  ;;  %v2184_v31 = vsel %vm1128_vm3, %v2183_v30, -inf }
 0x782   : > { %2185 = vmax.xlane.f32.xlu1 %v2184_v31  ;;  %v3805_v47 = vld [vmem:[%s4726_s7 + $0x104] ss:$8 sps:$4 sm:$0xff]   ;;  %v3803_v31 = vld [vmem:[%s4726_s7 + $0x100] ss:$8 sps:$4 sm:$0xff]  }
 0x783   : > { %v2177_v35 = vpop.f32.mrf.mxu1 }
 0x784   : > { %v3808_v35 = vld [vmem:[%s4726_s7 + $0x1f4] ss:$8 sps:$4 sm:$0xff]  }
 0x785   : > { %v3470_v42 = vpop.f32.mrf.mxu1 }
 0x786   : > { %v3806_v42 = vld [vmem:[%s4726_s7 + $0x1f0] ss:$8 sps:$4 sm:$0xff]  }
 0x80b   : > { %v2186_v44 = vpop.xlane.xlu1 %2185 }
 0x80c   : > { %v2187_v36 = vsub.f32 %v2183_v30, %v2186_v44  ;;  %v3800_v30 = vld [vmem:[%s4726_s7 + $0x110] ss:$8 sps:$4 sm:$0xff]   ;;  %v3809_v44 = vld [vmem:[%s4726_s7 + $0x1e0] ss:$8 sps:$4 sm:$0xff]  }
 0x80e   : > { %v2188_v45 = vmul.f32 1.442695, %v2187_v36  ;;  %v3814_v36 = vld [vmem:[%s4726_s7 + $0x1d4] ss:$8 sps:$4 sm:$0xff]  }
 0x810   : > { %3840 = vpow2.f32 %v2188_v45  ;;  %v3812_v45 = vld [vmem:[%s4726_s7 + $0x1d0] ss:$8 sps:$4 sm:$0xff]  }
 0x81d   : > { %v3841_v34 = vpop.eup %3840 }
 0x81e   : > { %v2193_v59 = vpack.c.bf16 %v3841_v34, %v3841_v34  ;;  %v2190_v16 = vsel %vm1128_vm3, %v3841_v34, 0.0  ;;  %v3820_v34 = vld [vmem:[%s4726_s7 + $0x1b4] ss:$8 sps:$4 sm:$0xff]  }
 0x820   : > { %3474 = vmatmul.mubr.msk.bf16.vlgmr.msra.gmra.mxu1 %vm1128_vm3, %v2193_v59  ;;  %v3821_v59 = vld [vmem:[%s4726_s7 + $0x1a0] ss:$8 sps:$4 sm:$0xff]  }
 0x821   : > { %3478 = vmatpush3.bf16.xpose.msra.mxu1 %v3780_v57  ;;  %3479 = vmatprep.mubr.msk.bf16.mxu1 %vm3926_vm0, %v3925_v37  ;;  %v3818_v57 = vld [vmem:[%s4726_s7 + $0x1b0] ss:$8 sps:$4 sm:$0xff]  }
 0x822   : > { %3483 = vmatprep.subr.bf16.mxu1 %v3925_v37 }
 0x828   : > { %3480 = vmatmul.mubr.bf16.vlgmr.msra.gmra.mxu1 %v2133_v61  ;;  %v3824_v61 = vld [vmem:[%s4726_s7 + $0x190] ss:$8 sps:$4 sm:$0xff]  }
 0x829   : > { %3485 = vmatprep.mubr.msk.bf16.mxu1 %vm3926_vm0, %v3925_v37  ;;  %3484 = vmatpush3.bf16.msra.mxu1 %v3781_v4  ;;  %v3784_v37 = vld [vmem:[%s4726_s7 + $0x174] ss:$8 sps:$4 sm:$0xff]  }
 0x82a   : > { %2546 = vmatprep.subr.bf16.mxu1 %v3784_v37 }
 0x8e0   : > { %v4566_v40 = vpop.f32.mrf.mxu1 }
 0x8e2   : > { %v3475_v2 = vpop.f32.mrf.mxu1 }
 0x8e3   : > { %v3829_v2 = vld [vmem:[%s4726_s7 + $0x184] ss:$8 sps:$4 sm:$0xff]  }
 0x8e4   : > { %v2240_v38 = vpop.f32.mrf.mxu1 }
 0x8e5   : > { %v3827_v38 = vld [vmem:[%s4726_s7 + $0x180] ss:$8 sps:$4 sm:$0xff]  }
 0x8e6   : > { %v3476_v62 = vpop.f32.mrf.mxu1 }
 0x8e8   : > { %v2284_v63 = vpop.f32.mrf.mxu1 }
 0x8e9   : > { %v2290_v0 = vsel %vm4545_vm5, -1e+30, %v2284_v63 }
 0x8ea   : > { %v3481_v11 = vpop.f32.mrf.mxu1  ;;  %v2291_v1 = vsel %vm1128_vm3, %v2290_v0, -inf }
 0x8eb   : > { %2292 = vmax.xlane.f32.xlu1 %v2291_v1 }
 0x8ec   : > { %v2287_v15 = vpop.f32.mrf.mxu1 }
 0x8ee   : > { %v3482_v3 = vpop.f32.mrf.mxu1 }
 0x974   : > { %v2293_v6 = vpop.xlane.xlu1 %2292 }
 0x975   : > { %v2294_v9 = vsub.f32 %v2290_v0, %v2293_v6 }
 0x977   : > { %v2295_v10 = vmul.f32 1.442695, %v2294_v9 }
 0x979   : > { %3842 = vpow2.f32 %v2295_v10 }
 0x986   : > { %v3843_v12 = vpop.eup %3842 }
 0x987   : > { %v2297_v5 = vsel %vm1128_vm3, %v3843_v12, 0.0  ;;  %v2300_v14 = vpack.c.bf16 %v3843_v12, %v3843_v12  ;;  %v2592_v12 = vrot.slane %v4490_v56, %v4428_v33 }
 0x988   : > { %2298 = vadd.xlane.f32.xlu1 %v2297_v5 }
 0x989   : > { %3486 = vmatmul.mubr.msk.bf16.vlgmr.msra.gmra.mxu1 %vm1128_vm3, %v2300_v14  ;;  %v3867_v14 = vld [vmem:[%s4073_s26] sm:$0xff] }
 0x98a   : > { %2547 = vmatpush1.bf16.msra.mxu1 %v3782_v13  ;;  %v2596_v13 = vrot.slane %v4490_v56, %v1539_v32 }
 0x98b   : > { %2548 = vmatprep.subr.bf16.mxu1 %v3787_v17 }
 0x98c   : > { %2191 = vadd.xlane.f32.xlu1 %v2190_v16  ;;  %v2606_v17 = vrot.slane %v2596_v13, %v4428_v33 }
 0x98e   : > { %2549 = vmatpush1.bf16.msra.mxu1 %v3785_v18 }
 0x98f   : > { %2550 = vmatprep.subr.bf16.mxu1 %v3790_v19 }
 0x992   : > { %2551 = vmatpush1.bf16.msra.mxu1 %v3788_v21 }
 0x993   : > { %2552 = vmatprep.subr.bf16.mxu1 %v3793_v22 }
 0x996   : > { %2553 = vmatpush1.bf16.msra.mxu1 %v3791_v25 }
 0x997   : > { %2554 = vmatprep.subr.bf16.mxu1 %v3796_v26 }
 0x99a   : > { %2555 = vmatpush1.bf16.msra.mxu1 %v3794_v28 }
 0x99b   : > { %2556 = vmatprep.subr.bf16.mxu1 %v3799_v29 }
 0x99e   : > { %2557 = vmatpush1.bf16.msra.mxu1 %v3797_v46 }
 0x99f   : > { %2558 = vmatprep.subr.bf16.mxu1 %v3802_v51 }
 0x9a2   : > { %2559 = vmatpush1.bf16.msra.mxu1 %v3800_v30 }
 0x9a3   : > { %2560 = vmatprep.subr.bf16.mxu1 %v3805_v47 }
 0x9a6   : > { %2561 = vmatpush1.bf16.msra.mxu1 %v3803_v31 }
 0x9a7   : > { %2562 = vmatprep.subr.bf16.mxu1 %v3808_v35 }
 0x9aa   : > { %2563 = vmatpush2.bf16.msra.mxu1 %v3806_v42 }
 0x9ab   : > { %2564 = vmatprep.subr.bf16.mxu1 %v3811_v43  ;;  %v2628_v43 = vrot.slane %v4490_v56, %v4473_v49 }
 0x9ae   : > { %2565 = vmatpush2.bf16.msra.mxu1 %v3809_v44  ;;  %v2652_v44 = vrot.slane %v4490_v56, %v1596_v53 }
 0x9af   : > { %2566 = vmatprep.subr.bf16.mxu1 %v3814_v36  ;;  %v2648_v36 = vrot.slane %v4490_v56, %v4477_v52 }
 0x9b2   : > { %2567 = vmatpush2.bf16.msra.mxu1 %v3812_v45 }
 0x9b3   : > { %2568 = vmatprep.subr.bf16.mxu1 %v3817_v54  ;;  %v2638_v54 = vrot.slane %v2628_v43, %v4473_v49 }
 0x9b6   : > { %2569 = vmatpush2.bf16.msra.mxu1 %v3815_v55 }
 0x9b7   : > { %2570 = vmatprep.subr.bf16.mxu1 %v3820_v34 }
 0x9ba   : > { %2571 = vmatpush2.bf16.msra.mxu1 %v3818_v57 }
 0x9bb   : > { %2572 = vmatprep.subr.bf16.mxu1 %v3823_v58  ;;  %v2662_v58 = vrot.slane %v2652_v44, %v4477_v52 }
 0x9be   : > { %2573 = vmatpush2.bf16.msra.mxu1 %v3821_v59 }
 0x9bf   : > { %2574 = vmatprep.subr.bf16.mxu1 %v3826_v60 }
 0x9c2   : > { %2575 = vmatpush2.bf16.msra.mxu1 %v3824_v61 }
 0x9c3   : > { %2576 = vmatprep.subr.bf16.mxu1 %v3829_v2 }
 0x9c6   : > { %2577 = vmatpush2.bf16.msra.mxu1 %v3827_v38 }
 0xa11   : > { %v2299_v62 = vpop.xlane.xlu1 %2298 }
 0xa15   : > { %v2192_v63 = vpop.xlane.xlu1 %2191 }
 0xa16   : > { %3844 = vrcp.f32 %v2192_v63 }
 0xa17   : > { %3846 = vrcp.f32 %v2299_v62  ;;  %v1856_v62 = vsub.f32 0.0, %v4543_v27 }
 0xa23   : > { %v3845_v0 = vpop.eup %3844 }
 0xa24   : > { %v3847_v11 = vpop.eup %3846  ;;  %v2245_v15 = vmul.f32 %v3845_v0, %v4566_v40  ;;  %v2602_v40 = vrot.slane %v2592_v12, %v4428_v33  ;;  %v1859_v0 = vmul.f32 1.442695, %v1856_v62 }
 0xa26   : > { %v2351_v9 = vpack.c.bf16 %v2245_v15, %v2245_v15 }
 0xa49   : > { %v2342_v1 = vpop.f32.mrf.mxu1 }
 0xa4a   : > { %v2350_v3 = vmul.f32 %v3847_v11, %v2342_v1 }
 0xa4b   : > { %v3487_v4 = vpop.f32.mrf.mxu1 }
 0xa4c   : > { %v2352_v37 = vpack.c.bf16 %v2350_v3, %v2350_v3 }
 0xa4d   : > { %v2345_v6 = vpop.f32.mrf.mxu1 }
 0xa4e   : > { %2578 = vmatprep.mubr.bf16.mxu1 %v2352_v37 }
 0xa4f   : > { %v3488_v10 = vpop.f32.mrf.mxu1  ;;  %2579 = vmatmul.mubr.bf16.vlgmr.msra.gmra.mxu1 %v2351_v9 }
 0xb0f   : > { %v2580_v5 = vpop.f32.mrf.mxu1 }
 0xb10   : > { %v2587_v16 = vadd.f32 %v3867_v14, %v2580_v5 }
 0xb11   : > { %v2582_v18 = vpop.f32.mrf.mxu1 }
 0xb12   : > { %v2588_v19 = vadd.f32 %v4439_v48, %v2582_v18  ;;  %v2607_v22 = vadd.f32 %v2602_v40, %v2587_v16  ;;  %v2632_v48 = vrot.slane %v4490_v56, %v1576_v50  ;;  %v2658_v50 = vrot.slane %v2648_v36, %v4477_v52 }
 0xb13   : > { %v2584_v21 = vpop.f32.mrf.mxu1 }
 0xb14   : > { %v2608_v25 = vadd.f32 %v2606_v17, %v2588_v19  ;;  %v2642_v45 = vrot.slane %v2632_v48, %v4473_v49  ;;  %v1855_v49 = vsub.f32 0.0, %v4540_v24 }
 0xb15   : > { %v2585_v26 = vpop.f32.mrf.mxu1 }
 0xb16   : > { %v2609_v28 = vadd.f32 %v2608_v25, %v2607_v22  ;;  %v1857_v63 = vmul.f32 1.442695, %v1855_v49 }
 0xb18   : > { %2610 = vadd.xlane.f32.xlu1 %v2609_v28 }
 0xba1   : > { %v2611_v29 = vpop.xlane.xlu1 %2610 }
 0xba2   : > { %v2612_v46 = vmul.f32 0.00390625, %v2611_v29 }
 0xba4   : > { %v2613_v51 = vsub.f32 %v2607_v22, %v2612_v46  ;;  %v2614_v32 = vsub.f32 %v2608_v25, %v2612_v46 }
 0xba6   : > { %v2615_v30 = vmul.f32 %v2613_v51, %v2613_v51  ;;  %v2616_v47 = vmul.f32 %v2614_v32, %v2614_v32 }
 0xba8   : > { %v2617_v31 = vadd.f32 %v2616_v47, %v2615_v30 }
 0xbaa   : > { %2618 = vadd.xlane.f32.xlu1 %v2617_v31 }
 0xc33   : > { %v2619_v35 = vpop.xlane.xlu1 %2618 }
 0xc34   : > { %v2620_v42 = vmul.f32 0.00390625, %v2619_v35 }
 0xc36   : > { %v2621_v33 = vadd.f32 1e-05, %v2620_v42 }
 0xc38   : > { %3848 = vrsqrt.f32 %v2621_v33 }
 0xc39   : > { %3850 = vpow2.f32 %v1857_v63 }
 0xc3a   : > { %3852 = vpow2.f32 %v1859_v0 }
 0xc45   : > { %v3849_v55 = vpop.eup %3848 }
 0xc46   : > { %v2623_v34 = vmul.f32 %v3849_v55, %v2613_v51  ;;  %v2624_v57 = vmul.f32 %v3849_v55, %v2614_v32  ;;  %v3851_v24 = vpop.eup %3850 }
 0xc47   : > { %v3853_v27 = vpop.eup %3852  ;;  %v1861_v12 = vadd.f32 1.0, %v3851_v24 }
 0xc48   : > { %v2644_v59 = vmul.f32 %v2642_v45, %v2624_v57  ;;  %v2643_v60 = vmul.f32 %v2638_v54, %v2623_v34  ;;  %v1862_v13 = vadd.f32 1.0, %v3853_v27 }
 0xc4a   : > { %v2664_v61 = vadd.f32 %v2662_v58, %v2644_v59  ;;  %v2663_v39 = vadd.f32 %v2658_v50, %v2643_v60 }
 0xc4c   : > { %v2666_v53 = vmul.f32 %v2664_v61, %v4503_v41  ;;  %v2665_v2 = vmul.f32 %v2663_v39, %v4503_v41 }
 0xc4e   : > { %v2668_v56 = vpack.c.bf16 %v2666_v53, %v2666_v53  ;;  %v2667_v38 = vpack.c.bf16 %v2665_v2, %v2665_v2 }
 0xc50   : > { %2893 = vmatprep.mubr.bf16.mxu0 %v2668_v56 }
 0xc51   : > { %2894 = vmatmul.mubr.bf16.vlgmr.msra.gmra.mxu0 %v2667_v38 }
 0xd11   : > { %v2895_v11 = vpop.f32.mrf.mxu0 }
 0xd12   : > { %v2902_v52 = vadd.f32 %v2895_v11, %v4533_v20 }
 0xd13   : > { %v2897_v1 = vpop.f32.mrf.mxu0 }
 0xd14   : > { %v2904_v15 = vsub.f32 0.0, %v2902_v52  ;;  %v2903_v3 = vadd.f32 %v2897_v1, %v4537_v23 }
 0xd15   : > { %v2899_v4 = vpop.f32.mrf.mxu0 }
 0xd16   : > { %v2906_v37 = vmul.f32 1.442695, %v2904_v15  ;;  %v2905_v6 = vsub.f32 0.0, %v2903_v3 }
 0xd17   : > { %v2900_v9 = vpop.f32.mrf.mxu0 }
 0xd18   : > { %3854 = vpow2.f32 %v2906_v37  ;;  %v2908_v10 = vmul.f32 1.442695, %v2905_v6 }
 0xd1a   : > { %3856 = vpow2.f32 %v2908_v10 }
 0xd1b   : > { %3858 = vrcp.f32 %v1861_v12 }
 0xd1c   : > { %3860 = vrcp.f32 %v1862_v13 }
 0xd25   : > { %v3855_v5 = vpop.eup %3854 }
 0xd26   : > { %v2910_v14 = vadd.f32 1.0, %v3855_v5 }
 0xd27   : > { %v3857_v20 = vpop.eup %3856 }
 0xd28   : > { %3862 = vrcp.f32 %v2910_v14  ;;  %v2911_v16 = vadd.f32 1.0, %v3857_v20  ;;  %v3859_v23 = vpop.eup %3858 }
 0xd29   : > { %v3861_v40 = vpop.eup %3860  ;;  %v1867_v18 = vmul.f32 %v3859_v23, %v4507_v7 }
 0xd2a   : > { %3864 = vrcp.f32 %v2911_v16  ;;  %v1868_v22 = vmul.f32 %v3861_v40, %v4510_v8 }
 0xd35   : > { %v3863_v17 = vpop.eup %3862 }
 0xd36   : > { %v2916_v19 = vmul.f32 %v3863_v17, %v2665_v2 }
 0xd37   : > { %v3865_v21 = vpop.eup %3864 }
 0xd38   : > { %v2918_v25 = vadd.f32 %v2916_v19, %v1867_v18  ;;  %v2917_v26 = vmul.f32 %v3865_v21, %v2666_v53 }
 0xd3a   : > { %v2920_v28 = vmul.f32 0.70710677, %v2918_v25  ;;  %v2919_v29 = vadd.f32 %v2917_v26, %v1868_v22 }
 0xd3c   : > { %v2922_v46 = vmul.f32 %v2920_v28, %v4503_v41  ;;  %v2921_v51 = vmul.f32 0.70710677, %v2919_v29 }
 0xd3e   : > { %2924 = vst [vmem:[%s561_s30] sm:$0xff] %v2922_v46  ;;  %v2923_v32 = vmul.f32 %v2921_v51, %v4503_v41 }
 0xd40   : > { %2925 = vst [vmem:[%s561_s30 + $0x8] sm:$0xff] %v2923_v32 }
 0xd41 PF: > { %s22_s19 = sadd.s32 1, %s3920_s19   ;;  %s4737_s17 = smov %s3916_s18 }
 0xd42   : > { %p19_p2 = scmp.ge.s32.totalorder %s22_s19, 4   ;;  %s4738_s18 = smov %s4740_s21 }
 0xd44   :  { %21 = sbr.rel (!%p19_p2) target bundleno = 2 (0x2), region = 118 }
 0xd49   :  { %2955 = vsyncpa [#allocation3], 1 }
 0xd4a   :  { %2957 = vsyncpa [#allocation3 + $0x1], 1 }

// kernel: parallel_attention_layer.11
= control target key start
LH: loop header
LB: loop body
LE: loop exit
PB: predicated region body
PF: predicated region fallthrough
CT: control target
= control target key end

     0   :  { %11 = vsyncpa [#allocation3], 0  ;;  %s2520_s0 = inlined_call_operand.vmem [shape: f32[2,8,256], index: 0, kind: input, shape index: {}]   ;;  %s2521_s1 = inlined_call_operand.vmem [shape: f32[2,8,1], index: 1, kind: input, shape index: {}]   ;;  %s2522_s2 = inlined_call_operand.vmem [shape: bf16[256,512], index: 2, kind: input, shape index: {}]   ;;  %s2523_s3 = inlined_call_operand.vmem [shape: f32[1,512], index: 3, kind: input, shape index: {}]   ;;  %s2524_s4 = inlined_call_operand.vmem [shape: bf16[512,256], index: 4, kind: input, shape index: {}]   ;;  %s2525_s5 = inlined_call_operand.vmem [shape: f32[3,256], index: 5, kind: input, shape index: {}]   ;;  %s2526_s6 = inlined_call_operand.hbm [shape: f32[2,8,256], index: 6, kind: output, shape index: {}]  }
   0x1   :  { %13 = vsyncpa [#allocation3 + $0x1], 0  ;;  %s1983_s21 = smov 0   ;;  %s1985_s22 = smov 0  }
   0x2   :  { %s1987_s23 = smov 0   ;;  %s1989_s24 = smov 0  }
   0x3   :  { %s1991_s25 = smov 0   ;;  %s1993_s26 = smov 0  }
   0x4 LB: > { %s1472_s27 = sadd.s32 4294967295, %s1944_s26   ;;  %s1473_s28 = sadd.s32 4294967294, %s1944_s26   ;;  %s1944_s26 = sphi %s1993_s26, %s19_s26   ;;  %s1940_s25 = sphi %s1991_s25, %s2533_s25   ;;  %s1936_s24 = sphi %s1989_s24, %s2532_s24   ;;  %s1932_s23 = sphi %s1987_s23, %s2531_s23   ;;  %s1928_s22 = sphi %s1985_s22, %s2530_s22   ;;  %s1924_s21 = sphi %s1983_s21, %s2529_s21  }
   0x5   : > { %s31_s29 = sadd.s32 1, %s1940_s25  ;;  %s180_s30 = sadd.s32 1, %s1932_s23 }
   0x6   : > { %p33_p0 = scmp.ge.s32.totalorder %s31_s29, 2  ;;  %p190_p1 = scmp.ne.s32.totalorder %s1932_s23, %s1928_s22 }
   0x7   : > { %p191_p2 = scmp.eq.s32.totalorder %s1472_s27, 1  ;;  %p196_p3 = scmp.ne.s32.totalorder %s1928_s22, %s1924_s21 }
   0x8   : > { %s2535_s29 = smov (%p33_p0, %s31_s29), 0  ;;  %p197_p5 = scmp.eq.s32.totalorder %s1473_s28, 1 }
   0x9   : > { %p2023_p4 = por %p191_p2, %p190_p1  ;;  %s175_s8 = ssub.s32 %s1940_s25, %s2535_s29 }
   0xa   : > { %p1476_p6 = scmp.ge.s32.totalorder %s1944_s26, 1  ;;  %p178_p7 = scmp.eq.s32.totalorder %s175_s8, 0 }
   0xb   : > { %p2030_p8 = por %p197_p5, %p196_p3  ;;  %p249_p9 = scmp.lt.s32.totalorder %s1944_s26, 3 }
   0xc   : > { %s2036_s10 = scalar_select %p178_p7, %s1932_s23, %s180_s30  }
   0xd   : > { %p250_p10 = pnand %p1476_p6, %p249_p9 }
   0xe   : > { %p290_p11 = scmp.lt.s32.totalorder (!%p250_p10), %s1936_s24, 1  ;;  %s1615_s18 = sshll.u32 (!%p250_p10), %s1936_s24, 8 }
   0xf   : > { %253 = sbr.rel (%p250_p10) target bundleno = 813 (0x32d), region = 44  ;;  %s2480_s8 = scalar_lea.hbm (!%p250_p10), %s2526_s6, %s1615_s18 }
  0x14   : > { %v1674_v0 = vld [vmem:[%s2522_s2 + $0xe4] ss:$16 sps:$4 sm:$0xff]   ;;  %v1676_v1 = vld [vmem:[%s2522_s2 + $0xec] ss:$16 sps:$4 sm:$0xff]   ;;  %v1678_v2 = vld [vmem:[%s2522_s2 + $0xe0] ss:$16 sps:$4 sm:$0xff]  }
  0x15   : > { %717 = vmatprep.subr.bf16.mxu0 %v1674_v0  ;;  %v1679_v3 = vld [vmem:[%s2522_s2 + $0xe8] ss:$16 sps:$4 sm:$0xff]   ;;  %758 = vmatprep.subr.bf16.mxu1 %v1676_v1  ;;  %v1680_v4 = vld [vmem:[%s2522_s2 + $0xc4] ss:$16 sps:$4 sm:$0xff]   ;;  %v1682_v5 = vld [vmem:[%s2522_s2 + $0xcc] ss:$16 sps:$4 sm:$0xff]  }
  0x16   : > { %718 = vmatpush1.bf16.msra.mxu0 %v1678_v2  ;;  %759 = vmatpush1.bf16.msra.mxu1 %v1679_v3  ;;  %v1684_v6 = vld [vmem:[%s2522_s2 + $0xc0] ss:$16 sps:$4 sm:$0xff]   ;;  %v1685_v7 = vld [vmem:[%s2522_s2 + $0xc8] ss:$16 sps:$4 sm:$0xff]   ;;  %v1686_v8 = vld [vmem:[%s2522_s2 + $0xa4] ss:$16 sps:$4 sm:$0xff]  }
  0x17   : > { %719 = vmatprep.subr.bf16.mxu0 %v1680_v4  ;;  %760 = vmatprep.subr.bf16.mxu1 %v1682_v5  ;;  %v1688_v9 = vld [vmem:[%s2522_s2 + $0xac] ss:$16 sps:$4 sm:$0xff]   ;;  %v1690_v10 = vld [vmem:[%s2522_s2 + $0xa0] ss:$16 sps:$4 sm:$0xff]   ;;  %v1691_v11 = vld [vmem:[%s2522_s2 + $0xa8] ss:$16 sps:$4 sm:$0xff]  }
  0x18   : > { %v1692_v12 = vld [vmem:[%s2522_s2 + $0x84] ss:$16 sps:$4 sm:$0xff]   ;;  %v1694_v13 = vld [vmem:[%s2522_s2 + $0x8c] ss:$16 sps:$4 sm:$0xff]   ;;  %v1696_v14 = vld [vmem:[%s2522_s2 + $0x80] ss:$16 sps:$4 sm:$0xff]  }
  0x19   : > { %v1697_v15 = vld [vmem:[%s2522_s2 + $0x88] ss:$16 sps:$4 sm:$0xff]   ;;  %v1698_v16 = vld [vmem:[%s2522_s2 + $0x64] ss:$16 sps:$4 sm:$0xff]   ;;  %v1700_v17 = vld [vmem:[%s2522_s2 + $0x6c] ss:$16 sps:$4 sm:$0xff]  }
  0x1a   : > { %720 = vmatpush1.bf16.msra.mxu0 %v1684_v6  ;;  %761 = vmatpush1.bf16.msra.mxu1 %v1685_v7  ;;  %v1702_v18 = vld [vmem:[%s2522_s2 + $0x60] ss:$16 sps:$4 sm:$0xff]   ;;  %v1703_v19 = vld [vmem:[%s2522_s2 + $0x68] ss:$16 sps:$4 sm:$0xff]   ;;  %v1704_v20 = vld [vmem:[%s2522_s2 + $0x44] ss:$16 sps:$4 sm:$0xff]  }
  0x1b   : > { %721 = vmatprep.subr.bf16.mxu0 %v1686_v8  ;;  %762 = vmatprep.subr.bf16.mxu1 %v1688_v9  ;;  %v1706_v21 = vld [vmem:[%s2522_s2 + $0x4c] ss:$16 sps:$4 sm:$0xff]   ;;  %v1708_v22 = vld [vmem:[%s2522_s2 + $0x40] ss:$16 sps:$4 sm:$0xff]   ;;  %v1709_v23 = vld [vmem:[%s2522_s2 + $0x48] ss:$16 sps:$4 sm:$0xff]  }
  0x1c   : > { %v1710_v24 = vld [vmem:[%s2522_s2 + $0x24] ss:$16 sps:$4 sm:$0xff]   ;;  %v1712_v25 = vld [vmem:[%s2522_s2 + $0x2c] ss:$16 sps:$4 sm:$0xff]   ;;  %v1714_v26 = vld [vmem:[%s2522_s2 + $0x20] ss:$16 sps:$4 sm:$0xff]  }
  0x1d   : > { %v1715_v27 = vld [vmem:[%s2522_s2 + $0x28] ss:$16 sps:$4 sm:$0xff]   ;;  %v1716_v28 = vld [vmem:[%s2522_s2 + $0x4] ss:$16 sps:$4 sm:$0xff]   ;;  %v1718_v29 = vld [vmem:[%s2522_s2 + $0xc] ss:$16 sps:$4 sm:$0xff]  }
  0x1e   : > { %722 = vmatpush1.bf16.msra.mxu0 %v1690_v10  ;;  %763 = vmatpush1.bf16.msra.mxu1 %v1691_v11  ;;  %v1720_v30 = vld [vmem:[%s2522_s2] ss:$16 sps:$4 sm:$0xff]   ;;  %v1721_v31 = vld [vmem:[%s2522_s2 + $0x8] ss:$16 sps:$4 sm:$0xff]   ;;  %v1722_v32 = vld [vmem:[%s2522_s2 + $0x1e4] ss:$16 sps:$4 sm:$0xff]  }
  0x1f   : > { %723 = vmatprep.subr.bf16.mxu0 %v1692_v12  ;;  %764 = vmatprep.subr.bf16.mxu1 %v1694_v13  ;;  %v1724_v33 = vld [vmem:[%s2522_s2 + $0x1ec] ss:$16 sps:$4 sm:$0xff]   ;;  %v1726_v34 = vld [vmem:[%s2522_s2 + $0x1e0] ss:$16 sps:$4 sm:$0xff]   ;;  %v1727_v35 = vld [vmem:[%s2522_s2 + $0x1e8] ss:$16 sps:$4 sm:$0xff]  }
  0x20   : > { %v1728_v36 = vld [vmem:[%s2522_s2 + $0x1c4] ss:$16 sps:$4 sm:$0xff]   ;;  %v1730_v37 = vld [vmem:[%s2522_s2 + $0x1cc] ss:$16 sps:$4 sm:$0xff]   ;;  %s2154_s17 = scalar_select %p290_p11, %s1936_s24, 1 }
  0x21   : > { %v1732_v38 = vld [vmem:[%s2522_s2 + $0x1c0] ss:$16 sps:$4 sm:$0xff]   ;;  %v1733_v39 = vld [vmem:[%s2522_s2 + $0x1c8] ss:$16 sps:$4 sm:$0xff]   ;;  %v1734_v40 = vld [vmem:[%s2522_s2 + $0x1a4] ss:$16 sps:$4 sm:$0xff]  }
  0x22   : > { %724 = vmatpush1.bf16.msra.mxu0 %v1696_v14  ;;  %765 = vmatpush1.bf16.msra.mxu1 %v1697_v15  ;;  %v1736_v41 = vld [vmem:[%s2522_s2 + $0x1ac] ss:$16 sps:$4 sm:$0xff]   ;;  %s1614_s12 = sshll.u32 %s2154_s17, 4  ;;  %v1738_v42 = vld [vmem:[%s2522_s2 + $0x1a0] ss:$16 sps:$4 sm:$0xff]   ;;  %s1480_s14 = sshll.u32 %s2154_s17, 3 }
  0x23   : > { %725 = vmatprep.subr.bf16.mxu0 %v1698_v16  ;;  %766 = vmatprep.subr.bf16.mxu1 %v1700_v17  ;;  %v1739_v43 = vld [vmem:[%s2522_s2 + $0x1a8] ss:$16 sps:$4 sm:$0xff]   ;;  %v1740_v44 = vld [vmem:[%s2522_s2 + $0x184] ss:$16 sps:$4 sm:$0xff]   ;;  %s2181_s28 = scalar_lea.vmem %s2520_s0, %s1614_s12  ;;  %v1742_v45 = vld [vmem:[%s2522_s2 + $0x18c] ss:$16 sps:$4 sm:$0xff]   ;;  %s305_s16 = scalar_lea.vmem %s2521_s1, %s1480_s14 }
  0x24   : > { %v2187_v46 = vld [vmem:[%s2181_s28 + $0x8] sm:$0xff]  ;;  %v1744_v47 = vld [vmem:[%s2522_s2 + $0x180] ss:$16 sps:$4 sm:$0xff]   ;;  %v1746_v50 = vld [vmem:[%s2522_s2 + $0x164] ss:$16 sps:$4 sm:$0xff]   ;;  %s287_s17 = sand.u32 1, %s1928_s22  }
  0x25   : > { %v1745_v48 = vld [vmem:[%s2522_s2 + $0x188] ss:$16 sps:$4 sm:$0xff]   ;;  %v310_v49 = vpack.c.bf16 %v2187_v46, %v2187_v46  ;;  %v1748_v51 = vld [vmem:[%s2522_s2 + $0x16c] ss:$16 sps:$4 sm:$0xff]   ;;  %v1750_v52 = vld [vmem:[%s2522_s2 + $0x160] ss:$16 sps:$4 sm:$0xff]  }
  0x26   : > { %726 = vmatpush1.bf16.msra.mxu0 %v1702_v18  ;;  %767 = vmatpush1.bf16.msra.mxu1 %v1703_v19  ;;  %v1751_v53 = vld [vmem:[%s2522_s2 + $0x168] ss:$16 sps:$4 sm:$0xff]   ;;  %v1752_v54 = vld [vmem:[%s2522_s2 + $0x144] ss:$16 sps:$4 sm:$0xff]   ;;  %v1754_v55 = vld [vmem:[%s2522_s2 + $0x14c] ss:$16 sps:$4 sm:$0xff]  }
  0x27   : > { %727 = vmatprep.subr.bf16.mxu0 %v1704_v20  ;;  %768 = vmatprep.subr.bf16.mxu1 %v1706_v21  ;;  %v1756_v56 = vld [vmem:[%s2522_s2 + $0x140] ss:$16 sps:$4 sm:$0xff]   ;;  %v1757_v57 = vld [vmem:[%s2522_s2 + $0x148] ss:$16 sps:$4 sm:$0xff]   ;;  %v1758_v58 = vld [vmem:[%s2522_s2 + $0x124] ss:$16 sps:$4 sm:$0xff]  }
  0x28   : > { %749 = vmatprep.mubr.bf16.mxu0 %v310_v49  ;;  %790 = vmatprep.mubr.bf16.mxu1 %v310_v49  ;;  %v1760_v59 = vld [vmem:[%s2522_s2 + $0x12c] ss:$16 sps:$4 sm:$0xff]   ;;  %v1762_v60 = vld [vmem:[%s2522_s2 + $0x120] ss:$16 sps:$4 sm:$0xff]   ;;  %v1763_v61 = vld [vmem:[%s2522_s2 + $0x128] ss:$16 sps:$4 sm:$0xff]  }
  0x29   : > { %v1764_v62 = vld [vmem:[%s2522_s2 + $0x104] ss:$16 sps:$4 sm:$0xff]   ;;  %v1766_v63 = vld [vmem:[%s2522_s2 + $0x10c] ss:$16 sps:$4 sm:$0xff]   ;;  %v1768_v0 = vld [vmem:[%s2522_s2 + $0x100] ss:$16 sps:$4 sm:$0xff]  }
  0x2a   : > { %728 = vmatpush1.bf16.msra.mxu0 %v1708_v22  ;;  %769 = vmatpush1.bf16.msra.mxu1 %v1709_v23  ;;  %v1769_v1 = vld [vmem:[%s2522_s2 + $0x108] ss:$16 sps:$4 sm:$0xff]   ;;  %v2246_v2 = vld [vmem:[%s2181_s28] sm:$0xff]  ;;  %v1772_v3 = vld [vmem:[%s2524_s4 + $0x74] ss:$8 sps:$4 sm:$0xff]   ;;  %s1477_s28 = sshll.u32 %s287_s17, 4 }
  0x2b   : > { %729 = vmatprep.subr.bf16.mxu0 %v1710_v24  ;;  %770 = vmatprep.subr.bf16.mxu1 %v1712_v25  ;;  %v1775_v4 = vld [vmem:[%s2524_s4 + $0x174] ss:$8 sps:$4 sm:$0xff]   ;;  %v309_v5 = vpack.c.bf16 %v2246_v2, %v2246_v2  ;;  %v1770_v6 = vld [vmem:[%s2524_s4 + $0x70] ss:$8 sps:$4 sm:$0xff]   ;;  %v1778_v8 = vld [vmem:[%s2524_s4 + $0x64] ss:$8 sps:$4 sm:$0xff]  }
  0x2c   : > { %v1773_v7 = vld [vmem:[%s2524_s4 + $0x170] ss:$8 sps:$4 sm:$0xff]   ;;  %v1781_v9 = vld [vmem:[%s2524_s4 + $0x164] ss:$8 sps:$4 sm:$0xff]   ;;  %v1776_v10 = vld [vmem:[%s2524_s4 + $0x60] ss:$8 sps:$4 sm:$0xff]  }
  0x2d   : > { %v1779_v11 = vld [vmem:[%s2524_s4 + $0x160] ss:$8 sps:$4 sm:$0xff]   ;;  %v1784_v12 = vld [vmem:[%s2524_s4 + $0x54] ss:$8 sps:$4 sm:$0xff]   ;;  %v1782_v14 = vld [vmem:[%s2524_s4 + $0x50] ss:$8 sps:$4 sm:$0xff]  }
  0x2e   : > { %730 = vmatpush1.bf16.msra.mxu0 %v1714_v26  ;;  %771 = vmatpush1.bf16.msra.mxu1 %v1715_v27  ;;  %v1787_v13 = vld [vmem:[%s2524_s4 + $0x154] ss:$8 sps:$4 sm:$0xff]   ;;  %v1785_v15 = vld [vmem:[%s2524_s4 + $0x150] ss:$8 sps:$4 sm:$0xff]   ;;  %v1790_v16 = vld [vmem:[%s2524_s4 + $0x44] ss:$8 sps:$4 sm:$0xff]  }
  0x2f   : > { %731 = vmatprep.subr.bf16.mxu0 %v1716_v28  ;;  %772 = vmatprep.subr.bf16.mxu1 %v1718_v29  ;;  %v1793_v17 = vld [vmem:[%s2524_s4 + $0x144] ss:$8 sps:$4 sm:$0xff]   ;;  %v1788_v18 = vld [vmem:[%s2524_s4 + $0x40] ss:$8 sps:$4 sm:$0xff]   ;;  %v1796_v20 = vld [vmem:[%s2524_s4 + $0x34] ss:$8 sps:$4 sm:$0xff]  }
  0x30   : > { %v1791_v19 = vld [vmem:[%s2524_s4 + $0x140] ss:$8 sps:$4 sm:$0xff]   ;;  %v1799_v21 = vld [vmem:[%s2524_s4 + $0x134] ss:$8 sps:$4 sm:$0xff]   ;;  %v1794_v22 = vld [vmem:[%s2524_s4 + $0x30] ss:$8 sps:$4 sm:$0xff]  }
  0x31   : > { %v1797_v23 = vld [vmem:[%s2524_s4 + $0x130] ss:$8 sps:$4 sm:$0xff]   ;;  %v1802_v24 = vld [vmem:[%s2524_s4 + $0x24] ss:$8 sps:$4 sm:$0xff]   ;;  %v1800_v26 = vld [vmem:[%s2524_s4 + $0x20] ss:$8 sps:$4 sm:$0xff]  }
  0x32   : > { %732 = vmatpush1.bf16.msra.mxu0 %v1720_v30  ;;  %773 = vmatpush1.bf16.msra.mxu1 %v1721_v31  ;;  %v1805_v25 = vld [vmem:[%s2524_s4 + $0x124] ss:$8 sps:$4 sm:$0xff]   ;;  %v1803_v27 = vld [vmem:[%s2524_s4 + $0x120] ss:$8 sps:$4 sm:$0xff]   ;;  %v1808_v28 = vld [vmem:[%s2524_s4 + $0x14] ss:$8 sps:$4 sm:$0xff]  }
  0x33   : > { %733 = vmatprep.subr.bf16.mxu0 %v1722_v32  ;;  %774 = vmatprep.subr.bf16.mxu1 %v1724_v33  ;;  %v1811_v29 = vld [vmem:[%s2524_s4 + $0x114] ss:$8 sps:$4 sm:$0xff]   ;;  %v1806_v30 = vld [vmem:[%s2524_s4 + $0x10] ss:$8 sps:$4 sm:$0xff]   ;;  %v1814_v32 = vld [vmem:[%s2524_s4 + $0x4] ss:$8 sps:$4 sm:$0xff]  }
  0x34   : > { %v1809_v31 = vld [vmem:[%s2524_s4 + $0x110] ss:$8 sps:$4 sm:$0xff]   ;;  %v1817_v33 = vld [vmem:[%s2524_s4 + $0x104] ss:$8 sps:$4 sm:$0xff]   ;;  %s289_s19 = scalar_lea.vmem [#allocation2], %s1477_s28  ;;  %s1362_s11 = scalar_lea.sflag [#allocation3], %s287_s17 }
  0x35   : > { %v1838_v49 = vld [vmem:[%s2524_s4 + $0xc4] ss:$8 sps:$4 sm:$0xff]   ;;  %s1378_s20 = sshll.u32 %s289_s19, 4  ;;  %s1947_s24 = smov [#allocation2]   ;;  %s1379_s20 = int_to_ptr.vmem [resolvable:$true] %s1378_s20 }
  0x36   : > { %734 = vmatpush2.bf16.msra.mxu0 %v1726_v34  ;;  %775 = vmatpush2.bf16.msra.mxu1 %v1727_v35  ;;  %v1812_v34 = vld [vmem:[%s2524_s4] ss:$8 sps:$4 sm:$0xff]   ;;  %s1868_s13 = scalar_lea.vmem %s1379_s20, 256  ;;  %s1872_s14 = sshll.u32 %s1947_s24, 4  ;;  %s1873_s14 = int_to_ptr.vmem [resolvable:$false] %s1872_s14 }
  0x37   : > { %735 = vmatprep.subr.bf16.mxu0 %v1728_v36  ;;  %776 = vmatprep.subr.bf16.mxu1 %v1730_v37  ;;  %v1815_v35 = vld [vmem:[%s2524_s4 + $0x100] ss:$8 sps:$4 sm:$0xff]   ;;  %v1820_v36 = vld [vmem:[%s2524_s4 + $0xf4] ss:$8 sps:$4 sm:$0xff]   ;;  %p1869_p12 = scmp.ne.s32.totalorder %s1379_s20, %s1868_s13  ;;  %s1874_s15 = scalar_lea.vmem %s1873_s14, 512 }
  0x38   : > { %v1823_v37 = vld [vmem:[%s2524_s4 + $0x1f4] ss:$8 sps:$4 sm:$0xff]   ;;  %p1875_p1 = scmp.lt.s32.totalorder %s1379_s20, %s1873_s14  ;;  %p1876_p2 = scmp.lt.s32.totalorder %s1874_s15, %s1868_s13 }
  0x39   : > { %p1870_p13 = pnand %p1869_p12, %p2023_p4 }
  0x3a   : > { %736 = vmatpush2.bf16.msra.mxu0 %v1732_v38  ;;  %777 = vmatpush2.bf16.msra.mxu1 %v1733_v39  ;;  %v1818_v38 = vld [vmem:[%s2524_s4 + $0xf0] ss:$8 sps:$4 sm:$0xff]   ;;  %p1877_p3 = por %p1876_p2, %p1875_p1 }
  0x3b   : > { %737 = vmatprep.subr.bf16.mxu0 %v1734_v40  ;;  %778 = vmatprep.subr.bf16.mxu1 %v1736_v41  ;;  %v1821_v39 = vld [vmem:[%s2524_s4 + $0x1f0] ss:$8 sps:$4 sm:$0xff]   ;;  %v1826_v40 = vld [vmem:[%s2524_s4 + $0xe4] ss:$8 sps:$4 sm:$0xff]   ;;  %p1871_p0 = pneg %p1870_p13 }
  0x3c   : > { %v1829_v41 = vld [vmem:[%s2524_s4 + $0x1e4] ss:$8 sps:$4 sm:$0xff]  }
  0x3d   : > { %p1878_p5 = pnand %p1877_p3, %p1871_p0 }
  0x3e   : > { %738 = vmatpush2.bf16.msra.mxu0 %v1738_v42  ;;  %779 = vmatpush2.bf16.msra.mxu1 %v1739_v43  ;;  %v1824_v42 = vld [vmem:[%s2524_s4 + $0xe0] ss:$8 sps:$4 sm:$0xff]  }
  0x3f   : > { %739 = vmatprep.subr.bf16.mxu0 %v1740_v44  ;;  %780 = vmatprep.subr.bf16.mxu1 %v1742_v45  ;;  %v1827_v43 = vld [vmem:[%s2524_s4 + $0x1e0] ss:$8 sps:$4 sm:$0xff]   ;;  %v1832_v44 = vld [vmem:[%s2524_s4 + $0xd4] ss:$8 sps:$4 sm:$0xff]  }
  0x40   : > { %v1835_v45 = vld [vmem:[%s2524_s4 + $0x1d4] ss:$8 sps:$4 sm:$0xff]  }
  0x42   : > { %740 = vmatpush2.bf16.msra.mxu0 %v1744_v47  ;;  %781 = vmatpush2.bf16.msra.mxu1 %v1745_v48  ;;  %v1830_v47 = vld [vmem:[%s2524_s4 + $0xd0] ss:$8 sps:$4 sm:$0xff]  }
  0x43   : > { %741 = vmatprep.subr.bf16.mxu0 %v1746_v50  ;;  %782 = vmatprep.subr.bf16.mxu1 %v1748_v51  ;;  %v1833_v48 = vld [vmem:[%s2524_s4 + $0x1d0] ss:$8 sps:$4 sm:$0xff]   ;;  %v1841_v50 = vld [vmem:[%s2524_s4 + $0x1c4] ss:$8 sps:$4 sm:$0xff]   ;;  %v1836_v51 = vld [vmem:[%s2524_s4 + $0xc0] ss:$8 sps:$4 sm:$0xff]  }
  0x46   : > { %742 = vmatpush2.bf16.msra.mxu0 %v1750_v52  ;;  %783 = vmatpush2.bf16.msra.mxu1 %v1751_v53  ;;  %v1839_v52 = vld [vmem:[%s2524_s4 + $0x1c0] ss:$8 sps:$4 sm:$0xff]   ;;  %v1844_v53 = vld [vmem:[%s2524_s4 + $0xb4] ss:$8 sps:$4 sm:$0xff]  }
  0x47   : > { %743 = vmatprep.subr.bf16.mxu0 %v1752_v54  ;;  %784 = vmatprep.subr.bf16.mxu1 %v1754_v55  ;;  %v1847_v54 = vld [vmem:[%s2524_s4 + $0x1b4] ss:$8 sps:$4 sm:$0xff]   ;;  %v1842_v55 = vld [vmem:[%s2524_s4 + $0xb0] ss:$8 sps:$4 sm:$0xff]  }
  0x4a   : > { %744 = vmatpush2.bf16.msra.mxu0 %v1756_v56  ;;  %785 = vmatpush2.bf16.msra.mxu1 %v1757_v57  ;;  %v1845_v56 = vld [vmem:[%s2524_s4 + $0x1b0] ss:$8 sps:$4 sm:$0xff]   ;;  %v1850_v57 = vld [vmem:[%s2524_s4 + $0xa4] ss:$8 sps:$4 sm:$0xff]  }
  0x4b   : > { %745 = vmatprep.subr.bf16.mxu0 %v1758_v58  ;;  %786 = vmatprep.subr.bf16.mxu1 %v1760_v59  ;;  %v1853_v58 = vld [vmem:[%s2524_s4 + $0x1a4] ss:$8 sps:$4 sm:$0xff]   ;;  %v1848_v59 = vld [vmem:[%s2524_s4 + $0xa0] ss:$8 sps:$4 sm:$0xff]  }
  0x4e   : > { %746 = vmatpush2.bf16.msra.mxu0 %v1762_v60  ;;  %787 = vmatpush2.bf16.msra.mxu1 %v1763_v61  ;;  %v1851_v60 = vld [vmem:[%s2524_s4 + $0x1a0] ss:$8 sps:$4 sm:$0xff]   ;;  %v1856_v61 = vld [vmem:[%s2524_s4 + $0x94] ss:$8 sps:$4 sm:$0xff]  }
  0x4f   : > { %747 = vmatprep.subr.bf16.mxu0 %v1764_v62  ;;  %788 = vmatprep.subr.bf16.mxu1 %v1766_v63  ;;  %v1859_v62 = vld [vmem:[%s2524_s4 + $0x194] ss:$8 sps:$4 sm:$0xff]   ;;  %v1854_v63 = vld [vmem:[%s2524_s4 + $0x90] ss:$8 sps:$4 sm:$0xff]  }
  0x52   : > { %748 = vmatpush2.bf16.msra.mxu0 %v1768_v0  ;;  %789 = vmatpush2.bf16.msra.mxu1 %v1769_v1  ;;  %v1857_v0 = vld [vmem:[%s2524_s4 + $0x190] ss:$8 sps:$4 sm:$0xff]   ;;  %v1862_v1 = vld [vmem:[%s2524_s4 + $0x84] ss:$8 sps:$4 sm:$0xff]  }
  0x53   : > { %1210 = vmatprep.subr.bf16.mxu0 %v1772_v3  ;;  %1251 = vmatprep.subr.bf16.mxu1 %v1775_v4  ;;  %v1865_v3 = vld [vmem:[%s2524_s4 + $0x184] ss:$8 sps:$4 sm:$0xff]   ;;  %v1860_v4 = vld [vmem:[%s2524_s4 + $0x80] ss:$8 sps:$4 sm:$0xff]  }
  0x55   : > { %750 = vmatmul.mubr.bf16.vlgmr.msra.gmra.mxu0 %v309_v5  ;;  %791 = vmatmul.mubr.bf16.vlgmr.msra.gmra.mxu1 %v309_v5  ;;  %v1863_v5 = vld [vmem:[%s2524_s4 + $0x180] ss:$8 sps:$4 sm:$0xff]  }
  0x56   : > { %1211 = vmatpush1.bf16.msra.mxu0 %v1770_v6  ;;  %1252 = vmatpush1.bf16.msra.mxu1 %v1773_v7  ;;  %v377_v6 = vlaneseq }
  0x57   : > { %1212 = vmatprep.subr.bf16.mxu0 %v1778_v8  ;;  %1253 = vmatprep.subr.bf16.mxu1 %v1781_v9 }
  0x58   : > { %v2442_v7 = vshrl.u32 %v377_v6, 7 }
  0x5a   : > { %1213 = vmatpush1.bf16.msra.mxu0 %v1776_v10  ;;  %1254 = vmatpush1.bf16.msra.mxu1 %v1779_v11  ;;  %v379_v8 = vsub.s32 0, %v2442_v7  ;;  %v2446_v9 = vsub.s32 2, %v2442_v7  ;;  %v375_v10 = vld [vmem:[%s2523_s3] sm:$0xf]  ;;  %v2452_v11 = vsub.s32 1, %v2442_v7  ;;  %v1317_v6 = vsub.s32 5, %v2442_v7 }
  0x5b   : > { %1214 = vmatprep.subr.bf16.mxu0 %v1784_v12  ;;  %1255 = vmatprep.subr.bf16.mxu1 %v1787_v13  ;;  %v391_v12 = vsub.s32 3, %v2442_v7 }
  0x5c   : > { %v380_v13 = vrot.slane %v375_v10, %v379_v8 }
  0x5e   : > { %1215 = vmatpush1.bf16.msra.mxu0 %v1782_v14  ;;  %1256 = vmatpush1.bf16.msra.mxu1 %v1785_v15  ;;  %v388_v14 = vrot.slane %v375_v10, %v2446_v9  ;;  %v384_v15 = vrot.slane %v375_v10, %v2452_v11 }
  0x5f   : > { %1216 = vmatprep.subr.bf16.mxu0 %v1790_v16  ;;  %1257 = vmatprep.subr.bf16.mxu1 %v1793_v17  ;;  %v392_v16 = vrot.slane %v375_v10, %v391_v12 }
  0x62   : > { %1217 = vmatpush1.bf16.msra.mxu0 %v1788_v18  ;;  %1258 = vmatpush1.bf16.msra.mxu1 %v1791_v19 }
  0x63   : > { %1218 = vmatprep.subr.bf16.mxu0 %v1796_v20  ;;  %1259 = vmatprep.subr.bf16.mxu1 %v1799_v21 }
  0x66   : > { %1219 = vmatpush1.bf16.msra.mxu0 %v1794_v22  ;;  %1260 = vmatpush1.bf16.msra.mxu1 %v1797_v23 }
  0x67   : > { %1220 = vmatprep.subr.bf16.mxu0 %v1802_v24  ;;  %1261 = vmatprep.subr.bf16.mxu1 %v1805_v25 }
  0x6a   : > { %1221 = vmatpush1.bf16.msra.mxu0 %v1800_v26  ;;  %1262 = vmatpush1.bf16.msra.mxu1 %v1803_v27 }
  0x6b   : > { %1222 = vmatprep.subr.bf16.mxu0 %v1808_v28  ;;  %1263 = vmatprep.subr.bf16.mxu1 %v1811_v29 }
  0x6e   : > { %1223 = vmatpush1.bf16.msra.mxu0 %v1806_v30  ;;  %1264 = vmatpush1.bf16.msra.mxu1 %v1809_v31 }
  0x6f   : > { %1224 = vmatprep.subr.bf16.mxu0 %v1814_v32  ;;  %1265 = vmatprep.subr.bf16.mxu1 %v1817_v33 }
  0x72   : > { %1225 = vmatpush1.bf16.msra.mxu0 %v1812_v34  ;;  %1266 = vmatpush1.bf16.msra.mxu1 %v1815_v35 }
  0x73   : > { %1226 = vmatprep.subr.bf16.mxu0 %v1820_v36  ;;  %1267 = vmatprep.subr.bf16.mxu1 %v1823_v37  ;;  %v306_v37 = vld [vmem:[%s2525_s5] sm:$0x77] }
  0x74   : > { %v1314_v10 = vrot.slane %v306_v37, %v2452_v11  ;;  %v1318_v12 = vrot.slane %v306_v37, %v1317_v6 }
  0x76   : > { %1227 = vmatpush2.bf16.msra.mxu0 %v1818_v38  ;;  %1268 = vmatpush2.bf16.msra.mxu1 %v1821_v39  ;;  %v878_v38 = vsub.s32 4, %v2442_v7  ;;  %v875_v39 = vrot.slane %v306_v37, %v379_v8 }
  0x77   : > { %1228 = vmatprep.subr.bf16.mxu0 %v1826_v40  ;;  %1269 = vmatprep.subr.bf16.mxu1 %v1829_v41 }
  0x78   : > { %v879_v40 = vrot.slane %v306_v37, %v878_v38  ;;  %v885_v41 = vrot.slane %v875_v39, %v379_v8 }
  0x7a   : > { %1229 = vmatpush2.bf16.msra.mxu0 %v1824_v42  ;;  %1270 = vmatpush2.bf16.msra.mxu1 %v1827_v43  ;;  %v889_v42 = vrot.slane %v879_v40, %v379_v8  ;;  %v1337_v8 = vsub.s32 6, %v2442_v7 }
  0x7b   : > { %1230 = vmatprep.subr.bf16.mxu0 %v1832_v44  ;;  %1271 = vmatprep.subr.bf16.mxu1 %v1835_v45 }
  0x7e   : > { %1231 = vmatpush2.bf16.msra.mxu0 %v1830_v47  ;;  %1272 = vmatpush2.bf16.msra.mxu1 %v1833_v48 }
  0x7f   : > { %1232 = vmatprep.subr.bf16.mxu0 %v1838_v49  ;;  %1273 = vmatprep.subr.bf16.mxu1 %v1841_v50 }
  0x82   : > { %1233 = vmatpush2.bf16.msra.mxu0 %v1836_v51  ;;  %1274 = vmatpush2.bf16.msra.mxu1 %v1839_v52 }
  0x83   : > { %1234 = vmatprep.subr.bf16.mxu0 %v1844_v53  ;;  %1275 = vmatprep.subr.bf16.mxu1 %v1847_v54 }
  0x86   : > { %1235 = vmatpush2.bf16.msra.mxu0 %v1842_v55  ;;  %1276 = vmatpush2.bf16.msra.mxu1 %v1845_v56 }
  0x87   : > { %1236 = vmatprep.subr.bf16.mxu0 %v1850_v57  ;;  %1277 = vmatprep.subr.bf16.mxu1 %v1853_v58 }
  0x8a   : > { %1237 = vmatpush2.bf16.msra.mxu0 %v1848_v59  ;;  %1278 = vmatpush2.bf16.msra.mxu1 %v1851_v60  ;;  %v1946_v59 = vmov 0   ;;  %v1351_v60 = vld [vmem:[%s305_s16] sm:$0xff] }
  0x8b   : > { %1238 = vmatprep.subr.bf16.mxu0 %v1856_v61  ;;  %1279 = vmatprep.subr.bf16.mxu1 %v1859_v62 }
  0x8c   : > { %1672 = vset.pattern.permute.xlu1 %v1946_v59  ;;  %1673 = vset.pattern.permute.xlu0 %v1946_v59 }
  0x8d   : > { %1354 = vperm.xlu1 %1672, %v1351_v60  }
  0x8e   : > { %1239 = vmatpush2.bf16.msra.mxu0 %v1854_v63  ;;  %1280 = vmatpush2.bf16.msra.mxu1 %v1857_v0 }
  0x8f   : > { %1240 = vmatprep.subr.bf16.mxu0 %v1862_v1  ;;  %1281 = vmatprep.subr.bf16.mxu1 %v1865_v3 }
  0x92   : > { %1241 = vmatpush2.bf16.msra.mxu0 %v1860_v4  ;;  %1282 = vmatpush2.bf16.msra.mxu1 %v1863_v5 }
 0x115   : > { %v751_v17 = vpop.f32.mrf.mxu0  ;;  %v792_v18 = vpop.f32.mrf.mxu1 }
 0x116   : > { %v752_v19 = vadd.f32 %v751_v17, %v380_v13  ;;  %v793_v20 = vadd.f32 %v792_v18, %v388_v14  ;;  %v1334_v13 = vrot.slane %v306_v37, %v2446_v9  ;;  %v1338_v14 = vrot.slane %v306_v37, %v1337_v8 }
 0x117   : > { %v753_v21 = vpop.f32.mrf.mxu0  ;;  %v794_v22 = vpop.f32.mrf.mxu1 }
 0x118   : > { %v801_v23 = vmax.f32 %v793_v20, 0.0  ;;  %v754_v24 = vadd.f32 %v753_v21, %v384_v15  ;;  %v795_v25 = vadd.f32 %v794_v22, %v392_v16  ;;  %v799_v26 = vmax.f32 %v752_v19, 0.0 }
 0x119   : > { %v755_v27 = vpop.f32.mrf.mxu0  ;;  %v796_v28 = vpop.f32.mrf.mxu1  ;;  %v1324_v15 = vrot.slane %v1314_v10, %v2452_v11  ;;  %v1328_v16 = vrot.slane %v1318_v12, %v2452_v11  ;;  %v1344_v18 = vrot.slane %v1334_v13, %v2446_v9  ;;  %v1348_v19 = vrot.slane %v1338_v14, %v2446_v9 }
 0x11a   : > { %v800_v29 = vmax.f32 %v754_v24, 0.0  ;;  %v802_v30 = vmax.f32 %v795_v25, 0.0  ;;  %v805_v31 = vpack.c.bf16 %v801_v23, %v801_v23  ;;  %v803_v36 = vpack.c.bf16 %v799_v26, %v799_v26  ;;  %v1355_v23 = vpop.permute.xlu1 %1354 }
 0x11b   : > { %v756_v32 = vpop.f32.mrf.mxu0  ;;  %v797_v33 = vpop.f32.mrf.mxu1 }
 0x11c   : > { %v804_v34 = vpack.c.bf16 %v800_v29, %v800_v29  ;;  %v806_v35 = vpack.c.bf16 %v802_v30, %v802_v30 }
 0x11e   : > { %1242 = vmatprep.mubr.bf16.mxu0 %v804_v34  ;;  %1283 = vmatprep.mubr.bf16.mxu1 %v806_v35 }
 0x11f   : > { %1243 = vmatmul.mubr.bf16.vlgmr.msra.gmra.mxu0 %v803_v36  ;;  %1284 = vmatmul.mubr.bf16.vlgmr.msra.gmra.mxu1 %v805_v31 }
 0x1df   : > { %v1244_v43 = vpop.f32.mrf.mxu0  ;;  %v1285_v44 = vpop.f32.mrf.mxu1 }
 0x1e0   : > { %v1245_v45 = vadd.f32 %v1244_v43, %v885_v41 }
 0x1e1   : > { %v1246_v47 = vpop.f32.mrf.mxu0  ;;  %v1287_v48 = vpop.f32.mrf.mxu1 }
 0x1e2   : > { %v1286_v49 = vadd.f32 %v1285_v44, %v1245_v45  ;;  %v1247_v50 = vadd.f32 %v1246_v47, %v889_v42 }
 0x1e3   : > { %v1248_v51 = vpop.f32.mrf.mxu0  ;;  %v1289_v52 = vpop.f32.mrf.mxu1 }
 0x1e4   : > { %v1288_v53 = vadd.f32 %v1287_v48, %v1247_v50  ;;  %v1292_v56 = vadd.f32 %v1286_v49, %v2246_v2 }
 0x1e5   : > { %v1249_v54 = vpop.f32.mrf.mxu0  ;;  %v1290_v55 = vpop.f32.mrf.mxu1 }
 0x1e6   : > { %v1293_v57 = vadd.f32 %v1288_v53, %v2187_v46 }
 0x1e8   : > { %v1294_v58 = vadd.f32 %v1293_v57, %v1292_v56 }
 0x1ea   : > { %1295 = vadd.xlane.f32.xlu0 %v1294_v58 }
 0x273   : > { %v1296_v61 = vpop.xlane.xlu0 %1295 }
 0x274   : > { %v1298_v62 = vmul.f32 0.00390625, %v1296_v61 }
 0x276   : > { %v1299_v63 = vsub.f32 %v1292_v56, %v1298_v62  ;;  %v1300_v0 = vsub.f32 %v1293_v57, %v1298_v62 }
 0x278   : > { %v1301_v2 = vmul.f32 %v1299_v63, %v1299_v63  ;;  %v1302_v1 = vmul.f32 %v1300_v0, %v1300_v0 }
 0x27a   : > { %v1303_v46 = vadd.f32 %v1302_v1, %v1301_v2 }
 0x27c   : > { %1304 = vadd.xlane.f32.xlu0 %v1303_v46 }
 0x305   : > { %v1305_v3 = vpop.xlane.xlu0 %1304 }
 0x306   : > { %v1306_v4 = vmul.f32 0.00390625, %v1305_v3 }
 0x308   : > { %v1307_v5 = vadd.f32 1e-05, %v1306_v4 }
 0x30a   : > { %1866 = vrsqrt.f32 %v1307_v5 }
 0x317   : > { %v1867_v17 = vpop.eup %1866 }
 0x318   : > { %v1309_v20 = vmul.f32 %v1867_v17, %v1299_v63  ;;  %v1310_v7 = vmul.f32 %v1867_v17, %v1300_v0 }
 0x31a   : > { %v1329_v21 = vmul.f32 %v1324_v15, %v1309_v20  ;;  %v1330_v22 = vmul.f32 %v1328_v16, %v1310_v7 }
 0x31c   : > { %v1349_v24 = vadd.f32 %v1344_v18, %v1329_v21  ;;  %v1350_v25 = vadd.f32 %v1348_v19, %v1330_v22 }
 0x31e   : > { %v1357_v26 = vmul.f32 %v1355_v23, %v1349_v24  ;;  %v1358_v27 = vmul.f32 %v1355_v23, %v1350_v25 }
 0x320   : > { %1359 = vst [vmem:[%s289_s19] sm:$0xff] %v1357_v26  ;;  %1360 = vst [vmem:[%s289_s19 + $0x8] sm:$0xff] %v1358_v27 }
 0x321   : > { %1881 = shalt.err (!%p1878_p5)
}
 0x322   : > { %s1882_s12 = scalar_lea.hbm %s2480_s8, 256  ;;  %s1886_s28 = scalar_lea.hbm %s2526_s6, 512 }
 0x323   : > { %p1883_p6 = scmp.ne.s32.totalorder %s2480_s8, %s1882_s12  ;;  %p1887_p10 = scmp.lt.s32.totalorder %s2480_s8, %s2526_s6 }
 0x324   : > { %p1888_p11 = scmp.lt.s32.totalorder %s1886_s28, %s1882_s12 }
 0x325   : > { %p1884_p7 = pnand %p1883_p6, %p2023_p4 }
 0x326   : > { %p1889_p12 = por %p1888_p11, %p1887_p10 }
 0x327   : > { %p1885_p9 = pneg %p1884_p7 }
 0x329   : > { %p1890_p13 = pnand %p1889_p12, %p1885_p9 }
 0x32b   : > { %1893 = shalt.err (!%p1890_p13)
}
 0x32c   : > { %1616 = dma.vmem_to_hbm [thread:$0]  (%p2023_p4), %s1379_s20, 256, %s2480_s8, %s1362_s11  }
 0x32d PF: > { %p1622_p0 = scmp.ge.s32.totalorder %s1944_s26, 2  ;;  %s1390_s27 = sand.u32 1, %s1924_s21  }
 0x32e   : > { %s1391_s30 = scalar_lea.sflag [#allocation3], %s1390_s27 }
 0x32f   : > { %p1619_p1 = pnand %p1622_p0, %p2030_p8 }
 0x331   : > { %p1620_p2 = pneg %p1619_p1 }
 0x333   : > { %1919 = dma.done.wait (%p1620_p2), %s1391_s30, 256  }
 0x334   : > { %1921 = vsyncadd (%p1620_p2), %s1391_s30, 4294967040  ;;  %s19_s26 = sadd.s32 1, %s1944_s26   ;;  %s2529_s21 = smov %s1928_s22 }
 0x335   : > { %p16_p3 = scmp.ge.s32.totalorder %s19_s26, 4   ;;  %s2530_s22 = smov %s1932_s23 }
 0x336   : > { %s2531_s23 = smov %s2036_s10  ;;  %s2532_s24 = smov %s1940_s25 }
 0x337   : > { %s2533_s25 = smov %s2535_s29  ;;  %18 = sbr.rel (!%p16_p3) target bundleno = 4 (0x4), region = 82 }
 0x33c   :  { %1396 = vsyncpa [#allocation3], 1 }
 0x33d   :  { %1398 = vsyncpa [#allocation3 + $0x1], 1 }

</bundles_post_ra>
